<compile_context>
chip_gen: v7x
topology: tpu7x:2x2x1
jax: 0.10.0
libtpu: 0.0.40
codegen_flags: <defaults>
</compile_context>

<pallas_src>
import functools

import jax
import jax.numpy as jnp
from jax import lax
from jax.experimental import pallas as pl
from jax.experimental.pallas import tpu as pltpu


# ------------------------------- helpers -------------------------------------

def _round_up(x, m):
    return (x + m - 1) // m * m


def _detect_vmem_capacity():
    try:
        return int(pltpu.get_tpu_info().vmem_capacity_bytes)
    except Exception:
        return 64 * 1024 * 1024        # unknown -> assume the small (v7x-like) case


_VMEM_CAP = _detect_vmem_capacity()
_BIG_VMEM = _VMEM_CAP >= 100 * 1024 * 1024          # v5e / v6e: 128 MiB physical
_VMEM_LIMIT = (80 if _BIG_VMEM else 44) * 1024 * 1024
_VMEM_BUDGET = (56 if _BIG_VMEM else 24) * 1024 * 1024
_SPLIT_FOR_MEGACORE = not _BIG_VMEM                 # v7x-class: 2 TensorCores/chip


def _pick_tm(m, kpad, cpad, cout_vpad, out_itemsize, apply_ln_gelu, fuse_proj, c2pad):
    """Row tile + padded rows + grid steps.

    Single step whenever the layer fits the VMEM budget (grid is a sequential loop on
    v5e/v6e); only v7x-class chips get a 2-way split, and only if each half >= 512 rows.
    """
    fixed = 2 * (kpad * cpad * 2 + 4 * cpad * 4)          # weight + b/g/beta/mask (db)
    if fuse_proj:
        fixed += 2 * (cpad * c2pad * 2 + c2pad * 4)
    per_row = 2 * kpad * 2                                 # double-buffered bf16 patches
    per_row += 2 * cout_vpad * out_itemsize                # double-buffered output tile
    per_row += (4 if apply_ln_gelu else 2) * cpad * 4      # live f32 epilogue temps
    if fuse_proj:
        per_row += c2pad * 4
    avail = max(_VMEM_BUDGET - fixed, 1 << 20)
    tmax = max(256, min(4096, (avail // per_row) // 128 * 128))

    if m <= tmax:
        if _SPLIT_FOR_MEGACORE and m >= 1024:
            tm = _round_up(-(-m // 2), 128)
            return tm, 2 * tm, 2
        return m, m, 1                                     # one full-extent block
    tm = tmax
    steps = -(-m // tm)
    return tm, steps * tm, steps


# ----------------------------- Pallas kernel ----------------------------------

def _fused_conv_ln_gelu_kernel(p_ref, w_ref, b_ref, g_ref, beta_ref, mask_ref, *rest,
                               apply_ln_gelu, fuse_proj, c_true, c_pad, c2_true,
                               eps, exact_gelu):
    # p_ref    : (TM, Kpad)    bf16 im2col patches tile (zero-padded K columns)
    # w_ref    : (Kpad, Cpad)  bf16 flattened HWIO conv weight (zero-padded)
    # b/g/beta : (1, Cpad)     f32 (zero-padded)
    # mask_ref : (1, Cpad)     f32, 1 for true channels, 0 for pad columns
    # optional : w2_ref (Cpad, C2pad) bf16, b2_ref (1, C2pad) f32   (fused 1x1 conv)
    if fuse_proj:
        w2_ref, b2_ref, o_ref = rest
    else:
        (o_ref,) = rest

    # conv as matmul: bf16 operands, f32 accumulation on the MXU.
    y = jnp.dot(p_ref[...], w_ref[...],
                preferred_element_type=jnp.float32) + b_ref[...]       # (TM, Cpad)

    if apply_ln_gelu:
        # channels_first LayerNorm == normalize over channels (last axis here).
        # Padded columns of y are exactly 0 (zero weight columns + zero bias), so the
        # unmasked sum already equals the true-channel sum; the variance term uses one
        # multiply with the precomputed mask (exact, no cancellation).
        inv_c = 1.0 / c_true
        u = jnp.sum(y, axis=-1, keepdims=True) * inv_c
        d = y - u
        d2 = d * d
        if c_true != c_pad:
            d2 = d2 * mask_ref[...]
        var = jnp.sum(d2, axis=-1, keepdims=True) * inv_c
        y = d * lax.rsqrt(var + eps)
        y = g_ref[...] * y + beta_ref[...]     # padded gamma/beta = 0 -> pad cols stay 0
        if exact_gelu:
            # exact erf GELU (PyTorch nn.GELU default); GELU(0)=0 keeps pad cols 0.
            y = 0.5 * y * (1.0 + lax.erf(y * 0.7071067811865476))
        else:
            # opt-in tanh approximation (runs on the EUP); breaks torch-default parity.
            y = 0.5 * y * (1.0 + jnp.tanh(0.7978845608028654 *
                                          (y + 0.044715 * y * y * y)))

    if fuse_proj:
        # fused trailing 1x1 conv: per-pixel projection, rows map 1:1.
        y = jnp.dot(y.astype(w2_ref.dtype), w2_ref[...],
                    preferred_element_type=jnp.float32) + b2_ref[...]
        y = y[:, :c2_true]
    else:
        y = y[:, :c_true]

    # channel-dense store (true Cout only); bf16 for intermediate layers.
    o_ref[...] = y.astype(o_ref.dtype)


def _conv_layer_pallas(patches, w_mat, b, gamma, beta, w2=None, b2=None, *,
                       apply_ln_gelu, out_dtype=jnp.bfloat16, eps=1e-6,
                       exact_gelu=True):
    M, K = patches.shape
    C = w_mat.shape[1]
    Kpad = _round_up(K, 16)            # bf16 sublane packing for the resident weight
    Cpad = _round_up(C, 128)           # MXU N dim filled; exists only inside the kernel
    fuse_proj = w2 is not None
    if fuse_proj:
        C2 = w2.shape[1]
        C2pad = _round_up(C2, 128)
    else:
        C2, C2pad = C, Cpad
    cout = C2 if fuse_proj else C                      # TRUE channels written to HBM
    cout_vpad = C2pad if fuse_proj else Cpad

    out_itemsize = jnp.dtype(out_dtype).itemsize
    TM, Mpad, steps = _pick_tm(M, Kpad, Cpad, cout_vpad, out_itemsize,
                               apply_ln_gelu, fuse_proj, C2pad)

    # zero padding keeps the math exact; bf16 MXU inputs.
    p = patches.astype(jnp.bfloat16)
    if (Mpad, Kpad) != (M, K):
        p = jnp.pad(p, ((0, Mpad - M), (0, Kpad - K)))
    w_p = jnp.pad(w_mat, ((0, Kpad - K), (0, Cpad - C))).astype(jnp.bfloat16)
    b_p = jnp.pad(b, (0, Cpad - C)).reshape(1, Cpad).astype(jnp.float32)
    g_p = jnp.pad(gamma, (0, Cpad - C)).reshape(1, Cpad).astype(jnp.float32)
    bt_p = jnp.pad(beta, (0, Cpad - C)).reshape(1, Cpad).astype(jnp.float32)
    mask = (jnp.arange(Cpad) < C).astype(jnp.float32).reshape(1, Cpad)

    in_specs = [
        pl.BlockSpec((TM, Kpad), lambda i: (i, 0)),
        # loop-invariant operands (constant index_map); tiny, resident across the grid.
        pl.BlockSpec((Kpad, Cpad), lambda i: (0, 0)),
        pl.BlockSpec((1, Cpad), lambda i: (0, 0)),
        pl.BlockSpec((1, Cpad), lambda i: (0, 0)),
        pl.BlockSpec((1, Cpad), lambda i: (0, 0)),
        pl.BlockSpec((1, Cpad), lambda i: (0, 0)),
    ]
    args = [p, w_p, b_p, g_p, bt_p, mask]
    if fuse_proj:
        w2_p = jnp.pad(w2, ((0, Cpad - C), (0, C2pad - C2))).astype(jnp.bfloat16)
        b2_p = jnp.pad(b2, (0, C2pad - C2)).reshape(1, C2pad).astype(jnp.float32)
        in_specs += [pl.BlockSpec((Cpad, C2pad), lambda i: (0, 0)),
                     pl.BlockSpec((1, C2pad), lambda i: (0, 0))]
        args += [w2_p, b2_p]

    flops = 2 * Mpad * Kpad * Cpad + (2 * Mpad * Cpad * C2pad if fuse_proj else 0)
    transcendentals = Mpad * (Cpad + 1) if apply_ln_gelu else 0
    bytes_accessed = (Mpad * Kpad * 2 + Kpad * Cpad * 2 + 4 * Cpad * 4
                      + Mpad * cout * out_itemsize
                      + ((Cpad * C2pad * 2 + C2pad * 4) if fuse_proj else 0))

    kernel = functools.partial(_fused_conv_ln_gelu_kernel,
                               apply_ln_gelu=apply_ln_gelu, fuse_proj=fuse_proj,
                               c_true=C, c_pad=Cpad, c2_true=C2,
                               eps=eps, exact_gelu=exact_gelu)

    out = pl.pallas_call(
        kernel,
        out_shape=jax.ShapeDtypeStruct((Mpad, cout), out_dtype),
        grid=(steps,),
        in_specs=in_specs,
        out_specs=pl.BlockSpec((TM, cout), lambda i: (i, 0)),
        compiler_params=pltpu.CompilerParams(
            dimension_semantics=("parallel",),
            vmem_limit_bytes=_VMEM_LIMIT),
        cost_estimate=pl.CostEstimate(flops=int(flops),
                                      transcendentals=int(transcendentals),
                                      bytes_accessed=int(bytes_accessed)),
    )(*args)
    return out[:M]          # no-op when single-step (Mpad == M); channels already dense


# ------------------------------ glue (plain JAX) ------------------------------

def _im2col(x_nhwc, k, stride, pad):
    N, H, W, C = x_nhwc.shape
    if pad > 0:
        x_nhwc = jnp.pad(x_nhwc, ((0, 0), (pad, pad), (pad, pad), (0, 0)))
    Ho = (H + 2 * pad - k) // stride + 1
    Wo = (W + 2 * pad - k) // stride + 1
    cols = []
    for di in range(k):
        for dj in range(k):
            cols.append(x_nhwc[:,
                               di:di + stride * (Ho - 1) + 1:stride,
                               dj:dj + stride * (Wo - 1) + 1:stride, :])
    patches = jnp.concatenate(cols, axis=-1)          # (N, Ho, Wo, k*k*C)
    return patches.reshape(N * Ho * Wo, k * k * C), (N, Ho, Wo)


# layer configs: (kernel, stride, pad, apply_ln_gelu)
_LAYER_CFGS = [(3, 2, 1, True),
               (3, 2, 1, True),
               (3, 2, 1, True),
               (3, 2, 1, True),
               (1, 1, 0, False)]


@jax.jit
def convblock_forward(x_nchw, params):
    """ConvBlock.forward.  x_nchw: (N, 3, H, W) f32 -> (N, fin_dim, H/16, W/16)."""
    x = jnp.transpose(x_nchw, (0, 2, 3, 1))                   # -> NHWC
    i, n = 0, len(_LAYER_CFGS)
    while i < n:
        k, s, pad, ln = _LAYER_CFGS[i]
        w, b, g, bt = params[i]
        patches, (N, Ho, Wo) = _im2col(x.astype(jnp.bfloat16), k, s, pad)
        w_mat = w.reshape(-1, w.shape[-1])                    # HWIO flat: (K, Cout)
        w2 = b2 = None
        if i + 1 < n and _LAYER_CFGS[i + 1] == (1, 1, 0, False):
            # fuse the trailing 1x1 projection into this layer's epilogue
            w2 = params[i + 1][0].reshape(-1, params[i + 1][0].shape[-1])
            b2 = params[i + 1][1]
            i += 1
        is_last = (i == n - 1)
        y = _conv_layer_pallas(patches, w_mat, b, g, bt, w2, b2,
                               apply_ln_gelu=ln,
                               out_dtype=jnp.float32 if is_last else jnp.bfloat16)
        x = y.reshape(N, Ho, Wo, -1)
        i += 1
    return jnp.transpose(x, (0, 3, 1, 2))                     # back to NCHW


def convblock_reference(x_nchw, params, conv_dtype=jnp.float32):
    """Pure-JAX reference (lax.conv).  conv_dtype=bfloat16 gives the same MXU input
    precision as the Pallas kernel (f32 accumulation, f32 LN / exact GELU)."""
    x = jnp.transpose(x_nchw, (0, 2, 3, 1))
    for (k, s, p, ln), (w, b, g, bt) in zip(_LAYER_CFGS, params):
        y = lax.conv_general_dilated(
            x.astype(conv_dtype), w.astype(conv_dtype), (s, s), [(p, p), (p, p)],
            dimension_numbers=('NHWC', 'HWIO', 'NHWC'),
            preferred_element_type=jnp.float32) + b
        if ln:
            u = y.mean(-1, keepdims=True)
            d = y - u
            v = (d * d).mean(-1, keepdims=True)
            y = g * (d / jnp.sqrt(v + 1e-6)) + bt
            y = jax.nn.gelu(y, approximate=False)     # exact erf GELU (torch default)
        x = y
    return jnp.transpose(x, (0, 3, 1, 2))


def make_params(key, siz=8, end_siz=8, fin_dim=384):
    """Deterministic synthetic parameters matching ConvBlock(siz, end_siz, fin_dim)."""
    planes = siz
    fin = planes * end_siz if fin_dim != 432 else 432
    chans = [(3, planes, 3), (planes, planes * 2, 3), (planes * 2, planes * 4, 3),
             (planes * 4, planes * 8, 3), (planes * 8, fin, 1)]
    params = []
    for cin, cout, k in chans:
        key, kw_, kb_ = jax.random.split(key, 3)
        w = 0.05 * jax.random.normal(kw_, (k, k, cin, cout), jnp.float32)   # HWIO
        b = 0.01 * jax.random.normal(kb_, (cout,), jnp.float32)
        gamma = jnp.ones((cout,), jnp.float32)
        beta = jnp.zeros((cout,), jnp.float32)
        params.append((w, b, gamma, beta))
    return params


if __name__ == "__main__":
    key = jax.random.PRNGKey(0)
    key, kx = jax.random.split(key)

    # small shapes: siz=8, end_siz=8 => fin_dim = 64; input NCHW (2, 3, 32, 32)
    siz, end_siz = 8, 8
    x = jax.random.normal(kx, (2, 3, 32, 32), jnp.float32)
    params = make_params(key, siz=siz, end_siz=end_siz, fin_dim=384)

    out = jax.block_until_ready(convblock_forward(x, params))
    ref = jax.block_until_ready(
        convblock_reference(x, params, conv_dtype=jnp.bfloat16))

    assert out.shape == (2, siz * end_siz, 2, 2), out.shape
    assert jnp.allclose(out, ref, rtol=2e-2, atol=2e-2), \
        float(jnp.max(jnp.abs(out - ref)))
    print("KERNEL_OK")
</pallas_src>

<mosaic_0001>
module attributes {stable_mosaic.version = 11 : i64} {
  func.func @_fused_conv_ln_gelu_kernel(%arg0: i32, %arg1: memref<512x32xbf16, #tpu.memory_space<vmem>>, %arg2: memref<32x128xbf16, #tpu.memory_space<vmem>>, %arg3: memref<1x128xf32, #tpu.memory_space<vmem>>, %arg4: memref<1x128xf32, #tpu.memory_space<vmem>>, %arg5: memref<1x128xf32, #tpu.memory_space<vmem>>, %arg6: memref<1x128xf32, #tpu.memory_space<vmem>>, %arg7: memref<512x8xbf16, #tpu.memory_space<vmem>>) attributes {dimension_semantics = [#tpu.dimension_semantics<parallel>], iteration_bounds = array<i64: 1>, scalar_prefetch = 0 : i64, scratch_operands = 0 : i64, tpu.core_type = #tpu.core_type<tc>, window_params = [{transform_indices = @transform_0, window_bounds = array<i64: 512, 32>}, {pipeline_mode = #tpu.pipeline_mode<synchronous>, transform_indices = @transform_1, window_bounds = array<i64: 32, 128>}, {pipeline_mode = #tpu.pipeline_mode<synchronous>, transform_indices = @transform_2, window_bounds = array<i64: 1, 128>}, {pipeline_mode = #tpu.pipeline_mode<synchronous>, transform_indices = @transform_3, window_bounds = array<i64: 1, 128>}, {pipeline_mode = #tpu.pipeline_mode<synchronous>, transform_indices = @transform_4, window_bounds = array<i64: 1, 128>}, {pipeline_mode = #tpu.pipeline_mode<synchronous>, transform_indices = @transform_5, window_bounds = array<i64: 1, 128>}, {transform_indices = @transform_6, window_bounds = array<i64: 512, 8>}]} {
    %c0 = arith.constant 0 : index
    %c0_0 = arith.constant 0 : index
    %0 = vector.load %arg1[%c0, %c0_0] : memref<512x32xbf16, #tpu.memory_space<vmem>>, vector<512x32xbf16>
    %c0_1 = arith.constant 0 : index
    %c0_2 = arith.constant 0 : index
    %1 = vector.load %arg2[%c0_1, %c0_2] : memref<32x128xbf16, #tpu.memory_space<vmem>>, vector<32x128xbf16>
    %cst = arith.constant dense<0.000000e+00> : vector<512x128xf32>
    %2 = tpu.matmul %0, %1, %cst {dimension_numbers = #tpu.dot_dimension_numbers<[1], [0], [0], [1], [0, 0, 1, 1], [], []>} : vector<512x32xbf16>, vector<32x128xbf16>, vector<512x128xf32> -> vector<512x128xf32>
    %c0_3 = arith.constant 0 : index
    %c0_4 = arith.constant 0 : index
    %3 = vector.load %arg3[%c0_3, %c0_4] : memref<1x128xf32, #tpu.memory_space<vmem>>, vector<1x128xf32>
    %4 = vector.broadcast %3 : vector<1x128xf32> to vector<512x128xf32>
    %5 = arith.addf %2, %4 : vector<512x128xf32>
    %cst_5 = arith.constant dense<0.000000e+00> : vector<512xf32>
    %6 = vector.multi_reduction <add>, %5, %cst_5 [1] : vector<512x128xf32> to vector<512xf32>
    %7 = vector.shape_cast %6 : vector<512xf32> to vector<512x1xf32>
    %cst_6 = arith.constant 1.250000e-01 : f32
    %8 = vector.broadcast %cst_6 : f32 to vector<512x1xf32>
    %9 = arith.mulf %7, %8 : vector<512x1xf32>
    %10 = vector.broadcast %9 : vector<512x1xf32> to vector<512x128xf32>
    %11 = arith.subf %5, %10 : vector<512x128xf32>
    %12 = arith.mulf %11, %11 : vector<512x128xf32>
    %c0_7 = arith.constant 0 : index
    %c0_8 = arith.constant 0 : index
    %13 = vector.load %arg6[%c0_7, %c0_8] : memref<1x128xf32, #tpu.memory_space<vmem>>, vector<1x128xf32>
    %14 = vector.broadcast %13 : vector<1x128xf32> to vector<512x128xf32>
    %15 = arith.mulf %12, %14 : vector<512x128xf32>
    %cst_9 = arith.constant dense<0.000000e+00> : vector<512xf32>
    %16 = vector.multi_reduction <add>, %15, %cst_9 [1] : vector<512x128xf32> to vector<512xf32>
    %17 = vector.shape_cast %16 : vector<512xf32> to vector<512x1xf32>
    %cst_10 = arith.constant 1.250000e-01 : f32
    %18 = vector.broadcast %cst_10 : f32 to vector<512x1xf32>
    %19 = arith.mulf %17, %18 : vector<512x1xf32>
    %cst_11 = arith.constant 9.99999997E-7 : f32
    %20 = vector.broadcast %cst_11 : f32 to vector<512x1xf32>
    %21 = arith.addf %19, %20 : vector<512x1xf32>
    %22 = math.rsqrt %21 : vector<512x1xf32>
    %23 = vector.broadcast %22 : vector<512x1xf32> to vector<512x128xf32>
    %24 = arith.mulf %11, %23 : vector<512x128xf32>
    %c0_12 = arith.constant 0 : index
    %c0_13 = arith.constant 0 : index
    %25 = vector.load %arg4[%c0_12, %c0_13] : memref<1x128xf32, #tpu.memory_space<vmem>>, vector<1x128xf32>
    %26 = vector.broadcast %25 : vector<1x128xf32> to vector<512x128xf32>
    %27 = arith.mulf %26, %24 : vector<512x128xf32>
    %c0_14 = arith.constant 0 : index
    %c0_15 = arith.constant 0 : index
    %28 = vector.load %arg5[%c0_14, %c0_15] : memref<1x128xf32, #tpu.memory_space<vmem>>, vector<1x128xf32>
    %29 = vector.broadcast %28 : vector<1x128xf32> to vector<512x128xf32>
    %30 = arith.addf %27, %29 : vector<512x128xf32>
    %cst_16 = arith.constant 5.000000e-01 : f32
    %31 = vector.broadcast %cst_16 : f32 to vector<512x128xf32>
    %32 = arith.mulf %31, %30 : vector<512x128xf32>
    %cst_17 = arith.constant 0.707106769 : f32
    %33 = vector.broadcast %cst_17 : f32 to vector<512x128xf32>
    %34 = arith.mulf %30, %33 : vector<512x128xf32>
    %35 = math.erf %34 : vector<512x128xf32>
    %cst_18 = arith.constant 1.000000e+00 : f32
    %36 = vector.broadcast %cst_18 : f32 to vector<512x128xf32>
    %37 = arith.addf %36, %35 : vector<512x128xf32>
    %38 = arith.mulf %32, %37 : vector<512x128xf32>
    %39 = vector.extract_strided_slice %38 {offsets = [0, 0], sizes = [512, 8], strides = [1, 1]} : vector<512x128xf32> to vector<512x8xf32>
    %40 = arith.truncf %39 : vector<512x8xf32> to vector<512x8xbf16>
    %c0_19 = arith.constant 0 : index
    %c0_20 = arith.constant 0 : index
    %41 = vector.load %arg7[%c0_19, %c0_20] : memref<512x8xbf16, #tpu.memory_space<vmem>>, vector<512x8xbf16>
    tpu.vector_store %arg7[%c0_19, %c0_20], %40 {strides = array<i32>} : memref<512x8xbf16, #tpu.memory_space<vmem>>, vector<512x8xbf16>,
    return
  }
  func.func @transform_0(%arg0: i32) -> (i32, i32) {
    %c0_i32 = arith.constant 0 : i32
    %c0_i32_0 = arith.constant 0 : i32
    return %arg0, %c0_i32 : i32, i32
  }
  func.func @transform_1(%arg0: i32) -> (i32, i32) {
    %c0_i32 = arith.constant 0 : i32
    %c0_i32_0 = arith.constant 0 : i32
    %c0_i32_1 = arith.constant 0 : i32
    return %c0_i32, %c0_i32_0 : i32, i32
  }
  func.func @transform_2(%arg0: i32) -> (i32, i32) {
    %c0_i32 = arith.constant 0 : i32
    %c0_i32_0 = arith.constant 0 : i32
    %c0_i32_1 = arith.constant 0 : i32
    return %c0_i32, %c0_i32_0 : i32, i32
  }
  func.func @transform_3(%arg0: i32) -> (i32, i32) {
    %c0_i32 = arith.constant 0 : i32
    %c0_i32_0 = arith.constant 0 : i32
    %c0_i32_1 = arith.constant 0 : i32
    return %c0_i32, %c0_i32_0 : i32, i32
  }
  func.func @transform_4(%arg0: i32) -> (i32, i32) {
    %c0_i32 = arith.constant 0 : i32
    %c0_i32_0 = arith.constant 0 : i32
    %c0_i32_1 = arith.constant 0 : i32
    return %c0_i32, %c0_i32_0 : i32, i32
  }
  func.func @transform_5(%arg0: i32) -> (i32, i32) {
    %c0_i32 = arith.constant 0 : i32
    %c0_i32_0 = arith.constant 0 : i32
    %c0_i32_1 = arith.constant 0 : i32
    return %c0_i32, %c0_i32_0 : i32, i32
  }
  func.func @transform_6(%arg0: i32) -> (i32, i32) {
    %c0_i32 = arith.constant 0 : i32
    %c0_i32_0 = arith.constant 0 : i32
    return %arg0, %c0_i32 : i32, i32
  }
}

module attributes {stable_mosaic.version = 11 : i64} {
  func.func @_fused_conv_ln_gelu_kernel(%arg0: i32, %arg1: memref<128x80xbf16, #tpu.memory_space<vmem>>, %arg2: memref<80x128xbf16, #tpu.memory_space<vmem>>, %arg3: memref<1x128xf32, #tpu.memory_space<vmem>>, %arg4: memref<1x128xf32, #tpu.memory_space<vmem>>, %arg5: memref<1x128xf32, #tpu.memory_space<vmem>>, %arg6: memref<1x128xf32, #tpu.memory_space<vmem>>, %arg7: memref<128x16xbf16, #tpu.memory_space<vmem>>) attributes {dimension_semantics = [#tpu.dimension_semantics<parallel>], iteration_bounds = array<i64: 1>, scalar_prefetch = 0 : i64, scratch_operands = 0 : i64, tpu.core_type = #tpu.core_type<tc>, window_params = [{transform_indices = @transform_0, window_bounds = array<i64: 128, 80>}, {pipeline_mode = #tpu.pipeline_mode<synchronous>, transform_indices = @transform_1, window_bounds = array<i64: 80, 128>}, {pipeline_mode = #tpu.pipeline_mode<synchronous>, transform_indices = @transform_2, window_bounds = array<i64: 1, 128>}, {pipeline_mode = #tpu.pipeline_mode<synchronous>, transform_indices = @transform_3, window_bounds = array<i64: 1, 128>}, {pipeline_mode = #tpu.pipeline_mode<synchronous>, transform_indices = @transform_4, window_bounds = array<i64: 1, 128>}, {pipeline_mode = #tpu.pipeline_mode<synchronous>, transform_indices = @transform_5, window_bounds = array<i64: 1, 128>}, {transform_indices = @transform_6, window_bounds = array<i64: 128, 16>}]} {
    %c0 = arith.constant 0 : index
    %c0_0 = arith.constant 0 : index
    %0 = vector.load %arg1[%c0, %c0_0] : memref<128x80xbf16, #tpu.memory_space<vmem>>, vector<128x80xbf16>
    %c0_1 = arith.constant 0 : index
    %c0_2 = arith.constant 0 : index
    %1 = vector.load %arg2[%c0_1, %c0_2] : memref<80x128xbf16, #tpu.memory_space<vmem>>, vector<80x128xbf16>
    %cst = arith.constant dense<0.000000e+00> : vector<128x128xf32>
    %2 = tpu.matmul %0, %1, %cst {dimension_numbers = #tpu.dot_dimension_numbers<[1], [0], [0], [1], [0, 0, 1, 1], [], []>} : vector<128x80xbf16>, vector<80x128xbf16>, vector<128x128xf32> -> vector<128x128xf32>
    %c0_3 = arith.constant 0 : index
    %c0_4 = arith.constant 0 : index
    %3 = vector.load %arg3[%c0_3, %c0_4] : memref<1x128xf32, #tpu.memory_space<vmem>>, vector<1x128xf32>
    %4 = vector.broadcast %3 : vector<1x128xf32> to vector<128x128xf32>
    %5 = arith.addf %2, %4 : vector<128x128xf32>
    %cst_5 = arith.constant dense<0.000000e+00> : vector<128xf32>
    %6 = vector.multi_reduction <add>, %5, %cst_5 [1] : vector<128x128xf32> to vector<128xf32>
    %7 = vector.shape_cast %6 : vector<128xf32> to vector<128x1xf32>
    %cst_6 = arith.constant 6.250000e-02 : f32
    %8 = vector.broadcast %cst_6 : f32 to vector<128x1xf32>
    %9 = arith.mulf %7, %8 : vector<128x1xf32>
    %10 = vector.broadcast %9 : vector<128x1xf32> to vector<128x128xf32>
    %11 = arith.subf %5, %10 : vector<128x128xf32>
    %12 = arith.mulf %11, %11 : vector<128x128xf32>
    %c0_7 = arith.constant 0 : index
    %c0_8 = arith.constant 0 : index
    %13 = vector.load %arg6[%c0_7, %c0_8] : memref<1x128xf32, #tpu.memory_space<vmem>>, vector<1x128xf32>
    %14 = vector.broadcast %13 : vector<1x128xf32> to vector<128x128xf32>
    %15 = arith.mulf %12, %14 : vector<128x128xf32>
    %cst_9 = arith.constant dense<0.000000e+00> : vector<128xf32>
    %16 = vector.multi_reduction <add>, %15, %cst_9 [1] : vector<128x128xf32> to vector<128xf32>
    %17 = vector.shape_cast %16 : vector<128xf32> to vector<128x1xf32>
    %cst_10 = arith.constant 6.250000e-02 : f32
    %18 = vector.broadcast %cst_10 : f32 to vector<128x1xf32>
    %19 = arith.mulf %17, %18 : vector<128x1xf32>
    %cst_11 = arith.constant 9.99999997E-7 : f32
    %20 = vector.broadcast %cst_11 : f32 to vector<128x1xf32>
    %21 = arith.addf %19, %20 : vector<128x1xf32>
    %22 = math.rsqrt %21 : vector<128x1xf32>
    %23 = vector.broadcast %22 : vector<128x1xf32> to vector<128x128xf32>
    %24 = arith.mulf %11, %23 : vector<128x128xf32>
    %c0_12 = arith.constant 0 : index
    %c0_13 = arith.constant 0 : index
    %25 = vector.load %arg4[%c0_12, %c0_13] : memref<1x128xf32, #tpu.memory_space<vmem>>, vector<1x128xf32>
    %26 = vector.broadcast %25 : vector<1x128xf32> to vector<128x128xf32>
    %27 = arith.mulf %26, %24 : vector<128x128xf32>
    %c0_14 = arith.constant 0 : index
    %c0_15 = arith.constant 0 : index
    %28 = vector.load %arg5[%c0_14, %c0_15] : memref<1x128xf32, #tpu.memory_space<vmem>>, vector<1x128xf32>
    %29 = vector.broadcast %28 : vector<1x128xf32> to vector<128x128xf32>
    %30 = arith.addf %27, %29 : vector<128x128xf32>
    %cst_16 = arith.constant 5.000000e-01 : f32
    %31 = vector.broadcast %cst_16 : f32 to vector<128x128xf32>
    %32 = arith.mulf %31, %30 : vector<128x128xf32>
    %cst_17 = arith.constant 0.707106769 : f32
    %33 = vector.broadcast %cst_17 : f32 to vector<128x128xf32>
    %34 = arith.mulf %30, %33 : vector<128x128xf32>
    %35 = math.erf %34 : vector<128x128xf32>
    %cst_18 = arith.constant 1.000000e+00 : f32
    %36 = vector.broadcast %cst_18 : f32 to vector<128x128xf32>
    %37 = arith.addf %36, %35 : vector<128x128xf32>
    %38 = arith.mulf %32, %37 : vector<128x128xf32>
    %39 = vector.extract_strided_slice %38 {offsets = [0, 0], sizes = [128, 16], strides = [1, 1]} : vector<128x128xf32> to vector<128x16xf32>
    %40 = arith.truncf %39 : vector<128x16xf32> to vector<128x16xbf16>
    %c0_19 = arith.constant 0 : index
    %c0_20 = arith.constant 0 : index
    %41 = vector.load %arg7[%c0_19, %c0_20] : memref<128x16xbf16, #tpu.memory_space<vmem>>, vector<128x16xbf16>
    tpu.vector_store %arg7[%c0_19, %c0_20], %40 {strides = array<i32>} : memref<128x16xbf16, #tpu.memory_space<vmem>>, vector<128x16xbf16>,
    return
  }
  func.func @transform_0(%arg0: i32) -> (i32, i32) {
    %c0_i32 = arith.constant 0 : i32
    %c0_i32_0 = arith.constant 0 : i32
    return %arg0, %c0_i32 : i32, i32
  }
  func.func @transform_1(%arg0: i32) -> (i32, i32) {
    %c0_i32 = arith.constant 0 : i32
    %c0_i32_0 = arith.constant 0 : i32
    %c0_i32_1 = arith.constant 0 : i32
    return %c0_i32, %c0_i32_0 : i32, i32
  }
  func.func @transform_2(%arg0: i32) -> (i32, i32) {
    %c0_i32 = arith.constant 0 : i32
    %c0_i32_0 = arith.constant 0 : i32
    %c0_i32_1 = arith.constant 0 : i32
    return %c0_i32, %c0_i32_0 : i32, i32
  }
  func.func @transform_3(%arg0: i32) -> (i32, i32) {
    %c0_i32 = arith.constant 0 : i32
    %c0_i32_0 = arith.constant 0 : i32
    %c0_i32_1 = arith.constant 0 : i32
    return %c0_i32, %c0_i32_0 : i32, i32
  }
  func.func @transform_4(%arg0: i32) -> (i32, i32) {
    %c0_i32 = arith.constant 0 : i32
    %c0_i32_0 = arith.constant 0 : i32
    %c0_i32_1 = arith.constant 0 : i32
    return %c0_i32, %c0_i32_0 : i32, i32
  }
  func.func @transform_5(%arg0: i32) -> (i32, i32) {
    %c0_i32 = arith.constant 0 : i32
    %c0_i32_0 = arith.constant 0 : i32
    %c0_i32_1 = arith.constant 0 : i32
    return %c0_i32, %c0_i32_0 : i32, i32
  }
  func.func @transform_6(%arg0: i32) -> (i32, i32) {
    %c0_i32 = arith.constant 0 : i32
    %c0_i32_0 = arith.constant 0 : i32
    return %arg0, %c0_i32 : i32, i32
  }
}

module attributes {stable_mosaic.version = 11 : i64} {
  func.func @_fused_conv_ln_gelu_kernel(%arg0: i32, %arg1: memref<32x144xbf16, #tpu.memory_space<vmem>>, %arg2: memref<144x128xbf16, #tpu.memory_space<vmem>>, %arg3: memref<1x128xf32, #tpu.memory_space<vmem>>, %arg4: memref<1x128xf32, #tpu.memory_space<vmem>>, %arg5: memref<1x128xf32, #tpu.memory_space<vmem>>, %arg6: memref<1x128xf32, #tpu.memory_space<vmem>>, %arg7: memref<32x32xbf16, #tpu.memory_space<vmem>>) attributes {dimension_semantics = [#tpu.dimension_semantics<parallel>], iteration_bounds = array<i64: 1>, scalar_prefetch = 0 : i64, scratch_operands = 0 : i64, tpu.core_type = #tpu.core_type<tc>, window_params = [{transform_indices = @transform_0, window_bounds = array<i64: 32, 144>}, {pipeline_mode = #tpu.pipeline_mode<synchronous>, transform_indices = @transform_1, window_bounds = array<i64: 144, 128>}, {pipeline_mode = #tpu.pipeline_mode<synchronous>, transform_indices = @transform_2, window_bounds = array<i64: 1, 128>}, {pipeline_mode = #tpu.pipeline_mode<synchronous>, transform_indices = @transform_3, window_bounds = array<i64: 1, 128>}, {pipeline_mode = #tpu.pipeline_mode<synchronous>, transform_indices = @transform_4, window_bounds = array<i64: 1, 128>}, {pipeline_mode = #tpu.pipeline_mode<synchronous>, transform_indices = @transform_5, window_bounds = array<i64: 1, 128>}, {transform_indices = @transform_6, window_bounds = array<i64: 32, 32>}]} {
    %c0 = arith.constant 0 : index
    %c0_0 = arith.constant 0 : index
    %0 = vector.load %arg1[%c0, %c0_0] : memref<32x144xbf16, #tpu.memory_space<vmem>>, vector<32x144xbf16>
    %c0_1 = arith.constant 0 : index
    %c0_2 = arith.constant 0 : index
    %1 = vector.load %arg2[%c0_1, %c0_2] : memref<144x128xbf16, #tpu.memory_space<vmem>>, vector<144x128xbf16>
    %cst = arith.constant dense<0.000000e+00> : vector<32x128xf32>
    %2 = tpu.matmul %0, %1, %cst {dimension_numbers = #tpu.dot_dimension_numbers<[1], [0], [0], [1], [0, 0, 1, 1], [], []>} : vector<32x144xbf16>, vector<144x128xbf16>, vector<32x128xf32> -> vector<32x128xf32>
    %c0_3 = arith.constant 0 : index
    %c0_4 = arith.constant 0 : index
    %3 = vector.load %arg3[%c0_3, %c0_4] : memref<1x128xf32, #tpu.memory_space<vmem>>, vector<1x128xf32>
    %4 = vector.broadcast %3 : vector<1x128xf32> to vector<32x128xf32>
    %5 = arith.addf %2, %4 : vector<32x128xf32>
    %cst_5 = arith.constant dense<0.000000e+00> : vector<32xf32>
    %6 = vector.multi_reduction <add>, %5, %cst_5 [1] : vector<32x128xf32> to vector<32xf32>
    %7 = vector.shape_cast %6 : vector<32xf32> to vector<32x1xf32>
    %cst_6 = arith.constant 3.125000e-02 : f32
    %8 = vector.broadcast %cst_6 : f32 to vector<32x1xf32>
    %9 = arith.mulf %7, %8 : vector<32x1xf32>
    %10 = vector.broadcast %9 : vector<32x1xf32> to vector<32x128xf32>
    %11 = arith.subf %5, %10 : vector<32x128xf32>
    %12 = arith.mulf %11, %11 : vector<32x128xf32>
    %c0_7 = arith.constant 0 : index
    %c0_8 = arith.constant 0 : index
    %13 = vector.load %arg6[%c0_7, %c0_8] : memref<1x128xf32, #tpu.memory_space<vmem>>, vector<1x128xf32>
    %14 = vector.broadcast %13 : vector<1x128xf32> to vector<32x128xf32>
    %15 = arith.mulf %12, %14 : vector<32x128xf32>
    %cst_9 = arith.constant dense<0.000000e+00> : vector<32xf32>
    %16 = vector.multi_reduction <add>, %15, %cst_9 [1] : vector<32x128xf32> to vector<32xf32>
    %17 = vector.shape_cast %16 : vector<32xf32> to vector<32x1xf32>
    %cst_10 = arith.constant 3.125000e-02 : f32
    %18 = vector.broadcast %cst_10 : f32 to vector<32x1xf32>
    %19 = arith.mulf %17, %18 : vector<32x1xf32>
    %cst_11 = arith.constant 9.99999997E-7 : f32
    %20 = vector.broadcast %cst_11 : f32 to vector<32x1xf32>
    %21 = arith.addf %19, %20 : vector<32x1xf32>
    %22 = math.rsqrt %21 : vector<32x1xf32>
    %23 = vector.broadcast %22 : vector<32x1xf32> to vector<32x128xf32>
    %24 = arith.mulf %11, %23 : vector<32x128xf32>
    %c0_12 = arith.constant 0 : index
    %c0_13 = arith.constant 0 : index
    %25 = vector.load %arg4[%c0_12, %c0_13] : memref<1x128xf32, #tpu.memory_space<vmem>>, vector<1x128xf32>
    %26 = vector.broadcast %25 : vector<1x128xf32> to vector<32x128xf32>
    %27 = arith.mulf %26, %24 : vector<32x128xf32>
    %c0_14 = arith.constant 0 : index
    %c0_15 = arith.constant 0 : index
    %28 = vector.load %arg5[%c0_14, %c0_15] : memref<1x128xf32, #tpu.memory_space<vmem>>, vector<1x128xf32>
    %29 = vector.broadcast %28 : vector<1x128xf32> to vector<32x128xf32>
    %30 = arith.addf %27, %29 : vector<32x128xf32>
    %cst_16 = arith.constant 5.000000e-01 : f32
    %31 = vector.broadcast %cst_16 : f32 to vector<32x128xf32>
    %32 = arith.mulf %31, %30 : vector<32x128xf32>
    %cst_17 = arith.constant 0.707106769 : f32
    %33 = vector.broadcast %cst_17 : f32 to vector<32x128xf32>
    %34 = arith.mulf %30, %33 : vector<32x128xf32>
    %35 = math.erf %34 : vector<32x128xf32>
    %cst_18 = arith.constant 1.000000e+00 : f32
    %36 = vector.broadcast %cst_18 : f32 to vector<32x128xf32>
    %37 = arith.addf %36, %35 : vector<32x128xf32>
    %38 = arith.mulf %32, %37 : vector<32x128xf32>
    %39 = vector.extract_strided_slice %38 {offsets = [0, 0], sizes = [32, 32], strides = [1, 1]} : vector<32x128xf32> to vector<32x32xf32>
    %40 = arith.truncf %39 : vector<32x32xf32> to vector<32x32xbf16>
    %c0_19 = arith.constant 0 : index
    %c0_20 = arith.constant 0 : index
    %41 = vector.load %arg7[%c0_19, %c0_20] : memref<32x32xbf16, #tpu.memory_space<vmem>>, vector<32x32xbf16>
    tpu.vector_store %arg7[%c0_19, %c0_20], %40 {strides = array<i32>} : memref<32x32xbf16, #tpu.memory_space<vmem>>, vector<32x32xbf16>,
    return
  }
  func.func @transform_0(%arg0: i32) -> (i32, i32) {
    %c0_i32 = arith.constant 0 : i32
    %c0_i32_0 = arith.constant 0 : i32
    return %arg0, %c0_i32 : i32, i32
  }
  func.func @transform_1(%arg0: i32) -> (i32, i32) {
    %c0_i32 = arith.constant 0 : i32
    %c0_i32_0 = arith.constant 0 : i32
    %c0_i32_1 = arith.constant 0 : i32
    return %c0_i32, %c0_i32_0 : i32, i32
  }
  func.func @transform_2(%arg0: i32) -> (i32, i32) {
    %c0_i32 = arith.constant 0 : i32
    %c0_i32_0 = arith.constant 0 : i32
    %c0_i32_1 = arith.constant 0 : i32
    return %c0_i32, %c0_i32_0 : i32, i32
  }
  func.func @transform_3(%arg0: i32) -> (i32, i32) {
    %c0_i32 = arith.constant 0 : i32
    %c0_i32_0 = arith.constant 0 : i32
    %c0_i32_1 = arith.constant 0 : i32
    return %c0_i32, %c0_i32_0 : i32, i32
  }
  func.func @transform_4(%arg0: i32) -> (i32, i32) {
    %c0_i32 = arith.constant 0 : i32
    %c0_i32_0 = arith.constant 0 : i32
    %c0_i32_1 = arith.constant 0 : i32
    return %c0_i32, %c0_i32_0 : i32, i32
  }
  func.func @transform_5(%arg0: i32) -> (i32, i32) {
    %c0_i32 = arith.constant 0 : i32
    %c0_i32_0 = arith.constant 0 : i32
    %c0_i32_1 = arith.constant 0 : i32
    return %c0_i32, %c0_i32_0 : i32, i32
  }
  func.func @transform_6(%arg0: i32) -> (i32, i32) {
    %c0_i32 = arith.constant 0 : i32
    %c0_i32_0 = arith.constant 0 : i32
    return %arg0, %c0_i32 : i32, i32
  }
}

module attributes {stable_mosaic.version = 11 : i64} {
  func.func @_fused_conv_ln_gelu_kernel(%arg0: i32, %arg1: memref<8x288xbf16, #tpu.memory_space<vmem>>, %arg2: memref<288x128xbf16, #tpu.memory_space<vmem>>, %arg3: memref<1x128xf32, #tpu.memory_space<vmem>>, %arg4: memref<1x128xf32, #tpu.memory_space<vmem>>, %arg5: memref<1x128xf32, #tpu.memory_space<vmem>>, %arg6: memref<1x128xf32, #tpu.memory_space<vmem>>, %arg7: memref<128x128xbf16, #tpu.memory_space<vmem>>, %arg8: memref<1x128xf32, #tpu.memory_space<vmem>>, %arg9: memref<8x64xf32, #tpu.memory_space<vmem>>) attributes {dimension_semantics = [#tpu.dimension_semantics<parallel>], iteration_bounds = array<i64: 1>, scalar_prefetch = 0 : i64, scratch_operands = 0 : i64, tpu.core_type = #tpu.core_type<tc>, window_params = [{transform_indices = @transform_0, window_bounds = array<i64: 8, 288>}, {pipeline_mode = #tpu.pipeline_mode<synchronous>, transform_indices = @transform_1, window_bounds = array<i64: 288, 128>}, {pipeline_mode = #tpu.pipeline_mode<synchronous>, transform_indices = @transform_2, window_bounds = array<i64: 1, 128>}, {pipeline_mode = #tpu.pipeline_mode<synchronous>, transform_indices = @transform_3, window_bounds = array<i64: 1, 128>}, {pipeline_mode = #tpu.pipeline_mode<synchronous>, transform_indices = @transform_4, window_bounds = array<i64: 1, 128>}, {pipeline_mode = #tpu.pipeline_mode<synchronous>, transform_indices = @transform_5, window_bounds = array<i64: 1, 128>}, {pipeline_mode = #tpu.pipeline_mode<synchronous>, transform_indices = @transform_6, window_bounds = array<i64: 128, 128>}, {pipeline_mode = #tpu.pipeline_mode<synchronous>, transform_indices = @transform_7, window_bounds = array<i64: 1, 128>}, {transform_indices = @transform_8, window_bounds = array<i64: 8, 64>}]} {
    %c0 = arith.constant 0 : index
    %c0_0 = arith.constant 0 : index
    %0 = vector.load %arg1[%c0, %c0_0] : memref<8x288xbf16, #tpu.memory_space<vmem>>, vector<8x288xbf16>
    %c0_1 = arith.constant 0 : index
    %c0_2 = arith.constant 0 : index
    %1 = vector.load %arg2[%c0_1, %c0_2] : memref<288x128xbf16, #tpu.memory_space<vmem>>, vector<288x128xbf16>
    %cst = arith.constant dense<0.000000e+00> : vector<8x128xf32>
    %2 = tpu.matmul %0, %1, %cst {dimension_numbers = #tpu.dot_dimension_numbers<[1], [0], [0], [1], [0, 0, 1, 1], [], []>} : vector<8x288xbf16>, vector<288x128xbf16>, vector<8x128xf32> -> vector<8x128xf32>
    %c0_3 = arith.constant 0 : index
    %c0_4 = arith.constant 0 : index
    %3 = vector.load %arg3[%c0_3, %c0_4] : memref<1x128xf32, #tpu.memory_space<vmem>>, vector<1x128xf32>
    %4 = vector.broadcast %3 : vector<1x128xf32> to vector<8x128xf32>
    %5 = arith.addf %2, %4 : vector<8x128xf32>
    %cst_5 = arith.constant dense<0.000000e+00> : vector<8xf32>
    %6 = vector.multi_reduction <add>, %5, %cst_5 [1] : vector<8x128xf32> to vector<8xf32>
    %7 = vector.shape_cast %6 : vector<8xf32> to vector<8x1xf32>
    %cst_6 = arith.constant 1.562500e-02 : f32
    %8 = vector.broadcast %cst_6 : f32 to vector<8x1xf32>
    %9 = arith.mulf %7, %8 : vector<8x1xf32>
    %10 = vector.broadcast %9 : vector<8x1xf32> to vector<8x128xf32>
    %11 = arith.subf %5, %10 : vector<8x128xf32>
    %12 = arith.mulf %11, %11 : vector<8x128xf32>
    %c0_7 = arith.constant 0 : index
    %c0_8 = arith.constant 0 : index
    %13 = vector.load %arg6[%c0_7, %c0_8] : memref<1x128xf32, #tpu.memory_space<vmem>>, vector<1x128xf32>
    %14 = vector.broadcast %13 : vector<1x128xf32> to vector<8x128xf32>
    %15 = arith.mulf %12, %14 : vector<8x128xf32>
    %cst_9 = arith.constant dense<0.000000e+00> : vector<8xf32>
    %16 = vector.multi_reduction <add>, %15, %cst_9 [1] : vector<8x128xf32> to vector<8xf32>
    %17 = vector.shape_cast %16 : vector<8xf32> to vector<8x1xf32>
    %cst_10 = arith.constant 1.562500e-02 : f32
    %18 = vector.broadcast %cst_10 : f32 to vector<8x1xf32>
    %19 = arith.mulf %17, %18 : vector<8x1xf32>
    %cst_11 = arith.constant 9.99999997E-7 : f32
    %20 = vector.broadcast %cst_11 : f32 to vector<8x1xf32>
    %21 = arith.addf %19, %20 : vector<8x1xf32>
    %22 = math.rsqrt %21 : vector<8x1xf32>
    %23 = vector.broadcast %22 : vector<8x1xf32> to vector<8x128xf32>
    %24 = arith.mulf %11, %23 : vector<8x128xf32>
    %c0_12 = arith.constant 0 : index
    %c0_13 = arith.constant 0 : index
    %25 = vector.load %arg4[%c0_12, %c0_13] : memref<1x128xf32, #tpu.memory_space<vmem>>, vector<1x128xf32>
    %26 = vector.broadcast %25 : vector<1x128xf32> to vector<8x128xf32>
    %27 = arith.mulf %26, %24 : vector<8x128xf32>
    %c0_14 = arith.constant 0 : index
    %c0_15 = arith.constant 0 : index
    %28 = vector.load %arg5[%c0_14, %c0_15] : memref<1x128xf32, #tpu.memory_space<vmem>>, vector<1x128xf32>
    %29 = vector.broadcast %28 : vector<1x128xf32> to vector<8x128xf32>
    %30 = arith.addf %27, %29 : vector<8x128xf32>
    %cst_16 = arith.constant 5.000000e-01 : f32
    %31 = vector.broadcast %cst_16 : f32 to vector<8x128xf32>
    %32 = arith.mulf %31, %30 : vector<8x128xf32>
    %cst_17 = arith.constant 0.707106769 : f32
    %33 = vector.broadcast %cst_17 : f32 to vector<8x128xf32>
    %34 = arith.mulf %30, %33 : vector<8x128xf32>
    %35 = math.erf %34 : vector<8x128xf32>
    %cst_18 = arith.constant 1.000000e+00 : f32
    %36 = vector.broadcast %cst_18 : f32 to vector<8x128xf32>
    %37 = arith.addf %36, %35 : vector<8x128xf32>
    %38 = arith.mulf %32, %37 : vector<8x128xf32>
    %39 = arith.truncf %38 : vector<8x128xf32> to vector<8x128xbf16>
    %c0_19 = arith.constant 0 : index
    %c0_20 = arith.constant 0 : index
    %40 = vector.load %arg7[%c0_19, %c0_20] : memref<128x128xbf16, #tpu.memory_space<vmem>>, vector<128x128xbf16>
    %cst_21 = arith.constant dense<0.000000e+00> : vector<8x128xf32>
    %41 = tpu.matmul %39, %40, %cst_21 {dimension_numbers = #tpu.dot_dimension_numbers<[1], [0], [0], [1], [0, 0, 1, 1], [], []>} : vector<8x128xbf16>, vector<128x128xbf16>, vector<8x128xf32> -> vector<8x128xf32>
    %c0_22 = arith.constant 0 : index
    %c0_23 = arith.constant 0 : index
    %42 = vector.load %arg8[%c0_22, %c0_23] : memref<1x128xf32, #tpu.memory_space<vmem>>, vector<1x128xf32>
    %43 = vector.broadcast %42 : vector<1x128xf32> to vector<8x128xf32>
    %44 = arith.addf %41, %43 : vector<8x128xf32>
    %45 = vector.extract_strided_slice %44 {offsets = [0, 0], sizes = [8, 64], strides = [1, 1]} : vector<8x128xf32> to vector<8x64xf32>
    %c0_24 = arith.constant 0 : index
    %c0_25 = arith.constant 0 : index
    %46 = vector.load %arg9[%c0_24, %c0_25] : memref<8x64xf32, #tpu.memory_space<vmem>>, vector<8x64xf32>
    tpu.vector_store %arg9[%c0_24, %c0_25], %45 {strides = array<i32>} : memref<8x64xf32, #tpu.memory_space<vmem>>, vector<8x64xf32>,
    return
  }
  func.func @transform_0(%arg0: i32) -> (i32, i32) {
    %c0_i32 = arith.constant 0 : i32
    %c0_i32_0 = arith.constant 0 : i32
    return %arg0, %c0_i32 : i32, i32
  }
  func.func @transform_1(%arg0: i32) -> (i32, i32) {
    %c0_i32 = arith.constant 0 : i32
    %c0_i32_0 = arith.constant 0 : i32
    %c0_i32_1 = arith.constant 0 : i32
    return %c0_i32, %c0_i32_0 : i32, i32
  }
  func.func @transform_2(%arg0: i32) -> (i32, i32) {
    %c0_i32 = arith.constant 0 : i32
    %c0_i32_0 = arith.constant 0 : i32
    %c0_i32_1 = arith.constant 0 : i32
    return %c0_i32, %c0_i32_0 : i32, i32
  }
  func.func @transform_3(%arg0: i32) -> (i32, i32) {
    %c0_i32 = arith.constant 0 : i32
    %c0_i32_0 = arith.constant 0 : i32
    %c0_i32_1 = arith.constant 0 : i32
    return %c0_i32, %c0_i32_0 : i32, i32
  }
  func.func @transform_4(%arg0: i32) -> (i32, i32) {
    %c0_i32 = arith.constant 0 : i32
    %c0_i32_0 = arith.constant 0 : i32
    %c0_i32_1 = arith.constant 0 : i32
    return %c0_i32, %c0_i32_0 : i32, i32
  }
  func.func @transform_5(%arg0: i32) -> (i32, i32) {
    %c0_i32 = arith.constant 0 : i32
    %c0_i32_0 = arith.constant 0 : i32
    %c0_i32_1 = arith.constant 0 : i32
    return %c0_i32, %c0_i32_0 : i32, i32
  }
  func.func @transform_6(%arg0: i32) -> (i32, i32) {
    %c0_i32 = arith.constant 0 : i32
    %c0_i32_0 = arith.constant 0 : i32
    %c0_i32_1 = arith.constant 0 : i32
    return %c0_i32, %c0_i32_0 : i32, i32
  }
  func.func @transform_7(%arg0: i32) -> (i32, i32) {
    %c0_i32 = arith.constant 0 : i32
    %c0_i32_0 = arith.constant 0 : i32
    %c0_i32_1 = arith.constant 0 : i32
    return %c0_i32, %c0_i32_0 : i32, i32
  }
  func.func @transform_8(%arg0: i32) -> (i32, i32) {
    %c0_i32 = arith.constant 0 : i32
    %c0_i32_0 = arith.constant 0 : i32
    return %arg0, %c0_i32 : i32, i32
  }
}

</mosaic_0001>

<bundles_post_ra>
// kernel: convblock_forward.4
= control target key start
LH: loop header
LB: loop body
LE: loop exit
PB: predicated region body
PF: predicated region fallthrough
CT: control target
= control target key end

     0   :  { %vm271_vm0 = vcmask 261120   ;;  %vm2150_vm1 = vcmask 60416   ;;  %s4289_s1 = inlined_call_operand.vmem [shape: bf16[32,128], index: 1, kind: input, shape index: {}]   ;;  %s4290_s0 = inlined_call_operand.vmem [shape: bf16[512,32], index: 0, kind: input, shape index: {}]   ;;  %s4291_s2 = inlined_call_operand.vmem [shape: f32[1,128], index: 2, kind: input, shape index: {}]   ;;  %s4292_s5 = inlined_call_operand.vmem [shape: f32[1,128], index: 5, kind: input, shape index: {}]   ;;  %s4293_s3 = inlined_call_operand.vmem [shape: f32[1,128], index: 3, kind: input, shape index: {}]   ;;  %s4294_s4 = inlined_call_operand.vmem [shape: f32[1,128], index: 4, kind: input, shape index: {}]   ;;  %s4295_s6 = inlined_call_operand.vmem [shape: bf16[512,8], index: 6, kind: output, shape index: {}]  }
   0x1   :  { %v2523_v0 = vld [vmem:[%s4289_s1] sm:$0xff]   ;;  %v2524_v1 = vld [vmem:[%s4289_s1 + $0x8] sm:$0xff]   ;;  %v2529_v6 = vld [vmem:[%s4290_s0 + $0x10] sm:$0xff]  }
   0x2   :  { %2451 = vmatprep.subr.bf16.mxu0 %v2523_v0  ;;  %2519 = vmatprep.subr.bf16.mxu1 %v2523_v0  ;;  %v2525_v2 = vld [vmem:[%s4290_s0] sm:$0xff]   ;;  %v2527_v4 = vld [vmem:[%s4290_s0 + $0x8] sm:$0xff]   ;;  %v2531_v7 = vld [vmem:[%s4290_s0 + $0x90] sm:$0xff]  }
   0x3   :  { %2452 = vmatpush3.bf16.msra.mxu0 %v2523_v0  ;;  %2521 = vmatpush3.bf16.msra.mxu1 %v2523_v0  ;;  %v2526_v3 = vld [vmem:[%s4290_s0 + $0x80] sm:$0xff]   ;;  %v2528_v5 = vld [vmem:[%s4290_s0 + $0x88] sm:$0xff]   ;;  %v2530_v8 = vld [vmem:[%s4290_s0 + $0x18] sm:$0xff]  }
   0x4   :  { %2453 = vmatprep.subr.bf16.mxu0 %v2524_v1  ;;  %2520 = vmatprep.subr.bf16.mxu1 %v2524_v1  ;;  %v2532_v9 = vld [vmem:[%s4290_s0 + $0x98] sm:$0xff]   ;;  %v2533_v10 = vld [vmem:[%s4290_s0 + $0x20] sm:$0xff]   ;;  %v2534_v12 = vld [vmem:[%s4290_s0 + $0x28] sm:$0xff]  }
   0x5   :  { %2455 = vmatprep.mubr.msk.bf16.mxu0 %vm271_vm0, %v2525_v2  ;;  %2487 = vmatprep.mubr.msk.bf16.mxu1 %vm271_vm0, %v2526_v3  ;;  %v2535_v11 = vld [vmem:[%s4290_s0 + $0xa0] sm:$0xff]   ;;  %v2536_v13 = vld [vmem:[%s4290_s0 + $0xa8] sm:$0xff]   ;;  %v2537_v14 = vld [vmem:[%s4290_s0 + $0x30] sm:$0xff]  }
   0x6   :  { %v2539_v15 = vld [vmem:[%s4290_s0 + $0xb0] sm:$0xff]   ;;  %v2538_v16 = vld [vmem:[%s4290_s0 + $0x38] sm:$0xff]   ;;  %v2541_v18 = vld [vmem:[%s4290_s0 + $0x40] sm:$0xff]  }
   0x7   :  { %2454 = vmatpush3.bf16.msra.mxu0 %v2524_v1  ;;  %2522 = vmatpush3.bf16.msra.mxu1 %v2524_v1  ;;  %v2540_v17 = vld [vmem:[%s4290_s0 + $0xb8] sm:$0xff]   ;;  %v2543_v19 = vld [vmem:[%s4290_s0 + $0xc0] sm:$0xff]   ;;  %v2542_v20 = vld [vmem:[%s4290_s0 + $0x48] sm:$0xff]  }
   0x8   :  { %v2544_v21 = vld [vmem:[%s4290_s0 + $0xc8] sm:$0xff]   ;;  %v2545_v22 = vld [vmem:[%s4290_s0 + $0x50] sm:$0xff]   ;;  %v2546_v24 = vld [vmem:[%s4290_s0 + $0x58] sm:$0xff]  }
   0x9   :  { %v2547_v23 = vld [vmem:[%s4290_s0 + $0xd0] sm:$0xff]   ;;  %v2548_v25 = vld [vmem:[%s4290_s0 + $0xd8] sm:$0xff]   ;;  %v2549_v26 = vld [vmem:[%s4290_s0 + $0x60] sm:$0xff]  }
   0xa   :  { %2456 = vmatmul.mubr.msk.bf16.vlgmr.msra.gmra.mrb[0].mxu0 %vm271_vm0, %v2527_v4  ;;  %2488 = vmatmul.mubr.msk.bf16.vlgmr.msra.gmra.mrb[0].mxu1 %vm271_vm0, %v2528_v5  ;;  %v2551_v27 = vld [vmem:[%s4290_s0 + $0xe0] sm:$0xff]   ;;  %v2550_v28 = vld [vmem:[%s4290_s0 + $0x68] sm:$0xff]   ;;  %v2553_v30 = vld [vmem:[%s4290_s0 + $0x70] sm:$0xff]  }
   0xb   :  { %2459 = vmatprep.mubr.msk.bf16.mxu0 %vm271_vm0, %v2529_v6  ;;  %2491 = vmatprep.mubr.msk.bf16.mxu1 %vm271_vm0, %v2531_v7  ;;  %v2552_v29 = vld [vmem:[%s4290_s0 + $0xe8] sm:$0xff]   ;;  %v2555_v31 = vld [vmem:[%s4290_s0 + $0xf0] sm:$0xff]   ;;  %v2554_v32 = vld [vmem:[%s4290_s0 + $0x78] sm:$0xff]  }
   0xc   :  { %v2556_v33 = vld [vmem:[%s4290_s0 + $0xf8] sm:$0xff]   ;;  %v2987_v34 = vld [vmem:[%s4291_s2] ss:$0 sm:$0xff] }
  0x12   :  { %2460 = vmatmul.mubr.msk.bf16.gmra.mrb[4].mxu0 %vm271_vm0, %v2530_v8  ;;  %2492 = vmatmul.mubr.msk.bf16.gmra.mrb[4].mxu1 %vm271_vm0, %v2532_v9 }
  0x13   :  { %2463 = vmatprep.mubr.msk.bf16.mxu0 %vm271_vm0, %v2533_v10  ;;  %2495 = vmatprep.mubr.msk.bf16.mxu1 %vm271_vm0, %v2535_v11 }
  0x1a   :  { %2464 = vmatmul.mubr.msk.bf16.gmra.mrb[8].mxu0 %vm271_vm0, %v2534_v12  ;;  %2496 = vmatmul.mubr.msk.bf16.gmra.mrb[8].mxu1 %vm271_vm0, %v2536_v13 }
  0x1b   :  { %2467 = vmatprep.mubr.msk.bf16.mxu0 %vm271_vm0, %v2537_v14  ;;  %2499 = vmatprep.mubr.msk.bf16.mxu1 %vm271_vm0, %v2539_v15 }
  0x22   :  { %2468 = vmatmul.mubr.msk.bf16.gmra.mrb[12].mxu0 %vm271_vm0, %v2538_v16  ;;  %2500 = vmatmul.mubr.msk.bf16.gmra.mrb[12].mxu1 %vm271_vm0, %v2540_v17 }
  0x23   :  { %2471 = vmatprep.mubr.msk.bf16.mxu0 %vm271_vm0, %v2541_v18  ;;  %2503 = vmatprep.mubr.msk.bf16.mxu1 %vm271_vm0, %v2543_v19 }
  0x2a   :  { %2472 = vmatmul.mubr.msk.bf16.gmra.mrb[16].mxu0 %vm271_vm0, %v2542_v20  ;;  %2504 = vmatmul.mubr.msk.bf16.gmra.mrb[16].mxu1 %vm271_vm0, %v2544_v21 }
  0x2b   :  { %2475 = vmatprep.mubr.msk.bf16.mxu0 %vm271_vm0, %v2545_v22  ;;  %2507 = vmatprep.mubr.msk.bf16.mxu1 %vm271_vm0, %v2547_v23 }
  0x32   :  { %2476 = vmatmul.mubr.msk.bf16.gmra.mrb[20].mxu0 %vm271_vm0, %v2546_v24  ;;  %2508 = vmatmul.mubr.msk.bf16.gmra.mrb[20].mxu1 %vm271_vm0, %v2548_v25 }
  0x33   :  { %2479 = vmatprep.mubr.msk.bf16.mxu0 %vm271_vm0, %v2549_v26  ;;  %2511 = vmatprep.mubr.msk.bf16.mxu1 %vm271_vm0, %v2551_v27 }
  0x3a   :  { %2480 = vmatmul.mubr.msk.bf16.gmra.mrb[24].mxu0 %vm271_vm0, %v2550_v28  ;;  %2512 = vmatmul.mubr.msk.bf16.gmra.mrb[24].mxu1 %vm271_vm0, %v2552_v29 }
  0x3b   :  { %2483 = vmatprep.mubr.msk.bf16.mxu0 %vm271_vm0, %v2553_v30  ;;  %2515 = vmatprep.mubr.msk.bf16.mxu1 %vm271_vm0, %v2555_v31 }
  0x42   :  { %2484 = vmatmul.mubr.msk.bf16.gmra.mrb[28].mxu0 %vm271_vm0, %v2554_v32  ;;  %2516 = vmatmul.mubr.msk.bf16.gmra.mrb[28].mxu1 %vm271_vm0, %v2556_v33 }
  0xdd   :  { %v2457_v35 = vpop.f32.mrb[0].mxu0  ;;  %v2489_v36 = vpop.f32.mrb[0].mxu1 }
  0xde   :  { %v2990_v37 = vadd.f32 %v2457_v35, %v2987_v34  ;;  %v2993_v38 = vadd.f32 %v2489_v36, %v2987_v34  ;;  %v402_v39 = vpop.f32.mrb[1].mxu0  ;;  %v530_v40 = vpop.f32.mrb[1].mxu1 }
  0xdf   :  { %v2458_v41 = vpop.f32.mrb[2].mxu0  ;;  %v2490_v42 = vpop.f32.mrb[2].mxu1  ;;  %v2998_v45 = vadd.f32 %v2987_v34, %v402_v39  ;;  %v3006_v49 = vadd.f32 %v2987_v34, %v530_v40 }
  0xe0   :  { %725 = vadd.xlane.f32.xlu0 %v2993_v38  ;;  %v533_v43 = vpop.f32.mrb[3].mxu1  ;;  %661 = vadd.xlane.f32.xlu1 %v2990_v37  ;;  %v405_v44 = vpop.f32.mrb[3].mxu0  ;;  %v3001_v46 = vadd.f32 %v2458_v41, %v2987_v34  ;;  %v3009_v50 = vadd.f32 %v2490_v42, %v2987_v34 }
  0xe1   :  { %v3014_v57 = vadd.f32 %v2987_v34, %v533_v43  ;;  %v3017_v58 = vadd.f32 %v2987_v34, %v405_v44 }
  0xe4   :  { %663 = vadd.xlane.f32.xlu1 %v3001_v46  ;;  %657 = vadd.xlane.f32.xlu0 %v2998_v45 }
  0xe5   :  { %v2461_v47 = vpop.f32.mrb[4].mxu0  ;;  %v2493_v48 = vpop.f32.mrb[4].mxu1 }
  0xe6   :  { %v418_v51 = vpop.f32.mrb[5].mxu0  ;;  %v546_v52 = vpop.f32.mrb[5].mxu1  ;;  %v3022_v61 = vadd.f32 %v2461_v47, %v2987_v34  ;;  %v3034_v5 = vadd.f32 %v2493_v48, %v2987_v34 }
  0xe7   :  { %v2462_v53 = vpop.f32.mrb[6].mxu0  ;;  %v2494_v54 = vpop.f32.mrb[6].mxu1  ;;  %v3046_v9 = vadd.f32 %v2987_v34, %v418_v51  ;;  %v3064_v17 = vadd.f32 %v2987_v34, %v546_v52 }
  0xe8   :  { %727 = vadd.xlane.f32.xlu1 %v3009_v50  ;;  %721 = vadd.xlane.f32.xlu0 %v3006_v49  ;;  %v421_v55 = vpop.f32.mrb[7].mxu0  ;;  %v549_v56 = vpop.f32.mrb[7].mxu1  ;;  %v3025_v62 = vadd.f32 %v2462_v53, %v2987_v34  ;;  %v3037_v6 = vadd.f32 %v2494_v54, %v2987_v34 }
  0xe9   :  { %v3049_v10 = vadd.f32 %v2987_v34, %v421_v55  ;;  %v3067_v18 = vadd.f32 %v2987_v34, %v549_v56 }
  0xec   :  { %723 = vadd.xlane.f32.xlu1 %v3014_v57  ;;  %659 = vadd.xlane.f32.xlu0 %v3017_v58 }
  0xed   :  { %v2465_v59 = vpop.f32.mrb[8].mxu0  ;;  %v2497_v60 = vpop.f32.mrb[8].mxu1 }
  0xee   :  { %v434_v63 = vpop.f32.mrb[9].mxu0  ;;  %v3027_v0 = vpop.f32.mrb[9].mxu1  ;;  %v3072_v21 = vadd.f32 %v2465_v59, %v2987_v34  ;;  %v3104_v40 = vadd.f32 %v2497_v60, %v2987_v34 }
  0xef   :  { %v2466_v1 = vpop.f32.mrb[10].mxu0  ;;  %v2498_v2 = vpop.f32.mrb[10].mxu1  ;;  %v3112_v44 = vadd.f32 %v2987_v34, %v434_v63 }
  0xf0   :  { %671 = vadd.xlane.f32.xlu1 %v3025_v62  ;;  %669 = vadd.xlane.f32.xlu0 %v3022_v61  ;;  %v437_v3 = vpop.f32.mrb[11].mxu0  ;;  %v3031_v4 = vpop.f32.mrb[11].mxu1  ;;  %v3075_v22 = vadd.f32 %v2466_v1, %v2987_v34  ;;  %v3107_v41 = vadd.f32 %v2498_v2, %v2987_v34 }
  0xf1   :  { %v3115_v47 = vadd.f32 %v2987_v34, %v437_v3 }
  0xf4   :  { %735 = vadd.xlane.f32.xlu1 %v3037_v6  ;;  %733 = vadd.xlane.f32.xlu0 %v3034_v5 }
  0xf5   :  { %v3041_v7 = vpop.f32.mrb[12].mxu0  ;;  %v3043_v8 = vpop.f32.mrb[12].mxu1 }
  0xf6   :  { %v3051_v11 = vpop.f32.mrb[13].mxu0  ;;  %v3053_v12 = vpop.f32.mrb[13].mxu1 }
  0xf7   :  { %v2470_v13 = vpop.f32.mrb[14].mxu0  ;;  %v3055_v14 = vpop.f32.mrb[14].mxu1 }
  0xf8   :  { %667 = vadd.xlane.f32.xlu1 %v3049_v10  ;;  %665 = vadd.xlane.f32.xlu0 %v3046_v9  ;;  %v3059_v15 = vpop.f32.mrb[15].mxu0  ;;  %v3061_v16 = vpop.f32.mrb[15].mxu1 }
  0xfc   :  { %731 = vadd.xlane.f32.xlu1 %v3067_v18  ;;  %729 = vadd.xlane.f32.xlu0 %v3064_v17 }
  0xfd   :  { %v2473_v19 = vpop.f32.mrb[16].mxu0  ;;  %v2505_v20 = vpop.f32.mrb[16].mxu1 }
  0xfe   :  { %v3078_v23 = vadd.f32 %v2473_v19, %v2987_v34  ;;  %v466_v24 = vpop.f32.mrb[17].mxu0  ;;  %v3081_v25 = vadd.f32 %v2505_v20, %v2987_v34  ;;  %v594_v26 = vpop.f32.mrb[17].mxu1  ;;  %v3145_v20 = vadd.f32 %v2987_v34, %v3027_v0 }
  0xff   :  { %v3084_v27 = vadd.f32 %v2987_v34, %v466_v24  ;;  %v2474_v28 = vpop.f32.mrb[18].mxu0  ;;  %v3087_v29 = vadd.f32 %v2987_v34, %v594_v26  ;;  %v2506_v30 = vpop.f32.mrb[18].mxu1  ;;  %v3149_v24 = vadd.f32 %v2987_v34, %v3031_v4 }
 0x100   :  { %679 = vadd.xlane.f32.xlu1 %v3075_v22  ;;  %677 = vadd.xlane.f32.xlu0 %v3072_v21  ;;  %v3092_v31 = vadd.f32 %v2474_v28, %v2987_v34  ;;  %v469_v32 = vpop.f32.mrb[19].mxu0  ;;  %v3095_v33 = vadd.f32 %v2506_v30, %v2987_v34  ;;  %v597_v35 = vpop.f32.mrb[19].mxu1  ;;  %4336 = vst [vmem:[#allocation2_spill] sm:$0xff] %v3145_v20 }
 0x101   :  { %v3098_v36 = vadd.f32 %v2987_v34, %v469_v32  ;;  %v3101_v39 = vadd.f32 %v2987_v34, %v597_v35  ;;  %4337 = vst [vmem:[#allocation3_spill] sm:$0xff] %v3149_v24  ;;  %v3155_v30 = vadd.f32 %v3041_v7, %v2987_v34  ;;  %v3158_v32 = vadd.f32 %v2470_v13, %v2987_v34 }
 0x103   :  { %4338 = vst [vmem:[#allocation4_spill] sm:$0xff] %v3155_v30  ;;  %4339 = vst [vmem:[#allocation5_spill] sm:$0xff] %v3158_v32 }
 0x104   :  { %743 = vadd.xlane.f32.xlu1 %v3107_v41  ;;  %741 = vadd.xlane.f32.xlu0 %v3104_v40 }
 0x105   :  { %v2477_v42 = vpop.f32.mrb[20].mxu0  ;;  %v2509_v43 = vpop.f32.mrb[20].mxu1 }
 0x106   :  { %v3118_v48 = vadd.f32 %v2477_v42, %v2987_v34  ;;  %v482_v51 = vpop.f32.mrb[21].mxu0  ;;  %v3121_v52 = vadd.f32 %v2509_v43, %v2987_v34  ;;  %v610_v53 = vpop.f32.mrb[21].mxu1 }
 0x107   :  { %v3124_v54 = vadd.f32 %v2987_v34, %v482_v51  ;;  %v2478_v55 = vpop.f32.mrb[22].mxu0  ;;  %v3127_v56 = vadd.f32 %v2987_v34, %v610_v53  ;;  %v2510_v59 = vpop.f32.mrb[22].mxu1 }
 0x108   :  { %675 = vadd.xlane.f32.xlu1 %v3115_v47  ;;  %673 = vadd.xlane.f32.xlu0 %v3112_v44  ;;  %v3132_v60 = vadd.f32 %v2478_v55, %v2987_v34  ;;  %v485_v63 = vpop.f32.mrb[23].mxu0  ;;  %v3135_v1 = vadd.f32 %v2510_v59, %v2987_v34  ;;  %v613_v2 = vpop.f32.mrb[23].mxu1 }
 0x109   :  { %v3138_v3 = vadd.f32 %v2987_v34, %v485_v63  ;;  %v3141_v19 = vadd.f32 %v2987_v34, %v613_v2 }
 0x10c   :  { %739 = vadd.xlane.f32.xlu1 %v3149_v24  ;;  %737 = vadd.xlane.f32.xlu0 %v3145_v20 }
 0x10d   :  { %v2481_v26 = vpop.f32.mrb[24].mxu0  ;;  %v2513_v28 = vpop.f32.mrb[24].mxu1 }
 0x10e   :  { %v3161_v0 = vadd.f32 %v2481_v26, %v2987_v34  ;;  %v498_v35 = vpop.f32.mrb[25].mxu0  ;;  %v3164_v4 = vadd.f32 %v2513_v28, %v2987_v34  ;;  %v626_v42 = vpop.f32.mrb[25].mxu1  ;;  %v3188_v28 = vadd.f32 %v3043_v8, %v2987_v34 }
 0x10f   :  { %v3167_v43 = vadd.f32 %v2987_v34, %v498_v35  ;;  %v2482_v51 = vpop.f32.mrb[26].mxu0  ;;  %v3170_v53 = vadd.f32 %v2987_v34, %v626_v42  ;;  %v2514_v7 = vpop.f32.mrb[26].mxu1  ;;  %v3192_v35 = vadd.f32 %v3055_v14, %v2987_v34 }
 0x110   :  { %687 = vadd.xlane.f32.xlu1 %v3158_v32  ;;  %685 = vadd.xlane.f32.xlu0 %v3155_v30  ;;  %v3175_v13 = vadd.f32 %v2482_v51, %v2987_v34  ;;  %v501_v55 = vpop.f32.mrb[27].mxu0  ;;  %v3178_v59 = vadd.f32 %v2514_v7, %v2987_v34  ;;  %v629_v63 = vpop.f32.mrb[27].mxu1  ;;  %4340 = vst [vmem:[#allocation6_spill] sm:$0xff] %v3188_v28 }
 0x111   :  { %v3181_v2 = vadd.f32 %v2987_v34, %v501_v55  ;;  %v3184_v26 = vadd.f32 %v2987_v34, %v629_v63  ;;  %4341 = vst [vmem:[#allocation7_spill] sm:$0xff] %v3192_v35  ;;  %v3198_v7 = vadd.f32 %v2987_v34, %v3051_v11  ;;  %v3202_v55 = vadd.f32 %v2987_v34, %v3059_v15 }
 0x113   :  { %4342 = vst [vmem:[#allocation8_spill] sm:$0xff] %v3198_v7 }
 0x114   :  { %751 = vadd.xlane.f32.xlu1 %v3192_v35  ;;  %749 = vadd.xlane.f32.xlu0 %v3188_v28 }
 0x115   :  { %v2485_v42 = vpop.f32.mrb[28].mxu0  ;;  %v2517_v51 = vpop.f32.mrb[28].mxu1 }
 0x116   :  { %v3205_v8 = vadd.f32 %v2485_v42, %v2987_v34  ;;  %v514_v63 = vpop.f32.mrb[29].mxu0  ;;  %v3208_v14 = vadd.f32 %v2517_v51, %v2987_v34  ;;  %v642_v35 = vpop.f32.mrb[29].mxu1 }
 0x117   :  { %v3211_v28 = vadd.f32 %v2987_v34, %v514_v63  ;;  %v2486_v30 = vpop.f32.mrb[30].mxu0  ;;  %v3214_v32 = vadd.f32 %v2987_v34, %v642_v35  ;;  %v2518_v11 = vpop.f32.mrb[30].mxu1  ;;  %v3232_v35 = vadd.f32 %v2987_v34, %v3053_v12 }
 0x118   :  { %4343 = vst [vmem:[#allocation9_spill] sm:$0xff] %v3205_v8  ;;  %4344 = vst [vmem:[#allocation10_spill] sm:$0xff] %v3208_v14  ;;  %683 = vadd.xlane.f32.xlu1 %v3202_v55  ;;  %681 = vadd.xlane.f32.xlu0 %v3198_v7  ;;  %v3219_v15 = vadd.f32 %v2486_v30, %v2987_v34  ;;  %v517_v42 = vpop.f32.mrb[31].mxu0  ;;  %v3222_v51 = vadd.f32 %v2518_v11, %v2987_v34  ;;  %v645_v20 = vpop.f32.mrb[31].mxu1 }
 0x119   :  { %4345 = vst [vmem:[#allocation11_spill] sm:$0xff] %v3211_v28  ;;  %4346 = vst [vmem:[#allocation12_spill] sm:$0xff] %v3214_v32  ;;  %v3225_v63 = vadd.f32 %v2987_v34, %v517_v42  ;;  %v3228_v24 = vadd.f32 %v2987_v34, %v645_v20  ;;  %v3236_v7 = vadd.f32 %v2987_v34, %v3061_v16 }
 0x11a   :  { %4347 = vst [vmem:[#allocation13_spill] sm:$0xff] %v3222_v51 }
 0x11b   :  { %4348 = vst [vmem:[#allocation14_spill] sm:$0xff] %v3225_v63  ;;  %4349 = vst [vmem:[#allocation15_spill] sm:$0xff] %v3228_v24 }
 0x11c   :  { %747 = vadd.xlane.f32.xlu1 %v3236_v7  ;;  %745 = vadd.xlane.f32.xlu0 %v3232_v35 }
 0x120   :  { %695 = vadd.xlane.f32.xlu1 %v3092_v31  ;;  %693 = vadd.xlane.f32.xlu0 %v3078_v23 }
 0x124   :  { %759 = vadd.xlane.f32.xlu1 %v3095_v33  ;;  %757 = vadd.xlane.f32.xlu0 %v3081_v25 }
 0x128   :  { %691 = vadd.xlane.f32.xlu1 %v3098_v36  ;;  %689 = vadd.xlane.f32.xlu0 %v3084_v27 }
 0x12c   :  { %755 = vadd.xlane.f32.xlu1 %v3101_v39  ;;  %753 = vadd.xlane.f32.xlu0 %v3087_v29 }
 0x130   :  { %703 = vadd.xlane.f32.xlu1 %v3132_v60  ;;  %701 = vadd.xlane.f32.xlu0 %v3118_v48 }
 0x134   :  { %767 = vadd.xlane.f32.xlu1 %v3135_v1  ;;  %765 = vadd.xlane.f32.xlu0 %v3121_v52 }
 0x138   :  { %699 = vadd.xlane.f32.xlu1 %v3138_v3  ;;  %697 = vadd.xlane.f32.xlu0 %v3124_v54 }
 0x13c   :  { %763 = vadd.xlane.f32.xlu1 %v3141_v19  ;;  %761 = vadd.xlane.f32.xlu0 %v3127_v56 }
 0x140   :  { %711 = vadd.xlane.f32.xlu1 %v3175_v13  ;;  %709 = vadd.xlane.f32.xlu0 %v3161_v0 }
 0x144   :  { %775 = vadd.xlane.f32.xlu1 %v3178_v59  ;;  %773 = vadd.xlane.f32.xlu0 %v3164_v4 }
 0x148   :  { %707 = vadd.xlane.f32.xlu1 %v3181_v2  ;;  %705 = vadd.xlane.f32.xlu0 %v3167_v43 }
 0x14c   :  { %771 = vadd.xlane.f32.xlu1 %v3184_v26  ;;  %769 = vadd.xlane.f32.xlu0 %v3170_v53 }
 0x150   :  { %719 = vadd.xlane.f32.xlu1 %v3219_v15  ;;  %717 = vadd.xlane.f32.xlu0 %v3205_v8 }
 0x154   :  { %783 = vadd.xlane.f32.xlu1 %v3222_v51  ;;  %781 = vadd.xlane.f32.xlu0 %v3208_v14  ;;  %v3281_v51 = vld [vmem:[%s4292_s5] ss:$0 sm:$0xff] }
 0x158   :  { %715 = vadd.xlane.f32.xlu1 %v3225_v63  ;;  %713 = vadd.xlane.f32.xlu0 %v3211_v28 }
 0x15c   :  { %779 = vadd.xlane.f32.xlu1 %v3228_v24  ;;  %777 = vadd.xlane.f32.xlu0 %v3214_v32 }
 0x16d   :  { %v726_v34 = vpop.xlane.xlu0 %725  ;;  %v662_v12 = vpop.xlane.xlu1 %661 }
 0x16e   :  { %v819_v16 = vmul.f32 0.125, %v726_v34  ;;  %v787_v20 = vmul.f32 0.125, %v662_v12 }
 0x170   :  { %v3273_v30 = vsub.f32 %v2993_v38, %v819_v16  ;;  %v3276_v11 = vsub.f32 %v2990_v37, %v787_v20 }
 0x171   :  { %v664_v42 = vpop.xlane.xlu1 %663  ;;  %v658_v14 = vpop.xlane.xlu0 %657 }
 0x172   :  { %4350 = vst [vmem:[#allocation16_spill] sm:$0xff] %v3273_v30  ;;  %v788_v24 = vmul.f32 0.125, %v664_v42  ;;  %v785_v28 = vmul.f32 0.125, %v658_v14  ;;  %v915_v32 = vmul.f32 %v3276_v11, %v3276_v11  ;;  %v947_v34 = vmul.f32 %v3273_v30, %v3273_v30 }
 0x174   :  { %v3288_v38 = vsub.f32 %v3001_v46, %v788_v24  ;;  %v3291_v37 = vsub.f32 %v2998_v45, %v785_v28  ;;  %v986_v12 = vmul.f32 %v3281_v51, %v915_v32  ;;  %v1018_v42 = vmul.f32 %v3281_v51, %v947_v34 }
 0x175   :  { %v728_v16 = vpop.xlane.xlu1 %727  ;;  %v722_v20 = vpop.xlane.xlu0 %721 }
 0x176   :  { %v820_v63 = vmul.f32 0.125, %v728_v16  ;;  %v817_v8 = vmul.f32 0.125, %v722_v20  ;;  %1052 = vadd.xlane.f32.xlu0 %v986_v12  ;;  %v916_v14 = vmul.f32 %v3288_v38, %v3288_v38  ;;  %v913_v24 = vmul.f32 %v3291_v37, %v3291_v37 }
 0x178   :  { %v3298_v30 = vsub.f32 %v3009_v50, %v820_v63  ;;  %v3301_v46 = vsub.f32 %v3006_v49, %v817_v8  ;;  %v987_v45 = vmul.f32 %v3281_v51, %v916_v14  ;;  %v984_v20 = vmul.f32 %v3281_v51, %v913_v24 }
 0x179   :  { %v724_v32 = vpop.xlane.xlu1 %723  ;;  %v660_v28 = vpop.xlane.xlu0 %659 }
 0x17a   :  { %4351 = vst [vmem:[#allocation17_spill] sm:$0xff] %v3301_v46  ;;  %v818_v16 = vmul.f32 0.125, %v724_v32  ;;  %v786_v12 = vmul.f32 0.125, %v660_v28  ;;  %1054 = vadd.xlane.f32.xlu1 %v987_v45  ;;  %1116 = vadd.xlane.f32.xlu0 %v1018_v42  ;;  %v948_v34 = vmul.f32 %v3298_v30, %v3298_v30  ;;  %v945_v50 = vmul.f32 %v3301_v46, %v3301_v46 }
 0x17c   :  { %v3311_v49 = vsub.f32 %v3014_v57, %v818_v16  ;;  %v3314_v8 = vsub.f32 %v3017_v58, %v786_v12  ;;  %v1019_v63 = vmul.f32 %v3281_v51, %v948_v34  ;;  %v1016_v46 = vmul.f32 %v3281_v51, %v945_v50 }
 0x17d   :  { %v672_v14 = vpop.xlane.xlu1 %671  ;;  %v670_v32 = vpop.xlane.xlu0 %669 }
 0x17e   :  { %v792_v45 = vmul.f32 0.125, %v672_v14  ;;  %v791_v42 = vmul.f32 0.125, %v670_v32  ;;  %1118 = vadd.xlane.f32.xlu1 %v1019_v63  ;;  %1048 = vadd.xlane.f32.xlu0 %v984_v20  ;;  %v914_v28 = vmul.f32 %v3314_v8, %v3314_v8  ;;  %v946_v24 = vmul.f32 %v3311_v49, %v3311_v49 }
 0x180   :  { %v3322_v57 = vsub.f32 %v3025_v62, %v792_v45  ;;  %v3325_v58 = vsub.f32 %v3022_v61, %v791_v42  ;;  %v985_v16 = vmul.f32 %v3281_v51, %v914_v28  ;;  %v1017_v32 = vmul.f32 %v3281_v51, %v946_v24 }
 0x181   :  { %v736_v12 = vpop.xlane.xlu1 %735  ;;  %v734_v34 = vpop.xlane.xlu0 %733 }
 0x182   :  { %v824_v63 = vmul.f32 0.125, %v736_v12  ;;  %v823_v20 = vmul.f32 0.125, %v734_v34  ;;  %1112 = vadd.xlane.f32.xlu0 %v1016_v46  ;;  %1050 = vadd.xlane.f32.xlu1 %v985_v16  ;;  %v919_v50 = vmul.f32 %v3325_v58, %v3325_v58  ;;  %v920_v62 = vmul.f32 %v3322_v57, %v3322_v57 }
 0x184   :  { %v3335_v61 = vsub.f32 %v3037_v6, %v824_v63  ;;  %v3338_v14 = vsub.f32 %v3034_v5, %v823_v20  ;;  %v990_v45 = vmul.f32 %v3281_v51, %v919_v50  ;;  %v991_v34 = vmul.f32 %v3281_v51, %v920_v62 }
 0x185   :  { %v668_v42 = vpop.xlane.xlu1 %667  ;;  %v666_v28 = vpop.xlane.xlu0 %665 }
 0x186   :  { %v790_v46 = vmul.f32 0.125, %v668_v42  ;;  %v789_v16 = vmul.f32 0.125, %v666_v28  ;;  %1114 = vadd.xlane.f32.xlu1 %v1017_v32  ;;  %1060 = vadd.xlane.f32.xlu0 %v990_v45  ;;  %v951_v12 = vmul.f32 %v3338_v14, %v3338_v14  ;;  %v952_v63 = vmul.f32 %v3335_v61, %v3335_v61 }
 0x188   :  { %v3346_v6 = vsub.f32 %v3049_v10, %v790_v46  ;;  %v3349_v5 = vsub.f32 %v3046_v9, %v789_v16  ;;  %v1022_v24 = vmul.f32 %v3281_v51, %v951_v12  ;;  %v1023_v28 = vmul.f32 %v3281_v51, %v952_v63 }
 0x189   :  { %v732_v20 = vpop.xlane.xlu1 %731  ;;  %v730_v50 = vpop.xlane.xlu0 %729 }
 0x18a   :  { %v822_v32 = vmul.f32 0.125, %v732_v20  ;;  %v821_v45 = vmul.f32 0.125, %v730_v50  ;;  %1062 = vadd.xlane.f32.xlu1 %v991_v34  ;;  %1124 = vadd.xlane.f32.xlu0 %v1022_v24  ;;  %v917_v62 = vmul.f32 %v3349_v5, %v3349_v5  ;;  %v918_v10 = vmul.f32 %v3346_v6, %v3346_v6 }
 0x18c   :  { %v3359_v9 = vsub.f32 %v3067_v18, %v822_v32  ;;  %v3362_v42 = vsub.f32 %v3064_v17, %v821_v45  ;;  %v988_v46 = vmul.f32 %v3281_v51, %v917_v62  ;;  %v989_v50 = vmul.f32 %v3281_v51, %v918_v10 }
 0x18d   :  { %v680_v16 = vpop.xlane.xlu1 %679  ;;  %v678_v12 = vpop.xlane.xlu0 %677 }
 0x18e   :  { %v796_v34 = vmul.f32 0.125, %v680_v16  ;;  %v795_v24 = vmul.f32 0.125, %v678_v12  ;;  %1126 = vadd.xlane.f32.xlu1 %v1023_v28  ;;  %1056 = vadd.xlane.f32.xlu0 %v988_v46  ;;  %v949_v20 = vmul.f32 %v3362_v42, %v3362_v42  ;;  %v950_v32 = vmul.f32 %v3359_v9, %v3359_v9 }
 0x190   :  { %v3370_v18 = vsub.f32 %v3075_v22, %v796_v34  ;;  %v3373_v17 = vsub.f32 %v3072_v21, %v795_v24  ;;  %v1020_v63 = vmul.f32 %v3281_v51, %v949_v20  ;;  %v1021_v12 = vmul.f32 %v3281_v51, %v950_v32 }
 0x191   :  { %v744_v45 = vpop.xlane.xlu1 %743  ;;  %v742_v62 = vpop.xlane.xlu0 %741 }
 0x192   :  { %v828_v28 = vmul.f32 0.125, %v744_v45  ;;  %v827_v46 = vmul.f32 0.125, %v742_v62  ;;  %1058 = vadd.xlane.f32.xlu1 %v989_v50  ;;  %1120 = vadd.xlane.f32.xlu0 %v1020_v63  ;;  %v923_v10 = vmul.f32 %v3373_v17, %v3373_v17  ;;  %v924_v22 = vmul.f32 %v3370_v18, %v3370_v18 }
 0x194   :  { %v3383_v21 = vsub.f32 %v3107_v41, %v828_v28  ;;  %v3386_v16 = vsub.f32 %v3104_v40, %v827_v46  ;;  %v994_v34 = vmul.f32 %v3281_v51, %v923_v10  ;;  %v995_v62 = vmul.f32 %v3281_v51, %v924_v22 }
 0x195   :  { %v676_v24 = vpop.xlane.xlu1 %675  ;;  %v674_v20 = vpop.xlane.xlu0 %673 }
 0x196   :  { %v794_v50 = vmul.f32 0.125, %v676_v24  ;;  %v793_v63 = vmul.f32 0.125, %v674_v20  ;;  %1122 = vadd.xlane.f32.xlu1 %v1021_v12  ;;  %1068 = vadd.xlane.f32.xlu0 %v994_v34  ;;  %v955_v45 = vmul.f32 %v3386_v16, %v3386_v16  ;;  %v956_v28 = vmul.f32 %v3383_v21, %v3383_v21  ;;  %v4354_v24 = vld [vmem:[#allocation3_spill] sm:$0xff]  ;;  %v4356_v20 = vld [vmem:[#allocation2_spill] sm:$0xff] }
 0x198   :  { %v3394_v41 = vsub.f32 %v3115_v47, %v794_v50  ;;  %v3397_v40 = vsub.f32 %v3112_v44, %v793_v63  ;;  %v1026_v32 = vmul.f32 %v3281_v51, %v955_v45  ;;  %v1027_v63 = vmul.f32 %v3281_v51, %v956_v28 }
 0x199   :  { %v740_v46 = vpop.xlane.xlu1 %739  ;;  %v738_v10 = vpop.xlane.xlu0 %737 }
 0x19a   :  { %4352 = vst [vmem:[#allocation18_spill] sm:$0xff] %v3394_v41  ;;  %4353 = vst [vmem:[#allocation19_spill] sm:$0xff] %v3397_v40  ;;  %v826_v12 = vmul.f32 0.125, %v740_v46  ;;  %v825_v34 = vmul.f32 0.125, %v738_v10  ;;  %1070 = vadd.xlane.f32.xlu1 %v995_v62  ;;  %1132 = vadd.xlane.f32.xlu0 %v1026_v32  ;;  %v921_v22 = vmul.f32 %v3397_v40, %v3397_v40 }
 0x19b   :  { %v922_v47 = vmul.f32 %v3394_v41, %v3394_v41 }
 0x19c   :  { %v3407_v44 = vsub.f32 %v4354_v24, %v826_v12  ;;  %v3410_v50 = vsub.f32 %v4356_v20, %v825_v34  ;;  %v992_v45 = vmul.f32 %v3281_v51, %v921_v22  ;;  %v4358_v12 = vld [vmem:[#allocation5_spill] sm:$0xff]  ;;  %v4360_v34 = vld [vmem:[#allocation4_spill] sm:$0xff] }
 0x19d   :  { %v688_v46 = vpop.xlane.xlu1 %687  ;;  %v686_v10 = vpop.xlane.xlu0 %685  ;;  %v993_v41 = vmul.f32 %v3281_v51, %v922_v47 }
 0x19e   :  { %4355 = vst [vmem:[#allocation3_spill] sm:$0xff] %v3407_v44  ;;  %4357 = vst [vmem:[#allocation2_spill] sm:$0xff] %v3410_v50  ;;  %v800_v62 = vmul.f32 0.125, %v688_v46  ;;  %v799_v32 = vmul.f32 0.125, %v686_v10  ;;  %1134 = vadd.xlane.f32.xlu1 %v1027_v63  ;;  %1064 = vadd.xlane.f32.xlu0 %v992_v45  ;;  %v953_v40 = vmul.f32 %v3410_v50, %v3410_v50 }
 0x19f   :  { %v954_v22 = vmul.f32 %v3407_v44, %v3407_v44 }
 0x1a0   :  { %v3418_v24 = vsub.f32 %v4358_v12, %v800_v62  ;;  %v3421_v20 = vsub.f32 %v4360_v34, %v799_v32  ;;  %v1024_v28 = vmul.f32 %v3281_v51, %v953_v40  ;;  %v4362_v12 = vld [vmem:[#allocation7_spill] sm:$0xff]  ;;  %v4363_v34 = vld [vmem:[#allocation6_spill] sm:$0xff] }
 0x1a1   :  { %v752_v46 = vpop.xlane.xlu1 %751  ;;  %v750_v10 = vpop.xlane.xlu0 %749  ;;  %v1025_v44 = vmul.f32 %v3281_v51, %v954_v22 }
 0x1a2   :  { %4359 = vst [vmem:[#allocation5_spill] sm:$0xff] %v3418_v24  ;;  %4361 = vst [vmem:[#allocation4_spill] sm:$0xff] %v3421_v20  ;;  %v832_v63 = vmul.f32 0.125, %v752_v46  ;;  %v831_v45 = vmul.f32 0.125, %v750_v10  ;;  %1066 = vadd.xlane.f32.xlu1 %v993_v41  ;;  %1128 = vadd.xlane.f32.xlu0 %v1024_v28  ;;  %v927_v47 = vmul.f32 %v3421_v20, %v3421_v20 }
 0x1a3   :  { %v928_v62 = vmul.f32 %v3418_v24, %v3418_v24 }
 0x1a4   :  { %v3431_v32 = vsub.f32 %v4362_v12, %v832_v63  ;;  %v3434_v40 = vsub.f32 %v4363_v34, %v831_v45  ;;  %v998_v50 = vmul.f32 %v3281_v51, %v927_v47  ;;  %v4365_v45 = vld [vmem:[#allocation8_spill] sm:$0xff] }
 0x1a5   :  { %v684_v46 = vpop.xlane.xlu1 %683  ;;  %v682_v10 = vpop.xlane.xlu0 %681  ;;  %v999_v24 = vmul.f32 %v3281_v51, %v928_v62 }
 0x1a6   :  { %v798_v41 = vmul.f32 0.125, %v684_v46  ;;  %v797_v28 = vmul.f32 0.125, %v682_v10  ;;  %1130 = vadd.xlane.f32.xlu1 %v1025_v44  ;;  %1076 = vadd.xlane.f32.xlu0 %v998_v50  ;;  %v959_v20 = vmul.f32 %v3434_v40, %v3434_v40  ;;  %v960_v47 = vmul.f32 %v3431_v32, %v3431_v32 }
 0x1a8   :  { %v3442_v63 = vsub.f32 %v3202_v55, %v798_v41  ;;  %v3445_v12 = vsub.f32 %v4365_v45, %v797_v28  ;;  %v1030_v22 = vmul.f32 %v3281_v51, %v959_v20  ;;  %v1031_v41 = vmul.f32 %v3281_v51, %v960_v47 }
 0x1a9   :  { %v748_v34 = vpop.xlane.xlu1 %747  ;;  %v746_v46 = vpop.xlane.xlu0 %745 }
 0x1aa   :  { %4364 = vst [vmem:[#allocation7_spill] sm:$0xff] %v3442_v63  ;;  %v830_v44 = vmul.f32 0.125, %v748_v34  ;;  %v829_v50 = vmul.f32 0.125, %v746_v46  ;;  %1078 = vadd.xlane.f32.xlu1 %v999_v24  ;;  %1140 = vadd.xlane.f32.xlu0 %v1030_v22  ;;  %v925_v62 = vmul.f32 %v3445_v12, %v3445_v12  ;;  %v926_v55 = vmul.f32 %v3442_v63, %v3442_v63 }
 0x1ac   :  { %v3455_v10 = vsub.f32 %v3236_v7, %v830_v44  ;;  %v3458_v20 = vsub.f32 %v3232_v35, %v829_v50  ;;  %v996_v28 = vmul.f32 %v3281_v51, %v925_v62  ;;  %v997_v63 = vmul.f32 %v3281_v51, %v926_v55 }
 0x1ad   :  { %v696_v45 = vpop.xlane.xlu1 %695  ;;  %v694_v34 = vpop.xlane.xlu0 %693 }
 0x1ae   :  { %v804_v24 = vmul.f32 0.125, %v696_v45  ;;  %v803_v22 = vmul.f32 0.125, %v694_v34  ;;  %1142 = vadd.xlane.f32.xlu1 %v1031_v41  ;;  %1072 = vadd.xlane.f32.xlu0 %v996_v28  ;;  %v957_v46 = vmul.f32 %v3458_v20, %v3458_v20  ;;  %v958_v44 = vmul.f32 %v3455_v10, %v3455_v10 }
 0x1b0   :  { %v3466_v7 = vsub.f32 %v3092_v31, %v804_v24  ;;  %v3469_v35 = vsub.f32 %v3078_v23, %v803_v22  ;;  %v1028_v47 = vmul.f32 %v3281_v51, %v957_v46  ;;  %v1029_v34 = vmul.f32 %v3281_v51, %v958_v44 }
 0x1b1   :  { %v760_v50 = vpop.xlane.xlu1 %759  ;;  %v758_v62 = vpop.xlane.xlu0 %757 }
 0x1b2   :  { %v836_v41 = vmul.f32 0.125, %v760_v50  ;;  %v835_v28 = vmul.f32 0.125, %v758_v62  ;;  %1074 = vadd.xlane.f32.xlu1 %v997_v63  ;;  %1136 = vadd.xlane.f32.xlu0 %v1028_v47  ;;  %v931_v55 = vmul.f32 %v3469_v35, %v3469_v35  ;;  %v932_v31 = vmul.f32 %v3466_v7, %v3466_v7 }
 0x1b4   :  { %v3479_v23 = vsub.f32 %v3095_v33, %v836_v41  ;;  %v3482_v45 = vsub.f32 %v3081_v25, %v835_v28  ;;  %v1002_v24 = vmul.f32 %v3281_v51, %v931_v55  ;;  %v1003_v62 = vmul.f32 %v3281_v51, %v932_v31 }
 0x1b5   :  { %v692_v22 = vpop.xlane.xlu1 %691  ;;  %v690_v46 = vpop.xlane.xlu0 %689 }
 0x1b6   :  { %v963_v63 = vmul.f32 %v3482_v45, %v3482_v45  ;;  %v802_v47 = vmul.f32 0.125, %v692_v22  ;;  %v801_v50 = vmul.f32 0.125, %v690_v46  ;;  %1138 = vadd.xlane.f32.xlu1 %v1029_v34  ;;  %1084 = vadd.xlane.f32.xlu0 %v1002_v24  ;;  %v964_v33 = vmul.f32 %v3479_v23, %v3479_v23 }
 0x1b8   :  { %v3492_v25 = vsub.f32 %v3098_v36, %v802_v47  ;;  %v3495_v44 = vsub.f32 %v3084_v27, %v801_v50  ;;  %v1034_v41 = vmul.f32 %v3281_v51, %v963_v63  ;;  %v1035_v46 = vmul.f32 %v3281_v51, %v964_v33 }
 0x1b9   :  { %v756_v28 = vpop.xlane.xlu1 %755  ;;  %v754_v55 = vpop.xlane.xlu0 %753 }
 0x1ba   :  { %v929_v22 = vmul.f32 %v3495_v44, %v3495_v44  ;;  %v834_v34 = vmul.f32 0.125, %v756_v28  ;;  %v833_v24 = vmul.f32 0.125, %v754_v55  ;;  %1086 = vadd.xlane.f32.xlu1 %v1003_v62  ;;  %1148 = vadd.xlane.f32.xlu0 %v1034_v41  ;;  %v930_v31 = vmul.f32 %v3492_v25, %v3492_v25 }
 0x1bc   :  { %v3503_v36 = vsub.f32 %v3101_v39, %v834_v34  ;;  %v3506_v27 = vsub.f32 %v3087_v29, %v833_v24  ;;  %v1000_v63 = vmul.f32 %v3281_v51, %v929_v22  ;;  %v1001_v55 = vmul.f32 %v3281_v51, %v930_v31 }
 0x1bd   :  { %v704_v47 = vpop.xlane.xlu1 %703  ;;  %v702_v50 = vpop.xlane.xlu0 %701 }
 0x1be   :  { %v961_v28 = vmul.f32 %v3506_v27, %v3506_v27  ;;  %v808_v62 = vmul.f32 0.125, %v704_v47  ;;  %v807_v41 = vmul.f32 0.125, %v702_v50  ;;  %1150 = vadd.xlane.f32.xlu1 %v1035_v46  ;;  %1080 = vadd.xlane.f32.xlu0 %v1000_v63  ;;  %v962_v39 = vmul.f32 %v3503_v36, %v3503_v36 }
 0x1c0   :  { %v3516_v29 = vsub.f32 %v3132_v60, %v808_v62  ;;  %v3519_v33 = vsub.f32 %v3118_v48, %v807_v41  ;;  %v1032_v22 = vmul.f32 %v3281_v51, %v961_v28  ;;  %v1033_v50 = vmul.f32 %v3281_v51, %v962_v39 }
 0x1c1   :  { %v768_v34 = vpop.xlane.xlu1 %767  ;;  %v766_v24 = vpop.xlane.xlu0 %765 }
 0x1c2   :  { %v935_v47 = vmul.f32 %v3519_v33, %v3519_v33  ;;  %v840_v46 = vmul.f32 0.125, %v768_v34  ;;  %v839_v63 = vmul.f32 0.125, %v766_v24  ;;  %1082 = vadd.xlane.f32.xlu1 %v1001_v55  ;;  %1144 = vadd.xlane.f32.xlu0 %v1032_v22  ;;  %v936_v31 = vmul.f32 %v3516_v29, %v3516_v29 }
 0x1c4   :  { %v3527_v60 = vsub.f32 %v3135_v1, %v840_v46  ;;  %v3530_v48 = vsub.f32 %v3121_v52, %v839_v63  ;;  %v1006_v28 = vmul.f32 %v3281_v51, %v935_v47  ;;  %v1007_v24 = vmul.f32 %v3281_v51, %v936_v31 }
 0x1c5   :  { %v700_v62 = vpop.xlane.xlu1 %699  ;;  %v698_v41 = vpop.xlane.xlu0 %697 }
 0x1c6   :  { %v967_v34 = vmul.f32 %v3530_v48, %v3530_v48  ;;  %v806_v55 = vmul.f32 0.125, %v700_v62  ;;  %v805_v22 = vmul.f32 0.125, %v698_v41  ;;  %1146 = vadd.xlane.f32.xlu1 %v1033_v50  ;;  %1092 = vadd.xlane.f32.xlu0 %v1006_v28  ;;  %v968_v1 = vmul.f32 %v3527_v60, %v3527_v60 }
 0x1c8   :  { %v3540_v52 = vsub.f32 %v3138_v3, %v806_v55  ;;  %v3543_v39 = vsub.f32 %v3124_v54, %v805_v22  ;;  %v1038_v47 = vmul.f32 %v3281_v51, %v967_v34  ;;  %v1039_v41 = vmul.f32 %v3281_v51, %v968_v1 }
 0x1c9   :  { %v764_v46 = vpop.xlane.xlu1 %763  ;;  %v762_v63 = vpop.xlane.xlu0 %761 }
 0x1ca   :  { %v933_v62 = vmul.f32 %v3543_v39, %v3543_v39  ;;  %v838_v50 = vmul.f32 0.125, %v764_v46  ;;  %v837_v28 = vmul.f32 0.125, %v762_v63  ;;  %1094 = vadd.xlane.f32.xlu1 %v1007_v24  ;;  %1156 = vadd.xlane.f32.xlu0 %v1038_v47  ;;  %v934_v31 = vmul.f32 %v3540_v52, %v3540_v52 }
 0x1cc   :  { %v3551_v3 = vsub.f32 %v3141_v19, %v838_v50  ;;  %v3554_v54 = vsub.f32 %v3127_v56, %v837_v28  ;;  %v1004_v34 = vmul.f32 %v3281_v51, %v933_v62  ;;  %v1005_v63 = vmul.f32 %v3281_v51, %v934_v31 }
 0x1cd   :  { %v712_v55 = vpop.xlane.xlu1 %711  ;;  %v710_v22 = vpop.xlane.xlu0 %709 }
 0x1ce   :  { %4366 = vst [vmem:[#allocation6_spill] sm:$0xff] %v3551_v3  ;;  %v965_v46 = vmul.f32 %v3554_v54, %v3554_v54  ;;  %v812_v24 = vmul.f32 0.125, %v712_v55  ;;  %v811_v47 = vmul.f32 0.125, %v710_v22  ;;  %1158 = vadd.xlane.f32.xlu1 %v1039_v41  ;;  %1088 = vadd.xlane.f32.xlu0 %v1004_v34  ;;  %v966_v19 = vmul.f32 %v3551_v3, %v3551_v3 }
 0x1d0   :  { %v3564_v56 = vsub.f32 %v3175_v13, %v812_v24  ;;  %v3567_v1 = vsub.f32 %v3161_v0, %v811_v47  ;;  %v1036_v62 = vmul.f32 %v3281_v51, %v965_v46  ;;  %v1037_v22 = vmul.f32 %v3281_v51, %v966_v19 }
 0x1d1   :  { %v776_v50 = vpop.xlane.xlu1 %775  ;;  %v774_v28 = vpop.xlane.xlu0 %773 }
 0x1d2   :  { %4367 = vst [vmem:[#allocation8_spill] sm:$0xff] %v3564_v56  ;;  %4368 = vst [vmem:[#allocation20_spill] sm:$0xff] %v3567_v1  ;;  %v939_v55 = vmul.f32 %v3567_v1, %v3567_v1  ;;  %v844_v41 = vmul.f32 0.125, %v776_v50  ;;  %v843_v34 = vmul.f32 0.125, %v774_v28  ;;  %1090 = vadd.xlane.f32.xlu1 %v1005_v63  ;;  %1152 = vadd.xlane.f32.xlu0 %v1036_v62 }
 0x1d3   :  { %v940_v31 = vmul.f32 %v3564_v56, %v3564_v56 }
 0x1d4   :  { %v3575_v13 = vsub.f32 %v3178_v59, %v844_v41  ;;  %v3578_v0 = vsub.f32 %v3164_v4, %v843_v34  ;;  %v1010_v46 = vmul.f32 %v3281_v51, %v939_v55 }
 0x1d5   :  { %v708_v24 = vpop.xlane.xlu1 %707  ;;  %v706_v47 = vpop.xlane.xlu0 %705  ;;  %v1011_v28 = vmul.f32 %v3281_v51, %v940_v31 }
 0x1d6   :  { %4369 = vst [vmem:[#allocation21_spill] sm:$0xff] %v3575_v13  ;;  %4370 = vst [vmem:[#allocation22_spill] sm:$0xff] %v3578_v0  ;;  %v971_v50 = vmul.f32 %v3578_v0, %v3578_v0  ;;  %v810_v63 = vmul.f32 0.125, %v708_v24  ;;  %v809_v62 = vmul.f32 0.125, %v706_v47  ;;  %1154 = vadd.xlane.f32.xlu1 %v1037_v22  ;;  %1100 = vadd.xlane.f32.xlu0 %v1010_v46 }
 0x1d7   :  { %v972_v59 = vmul.f32 %v3575_v13, %v3575_v13 }
 0x1d8   :  { %v3588_v4 = vsub.f32 %v3181_v2, %v810_v63  ;;  %v3591_v19 = vsub.f32 %v3167_v43, %v809_v62  ;;  %v1042_v55 = vmul.f32 %v3281_v51, %v971_v50 }
 0x1d9   :  { %v772_v41 = vpop.xlane.xlu1 %771  ;;  %v770_v34 = vpop.xlane.xlu0 %769  ;;  %v1043_v47 = vmul.f32 %v3281_v51, %v972_v59  ;;  %v4376_v59 = vld [vmem:[#allocation9_spill] sm:$0xff] }
 0x1da   :  { %4371 = vst [vmem:[#allocation23_spill] sm:$0xff] %v3588_v4  ;;  %4372 = vst [vmem:[#allocation24_spill] sm:$0xff] %v3591_v19  ;;  %v937_v24 = vmul.f32 %v3591_v19, %v3591_v19  ;;  %v842_v22 = vmul.f32 0.125, %v772_v41  ;;  %v841_v46 = vmul.f32 0.125, %v770_v34  ;;  %1102 = vadd.xlane.f32.xlu1 %v1011_v28  ;;  %1164 = vadd.xlane.f32.xlu0 %v1042_v55 }
 0x1db   :  { %v938_v31 = vmul.f32 %v3588_v4, %v3588_v4 }
 0x1dc   :  { %v3599_v2 = vsub.f32 %v3184_v26, %v842_v22  ;;  %v3602_v43 = vsub.f32 %v3170_v53, %v841_v46  ;;  %v1008_v50 = vmul.f32 %v3281_v51, %v937_v24 }
 0x1dd   :  { %v720_v63 = vpop.xlane.xlu1 %719  ;;  %v718_v62 = vpop.xlane.xlu0 %717  ;;  %v1009_v34 = vmul.f32 %v3281_v51, %v938_v31 }
 0x1de   :  { %4373 = vst [vmem:[#allocation25_spill] sm:$0xff] %v3599_v2  ;;  %4374 = vst [vmem:[#allocation26_spill] sm:$0xff] %v3602_v43  ;;  %v969_v41 = vmul.f32 %v3602_v43, %v3602_v43  ;;  %v816_v28 = vmul.f32 0.125, %v720_v63  ;;  %v815_v55 = vmul.f32 0.125, %v718_v62  ;;  %1166 = vadd.xlane.f32.xlu1 %v1043_v47  ;;  %1096 = vadd.xlane.f32.xlu0 %v1008_v50 }
 0x1df   :  { %v970_v26 = vmul.f32 %v3599_v2, %v3599_v2  ;;  %v4378_v2 = vld [vmem:[#allocation14_spill] sm:$0xff] }
 0x1e0   :  { %v3612_v53 = vsub.f32 %v3219_v15, %v816_v28  ;;  %v3615_v22 = vsub.f32 %v4376_v59, %v815_v55  ;;  %v1040_v24 = vmul.f32 %v3281_v51, %v969_v41 }
 0x1e1   :  { %v784_v46 = vpop.xlane.xlu1 %783  ;;  %v782_v4 = vpop.xlane.xlu0 %781  ;;  %v1041_v47 = vmul.f32 %v3281_v51, %v970_v26 }
 0x1e2   :  { %4375 = vst [vmem:[#allocation27_spill] sm:$0xff] %v3612_v53  ;;  %4377 = vst [vmem:[#allocation9_spill] sm:$0xff] %v3615_v22  ;;  %v943_v63 = vmul.f32 %v3615_v22, %v3615_v22  ;;  %1098 = vadd.xlane.f32.xlu1 %v1009_v34  ;;  %1160 = vadd.xlane.f32.xlu0 %v1040_v24  ;;  %v944_v31 = vmul.f32 %v3612_v53, %v3612_v53  ;;  %v848_v41 = vmul.f32 0.125, %v784_v46  ;;  %v4380_v34 = vld [vmem:[#allocation11_spill] sm:$0xff] }
 0x1e3   :  { %v847_v59 = vmul.f32 0.125, %v782_v4  ;;  %v4382_v4 = vld [vmem:[#allocation13_spill] sm:$0xff] }
 0x1e4   :  { %v1014_v15 = vmul.f32 %v3281_v51, %v943_v63  ;;  %v1015_v53 = vmul.f32 %v3281_v51, %v944_v31  ;;  %v3636_v46 = vsub.f32 %v4382_v4, %v848_v41  ;;  %v4388_v31 = vld [vmem:[#allocation12_spill] sm:$0xff] }
 0x1e5   :  { %v716_v50 = vpop.xlane.xlu1 %715  ;;  %v714_v62 = vpop.xlane.xlu0 %713 }
 0x1e6   :  { %v814_v28 = vmul.f32 0.125, %v716_v50  ;;  %v813_v55 = vmul.f32 0.125, %v714_v62  ;;  %1162 = vadd.xlane.f32.xlu1 %v1041_v47  ;;  %1108 = vadd.xlane.f32.xlu0 %v1014_v15  ;;  %4383 = vst [vmem:[#allocation13_spill] sm:$0xff] %v3636_v46  ;;  %v976_v41 = vmul.f32 %v3636_v46, %v3636_v46 }
 0x1e8   :  { %v3625_v43 = vsub.f32 %v4378_v2, %v814_v28  ;;  %v3628_v24 = vsub.f32 %v4380_v34, %v813_v55  ;;  %v4384_v2 = vld [vmem:[#allocation10_spill] sm:$0xff]  ;;  %v4386_v28 = vld [vmem:[#allocation15_spill] sm:$0xff] }
 0x1e9   :  { %v780_v22 = vpop.xlane.xlu1 %779  ;;  %v778_v26 = vpop.xlane.xlu0 %777  ;;  %v3639_v62 = vsub.f32 %v4384_v2, %v847_v59 }
 0x1ea   :  { %4379 = vst [vmem:[#allocation14_spill] sm:$0xff] %v3625_v43  ;;  %4381 = vst [vmem:[#allocation11_spill] sm:$0xff] %v3628_v24  ;;  %v942_v63 = vmul.f32 %v3625_v43, %v3625_v43  ;;  %v941_v50 = vmul.f32 %v3628_v24, %v3628_v24  ;;  %v846_v47 = vmul.f32 0.125, %v780_v22  ;;  %v845_v15 = vmul.f32 0.125, %v778_v26  ;;  %1110 = vadd.xlane.f32.xlu1 %v1015_v53 }
 0x1eb   :  { %4385 = vst [vmem:[#allocation10_spill] sm:$0xff] %v3639_v62  ;;  %v975_v59 = vmul.f32 %v3639_v62, %v3639_v62 }
 0x1ec   :  { %v3642_v55 = vsub.f32 %v4386_v28, %v846_v47  ;;  %v3645_v34 = vsub.f32 %v4388_v31, %v845_v15  ;;  %v1013_v43 = vmul.f32 %v3281_v51, %v942_v63  ;;  %v1012_v19 = vmul.f32 %v3281_v51, %v941_v50 }
 0x1ed   :  { %v1047_v50 = vmul.f32 %v3281_v51, %v976_v41  ;;  %v1046_v47 = vmul.f32 %v3281_v51, %v975_v59 }
 0x1ee   :  { %4387 = vst [vmem:[#allocation15_spill] sm:$0xff] %v3642_v55  ;;  %4389 = vst [vmem:[#allocation12_spill] sm:$0xff] %v3645_v34  ;;  %v974_v22 = vmul.f32 %v3642_v55, %v3642_v55  ;;  %v973_v53 = vmul.f32 %v3645_v34, %v3645_v34  ;;  %1106 = vadd.xlane.f32.xlu1 %v1013_v43  ;;  %1104 = vadd.xlane.f32.xlu0 %v1012_v19 }
 0x1f0   :  { %v1045_v26 = vmul.f32 %v3281_v51, %v974_v22  ;;  %v1044_v63 = vmul.f32 %v3281_v51, %v973_v53 }
 0x1f2   :  { %1170 = vadd.xlane.f32.xlu1 %v1045_v26  ;;  %1168 = vadd.xlane.f32.xlu0 %v1044_v63 }
 0x1f6   :  { %1174 = vadd.xlane.f32.xlu1 %v1047_v50  ;;  %1172 = vadd.xlane.f32.xlu0 %v1046_v47 }
 0x203   :  { %v1053_v43 = vpop.xlane.xlu0 %1052 }
 0x204   :  { %v1178_v19 = vmul.f32 0.125, %v1053_v43 }
 0x206   :  { %v1242_v15 = vadd.f32 1e-06, %v1178_v19 }
 0x207   :  { %v1055_v4 = vpop.xlane.xlu1 %1054  ;;  %v1117_v2 = vpop.xlane.xlu0 %1116 }
 0x208   :  { %2557 = vrsqrt.f32 %v1242_v15  ;;  %v1179_v28 = vmul.f32 0.125, %v1055_v4  ;;  %v1210_v31 = vmul.f32 0.125, %v1117_v2  ;;  %v3664_v15 = vld [vmem:[%s4293_s3] ss:$0 sm:$0xff] }
 0x20a   :  { %v1243_v62 = vadd.f32 1e-06, %v1179_v28  ;;  %v1274_v22 = vadd.f32 1e-06, %v1210_v31  ;;  %v3670_v31 = vld [vmem:[%s4294_s4] ss:$0 sm:$0xff] }
 0x20b   :  { %v1119_v46 = vpop.xlane.xlu1 %1118  ;;  %v1049_v53 = vpop.xlane.xlu0 %1048 }
 0x20c   :  { %2559 = vrsqrt.f32 %v1243_v62  ;;  %v1211_v26 = vmul.f32 0.125, %v1119_v46  ;;  %v1176_v63 = vmul.f32 0.125, %v1049_v53 }
 0x20d   :  { %2561 = vrsqrt.f32 %v1274_v22 }
 0x20e   :  { %v1275_v41 = vadd.f32 1e-06, %v1211_v26  ;;  %v1240_v51 = vadd.f32 1e-06, %v1176_v63 }
 0x20f   :  { %v1051_v59 = vpop.xlane.xlu1 %1050  ;;  %v1113_v50 = vpop.xlane.xlu0 %1112 }
 0x210   :  { %2563 = vrsqrt.f32 %v1275_v41  ;;  %v1177_v47 = vmul.f32 0.125, %v1051_v59  ;;  %v1208_v43 = vmul.f32 0.125, %v1113_v50 }
 0x211   :  { %2565 = vrsqrt.f32 %v1240_v51 }
 0x212   :  { %v2558_v19 = vpop.eup %2557  ;;  %v1241_v4 = vadd.f32 1e-06, %v1177_v47  ;;  %v1272_v2 = vadd.f32 1e-06, %v1208_v43 }
 0x213   :  { %v1370_v46 = vmul.f32 %v2558_v19, %v3276_v11  ;;  %v1115_v62 = vpop.xlane.xlu1 %1114  ;;  %v1061_v28 = vpop.xlane.xlu0 %1060  ;;  %v4390_v19 = vld [vmem:[#allocation16_spill] sm:$0xff] }
 0x214   :  { %2567 = vrsqrt.f32 %v1241_v4  ;;  %v1209_v22 = vmul.f32 0.125, %v1115_v62  ;;  %v1182_v53 = vmul.f32 0.125, %v1061_v28 }
 0x215   :  { %v1441_v26 = vmul.f32 %v3664_v15, %v1370_v46  ;;  %2569 = vrsqrt.f32 %v1272_v2 }
 0x216   :  { %v2560_v63 = vpop.eup %2559  ;;  %v1273_v41 = vadd.f32 1e-06, %v1209_v22  ;;  %v1246_v51 = vadd.f32 1e-06, %v1182_v53 }
 0x217   :  { %v2562_v59 = vpop.eup %2561  ;;  %v1512_v50 = vadd.f32 %v3670_v31, %v1441_v26  ;;  %v1371_v11 = vmul.f32 %v2560_v63, %v3288_v38  ;;  %v1063_v47 = vpop.xlane.xlu1 %1062 }
 0x218   :  { %v1125_v43 = vpop.xlane.xlu0 %1124  ;;  %v1402_v34 = vmul.f32 %v2562_v59, %v4390_v19  ;;  %2571 = vrsqrt.f32 %v1273_v41  ;;  %v1183_v55 = vmul.f32 0.125, %v1063_v47 }
 0x219   :  { %v1214_v4 = vmul.f32 0.125, %v1125_v43  ;;  %v1640_v62 = vmul.f32 0.70710677, %v1512_v50  ;;  %v1442_v28 = vmul.f32 %v3664_v15, %v1371_v11  ;;  %2573 = vrsqrt.f32 %v1246_v51 }
 0x21a   :  { %v2564_v2 = vpop.eup %2563  ;;  %v1473_v46 = vmul.f32 %v3664_v15, %v1402_v34  ;;  %v1247_v22 = vadd.f32 1e-06, %v1183_v55  ;;  %v1576_v51 = vmul.f32 0.5, %v1512_v50 }
 0x21b   :  { %v1278_v53 = vadd.f32 1e-06, %v1214_v4  ;;  %v2566_v24 = vpop.eup %2565  ;;  %2575 = verf.f32 %v1640_v62  ;;  %v1513_v38 = vadd.f32 %v3670_v31, %v1442_v28  ;;  %v1403_v26 = vmul.f32 %v2564_v2, %v3298_v30  ;;  %v1127_v63 = vpop.xlane.xlu1 %1126 }
 0x21c   :  { %v1057_v59 = vpop.xlane.xlu0 %1056  ;;  %v1544_v41 = vadd.f32 %v3670_v31, %v1473_v46  ;;  %v1368_v47 = vmul.f32 %v2566_v24, %v3291_v37  ;;  %2577 = vrsqrt.f32 %v1247_v22  ;;  %v1215_v11 = vmul.f32 0.125, %v1127_v63 }
 0x21d   :  { %v1641_v43 = vmul.f32 0.70710677, %v1513_v38  ;;  %v1474_v34 = vmul.f32 %v3664_v15, %v1403_v26  ;;  %2579 = vrsqrt.f32 %v1278_v53  ;;  %v3683_v19 = vmul.f32 0.5, %v1513_v38  ;;  %v4391_v53 = vld [vmem:[#allocation17_spill] sm:$0xff] }
 0x21e   :  { %v2568_v55 = vpop.eup %2567  ;;  %v1672_v4 = vmul.f32 0.70710677, %v1544_v41  ;;  %v1439_v62 = vmul.f32 %v3664_v15, %v1368_v47  ;;  %v1279_v30 = vadd.f32 1e-06, %v1215_v11  ;;  %v1180_v24 = vmul.f32 0.125, %v1057_v59 }
 0x21f   :  { %v2570_v28 = vpop.eup %2569  ;;  %2581 = verf.f32 %v1641_v43  ;;  %v1545_v2 = vadd.f32 %v3670_v31, %v1474_v34  ;;  %v1369_v37 = vmul.f32 %v2568_v55, %v3314_v8  ;;  %v1059_v46 = vpop.xlane.xlu1 %1058  ;;  %v3690_v63 = vmul.f32 0.5, %v1544_v41 }
 0x220   :  { %v1121_v50 = vpop.xlane.xlu0 %1120  ;;  %2583 = verf.f32 %v1672_v4  ;;  %v1510_v22 = vadd.f32 %v3670_v31, %v1439_v62  ;;  %v1400_v26 = vmul.f32 %v2570_v28, %v4391_v53  ;;  %v1181_v38 = vmul.f32 0.125, %v1059_v46 }
 0x221   :  { %v1673_v47 = vmul.f32 0.70710677, %v1545_v2  ;;  %v1440_v11 = vmul.f32 %v3664_v15, %v1369_v37  ;;  %2585 = vrsqrt.f32 %v1279_v30  ;;  %v3693_v34 = vmul.f32 0.5, %v1545_v2 }
 0x222   :  { %v2572_v43 = vpop.eup %2571  ;;  %v1638_v8 = vmul.f32 0.70710677, %v1510_v22  ;;  %v1471_v59 = vmul.f32 %v3664_v15, %v1400_v26  ;;  %v1244_v55 = vadd.f32 1e-06, %v1180_v24  ;;  %v3696_v62 = vmul.f32 0.5, %v1510_v22 }
 0x223   :  { %v2574_v4 = vpop.eup %2573  ;;  %2587 = verf.f32 %v1673_v47  ;;  %v1511_v28 = vadd.f32 %v3670_v31, %v1440_v11  ;;  %v1401_v41 = vmul.f32 %v2572_v43, %v3311_v49  ;;  %v1123_v46 = vpop.xlane.xlu1 %1122  ;;  %v1245_v37 = vadd.f32 1e-06, %v1181_v38 }
 0x224   :  { %v3700_v53 = vpop.xlane.xlu0 %1068  ;;  %2589 = verf.f32 %v1638_v8  ;;  %v1542_v30 = vadd.f32 %v3670_v31, %v1471_v59  ;;  %v1374_v2 = vmul.f32 %v2574_v4, %v3325_v58  ;;  %v1212_v22 = vmul.f32 0.125, %v1121_v50 }
 0x225   :  { %v2576_v13 = vpop.eup %2575  ;;  %v1639_v26 = vmul.f32 0.70710677, %v1511_v28  ;;  %v1472_v24 = vmul.f32 %v3664_v15, %v1401_v41  ;;  %2591 = vrsqrt.f32 %v1244_v55  ;;  %v3705_v11 = vmul.f32 0.5, %v1511_v28 }
 0x226   :  { %v2578_v47 = vpop.eup %2577  ;;  %v1768_v0 = vadd.f32 1.0, %v2576_v13  ;;  %v1670_v49 = vmul.f32 0.70710677, %v1542_v30  ;;  %v1445_v43 = vmul.f32 %v3664_v15, %v1374_v2  ;;  %v3708_v8 = vmul.f32 0.5, %v1542_v30 }
 0x227   :  { %v2580_v56 = vpop.eup %2579  ;;  %2593 = verf.f32 %v1639_v26  ;;  %v1543_v58 = vadd.f32 %v3670_v31, %v1472_v24  ;;  %v1375_v38 = vmul.f32 %v2578_v47, %v3322_v57  ;;  %v1071_v13 = vpop.xlane.xlu1 %1070  ;;  %v1276_v30 = vadd.f32 1e-06, %v1212_v22 }
 0x228   :  { %v1832_v59 = vmul.f32 %v1768_v0, %v1576_v51  ;;  %2595 = verf.f32 %v1670_v49  ;;  %v1516_v55 = vadd.f32 %v3670_v31, %v1445_v43  ;;  %v1406_v50 = vmul.f32 %v2580_v56, %v3338_v14  ;;  %v3714_v4 = vpop.xlane.xlu0 %1132 }
 0x229   :  { %v2582_v28 = vpop.eup %2581  ;;  %v1671_v41 = vmul.f32 0.70710677, %v1543_v58  ;;  %v1446_v2 = vmul.f32 %v3664_v15, %v1375_v38  ;;  %2597 = vrsqrt.f32 %v1245_v37  ;;  %v3717_v3 = vmul.f32 0.5, %v1543_v58 }
 0x22a   :  { %v2584_v26 = vpop.eup %2583  ;;  %v2355_v1 = vpack.c.bf16 %v1832_v59, %v1832_v59  ;;  %v1769_v24 = vadd.f32 1.0, %v2582_v28  ;;  %v1644_v57 = vmul.f32 0.70710677, %v1516_v55  ;;  %v1477_v56 = vmul.f32 %v3664_v15, %v1406_v50 }
 0x22b   :  { %v2586_v0 = vpop.eup %2585  ;;  %v1800_v51 = vadd.f32 1.0, %v2584_v26  ;;  %2599 = verf.f32 %v1671_v41  ;;  %v1517_v14 = vadd.f32 %v3670_v31, %v1446_v2  ;;  %v3726_v22 = vmul.f32 0.5, %v1516_v55 }
 0x22c   :  { %2153 = vst.msk [vmem:[%s4295_s6 + $0x8] sm:$0xf] %vm2150_vm1, %v2355_v1  ;;  %v1833_v37 = vmul.f32 %v1769_v24, %v3683_v19  ;;  %2601 = verf.f32 %v1644_v57  ;;  %v1407_v47 = vmul.f32 %v2586_v0, %v3335_v61  ;;  %v1548_v38 = vadd.f32 %v3670_v31, %v1477_v56  ;;  %v1135_v1 = vpop.xlane.xlu1 %1134  ;;  %v3732_v19 = vpop.xlane.xlu0 %1064 }
 0x22d   :  { %v2588_v49 = vpop.eup %2587  ;;  %v1864_v43 = vmul.f32 %v1800_v51, %v3690_v63  ;;  %v1645_v58 = vmul.f32 0.70710677, %v1517_v14  ;;  %v1213_v59 = vmul.f32 0.125, %v1123_v46  ;;  %2603 = vrsqrt.f32 %v1276_v30 }
 0x22e   :  { %v2590_v50 = vpop.eup %2589  ;;  %v2356_v28 = vpack.c.bf16 %v1833_v37, %v1833_v37  ;;  %v1801_v41 = vadd.f32 1.0, %v2588_v49  ;;  %v1478_v2 = vmul.f32 %v3664_v15, %v1407_v47  ;;  %v3734_v61 = vmul.f32 0.5, %v1517_v14 }
 0x22f   :  { %v2592_v55 = vpop.eup %2591  ;;  %v2387_v26 = vpack.c.bf16 %v1864_v43, %v1864_v43  ;;  %v1766_v24 = vadd.f32 1.0, %v2590_v50  ;;  %2605 = verf.f32 %v1645_v58  ;;  %v1676_v46 = vmul.f32 0.70710677, %v1548_v38 }
 0x230   :  { %2154 = vst.msk [vmem:[%s4295_s6 + $0xc] sm:$0xf] %vm2150_vm1, %v2356_v28  ;;  %v1865_v63 = vmul.f32 %v1801_v41, %v3693_v34  ;;  %v1549_v57 = vadd.f32 %v3670_v31, %v1478_v2  ;;  %v1372_v30 = vmul.f32 %v2592_v55, %v3349_v5  ;;  %v1277_v14 = vadd.f32 1e-06, %v1213_v59  ;;  %v1129_v59 = vpop.xlane.xlu0 %1128 }
 0x231   :  { %v2594_v0 = vpop.eup %2593  ;;  %2185 = vst.msk [vmem:[%s4295_s6 + $0x88] sm:$0xf] %vm2150_vm1, %v2387_v26  ;;  %v1830_v51 = vmul.f32 %v1766_v24, %v3696_v62  ;;  %v1186_v56 = vmul.f32 0.125, %v3700_v53  ;;  %v1187_v37 = vmul.f32 0.125, %v1071_v13  ;;  %v3749_v43 = vmul.f32 0.5, %v1548_v38  ;;  %v1067_v38 = vpop.xlane.xlu1 %1066 }
 0x232   :  { %v2596_v47 = vpop.eup %2595  ;;  %v2388_v49 = vpack.c.bf16 %v1865_v63, %v1865_v63  ;;  %v1767_v34 = vadd.f32 1.0, %v2594_v0  ;;  %2607 = verf.f32 %v1676_v46  ;;  %v1677_v28 = vmul.f32 0.70710677, %v1549_v57 }
 0x233   :  { %v2598_v58 = vpop.eup %2597  ;;  %v2353_v5 = vpack.c.bf16 %v1830_v51, %v1830_v51  ;;  %v1798_v50 = vadd.f32 1.0, %v2596_v47  ;;  %v1443_v41 = vmul.f32 %v3664_v15, %v1372_v30  ;;  %2609 = vrsqrt.f32 %v1277_v14 }
 0x234   :  { %2186 = vst.msk [vmem:[%s4295_s6 + $0x8c] sm:$0xf] %vm2150_vm1, %v2388_v49  ;;  %v1831_v62 = vmul.f32 %v1767_v34, %v3705_v11  ;;  %v1373_v53 = vmul.f32 %v2598_v58, %v3346_v6  ;;  %v1250_v13 = vadd.f32 1e-06, %v1186_v56  ;;  %2611 = verf.f32 %v1677_v28 }
 0x235   :  { %v2600_v2 = vpop.eup %2599  ;;  %2151 = vst.msk [vmem:[%s4295_s6] sm:$0xf] %vm2150_vm1, %v2353_v5  ;;  %v1862_v55 = vmul.f32 %v1798_v50, %v3708_v8  ;;  %v1514_v26 = vadd.f32 %v3670_v31, %v1443_v41  ;;  %v1251_v24 = vadd.f32 1e-06, %v1187_v37  ;;  %v1613_v51 = vmul.f32 0.5, %v1549_v57  ;;  %v1131_v41 = vpop.xlane.xlu1 %1130 }
 0x236   :  { %v2602_v63 = vpop.eup %2601  ;;  %v2354_v11 = vpack.c.bf16 %v1831_v62, %v1831_v62  ;;  %v1799_v46 = vadd.f32 1.0, %v2600_v2  ;;  %v1444_v6 = vmul.f32 %v3664_v15, %v1373_v53  ;;  %2613 = vrsqrt.f32 %v1250_v13  ;;  %v1077_v62 = vpop.xlane.xlu0 %1076 }
 0x237   :  { %v2385_v30 = vpack.c.bf16 %v1862_v55, %v1862_v55  ;;  %v1772_v0 = vadd.f32 1.0, %v2602_v63  ;;  %v1642_v14 = vmul.f32 0.70710677, %v1514_v26  ;;  %v2604_v56 = vpop.eup %2603  ;;  %2615 = vrsqrt.f32 %v1251_v24 }
 0x238   :  { %2152 = vst.msk [vmem:[%s4295_s6 + $0x4] sm:$0xf] %vm2150_vm1, %v2354_v11  ;;  %v1863_v8 = vmul.f32 %v1799_v46, %v3717_v3  ;;  %v1515_v37 = vadd.f32 %v3670_v31, %v1444_v6  ;;  %v1218_v47 = vmul.f32 0.125, %v3714_v4  ;;  %v1404_v34 = vmul.f32 %v2604_v56, %v3362_v42 }
 0x239   :  { %v2606_v49 = vpop.eup %2605  ;;  %2183 = vst.msk [vmem:[%s4295_s6 + $0x80] sm:$0xf] %vm2150_vm1, %v2385_v30  ;;  %v1836_v57 = vmul.f32 %v1772_v0, %v3726_v22  ;;  %2617 = verf.f32 %v1642_v14  ;;  %v1219_v58 = vmul.f32 0.125, %v1135_v1  ;;  %v1578_v3 = vmul.f32 0.5, %v1514_v26 }
 0x23a   :  { %v2386_v5 = vpack.c.bf16 %v1863_v8, %v1863_v8  ;;  %v1773_v50 = vadd.f32 1.0, %v2606_v49  ;;  %v1643_v28 = vmul.f32 0.70710677, %v1515_v37  ;;  %v1475_v4 = vmul.f32 %v3664_v15, %v1404_v34  ;;  %v1079_v49 = vpop.xlane.xlu1 %1078 }
 0x23b   :  { %v2359_v53 = vpack.c.bf16 %v1836_v57, %v1836_v57  ;;  %v1282_v13 = vadd.f32 1e-06, %v1218_v47  ;;  %v1283_v2 = vadd.f32 1e-06, %v1219_v58  ;;  %v1184_v22 = vmul.f32 0.125, %v3732_v19  ;;  %v1141_v57 = vpop.xlane.xlu0 %1140 }
 0x23c   :  { %v2608_v55 = vpop.eup %2607  ;;  %2184 = vst.msk [vmem:[%s4295_s6 + $0x84] sm:$0xf] %vm2150_vm1, %v2386_v5  ;;  %v1837_v42 = vmul.f32 %v1773_v50, %v3734_v61  ;;  %2619 = verf.f32 %v1643_v28  ;;  %v1185_v1 = vmul.f32 0.125, %v1067_v38  ;;  %v1546_v24 = vadd.f32 %v3670_v31, %v1475_v4 }
 0x23d   :  { %2157 = vst.msk [vmem:[%s4295_s6 + $0x18] sm:$0xf] %vm2150_vm1, %v2359_v53  ;;  %v1804_v26 = vadd.f32 1.0, %v2608_v55  ;;  %2621 = vrsqrt.f32 %v1282_v13  ;;  %v1216_v63 = vmul.f32 0.125, %v1129_v59  ;;  %v2610_v11 = vpop.eup %2609  ;;  %v1248_v6 = vadd.f32 1e-06, %v1184_v22 }
 0x23e   :  { %v2360_v46 = vpack.c.bf16 %v1837_v42, %v1837_v42  ;;  %2623 = vrsqrt.f32 %v1283_v2  ;;  %v1249_v30 = vadd.f32 1e-06, %v1185_v1  ;;  %v2612_v61 = vpop.eup %2611  ;;  %v1579_v19 = vmul.f32 0.5, %v1515_v37 }
 0x23f   :  { %v1868_v0 = vmul.f32 %v1804_v26, %v3749_v43  ;;  %v1674_v38 = vmul.f32 0.70710677, %v1546_v24  ;;  %v1405_v14 = vmul.f32 %v2610_v11, %v3359_v9  ;;  %v1805_v8 = vadd.f32 1.0, %v2612_v61  ;;  %v1073_v11 = vpop.xlane.xlu0 %1072 }
 0x240   :  { %v2614_v56 = vpop.eup %2613  ;;  %2158 = vst.msk [vmem:[%s4295_s6 + $0x1c] sm:$0xf] %vm2150_vm1, %v2360_v46  ;;  %2625 = vrsqrt.f32 %v1248_v6  ;;  %v1280_v59 = vadd.f32 1e-06, %v1216_v63  ;;  %v1217_v47 = vmul.f32 0.125, %v1131_v41  ;;  %v1190_v50 = vmul.f32 0.125, %v1077_v62  ;;  %v1143_v63 = vpop.xlane.xlu1 %1142 }
 0x241   :  { %v2391_v34 = vpack.c.bf16 %v1868_v0, %v1868_v0  ;;  %2627 = verf.f32 %v1674_v38  ;;  %v1476_v43 = vmul.f32 %v3664_v15, %v1405_v14  ;;  %v1378_v37 = vmul.f32 %v2614_v56, %v3373_v17  ;;  %v2616_v58 = vpop.eup %2615 }
 0x242   :  { %v1869_v9 = vmul.f32 %v1805_v8, %v1613_v51  ;;  %2629 = vrsqrt.f32 %v1249_v30  ;;  %v1281_v5 = vadd.f32 1e-06, %v1217_v47  ;;  %v1379_v4 = vmul.f32 %v2616_v58, %v3370_v18 }
 0x243   :  { %v2618_v28 = vpop.eup %2617  ;;  %2189 = vst.msk [vmem:[%s4295_s6 + $0x98] sm:$0xf] %vm2150_vm1, %v2391_v34  ;;  %v1547_v41 = vadd.f32 %v3670_v31, %v1476_v43  ;;  %v1449_v53 = vmul.f32 %v3664_v15, %v1378_v37  ;;  %2631 = vrsqrt.f32 %v1280_v59  ;;  %v1254_v51 = vadd.f32 1e-06, %v1190_v50  ;;  %v4392_v37 = vld [vmem:[#allocation19_spill] sm:$0xff] }
 0x244   :  { %v2392_v13 = vpack.c.bf16 %v1869_v9, %v1869_v9  ;;  %v1770_v17 = vadd.f32 1.0, %v2618_v28  ;;  %2633 = vrsqrt.f32 %v1281_v5  ;;  %v1610_v2 = vmul.f32 0.5, %v1546_v24  ;;  %v3828_v28 = vpop.xlane.xlu1 %1074 }
 0x245   :  { %v1675_v55 = vmul.f32 0.70710677, %v1547_v41  ;;  %v1520_v62 = vadd.f32 %v3670_v31, %v1449_v53  ;;  %v1450_v42 = vmul.f32 %v3664_v15, %v1379_v4  ;;  %2635 = vrsqrt.f32 %v1254_v51 }
 0x246   :  { %v2620_v22 = vpop.eup %2619  ;;  %2190 = vst.msk [vmem:[%s4295_s6 + $0x9c] sm:$0xf] %vm2150_vm1, %v2392_v13  ;;  %v1834_v1 = vmul.f32 %v1770_v17, %v1578_v3  ;;  %v1191_v18 = vmul.f32 0.125, %v1079_v49  ;;  %v1222_v26 = vmul.f32 0.125, %v1141_v57  ;;  %v3811_v24 = vmul.f32 0.5, %v1547_v41  ;;  %v3830_v41 = vpop.xlane.xlu0 %1136  ;;  %v4393_v17 = vld [vmem:[#allocation18_spill] sm:$0xff] }
 0x247   :  { %v2622_v46 = vpop.eup %2621  ;;  %v1771_v6 = vadd.f32 1.0, %v2620_v22  ;;  %2637 = verf.f32 %v1675_v55  ;;  %v1648_v30 = vmul.f32 0.70710677, %v1520_v62  ;;  %v1521_v38 = vadd.f32 %v3670_v31, %v1450_v42 }
 0x248   :  { %v2624_v61 = vpop.eup %2623  ;;  %v2357_v0 = vpack.c.bf16 %v1834_v1, %v1834_v1  ;;  %v1410_v14 = vmul.f32 %v2622_v46, %v3386_v16  ;;  %v1255_v56 = vadd.f32 1e-06, %v1191_v18  ;;  %v1286_v59 = vadd.f32 1e-06, %v1222_v26  ;;  %v4394_v1 = vld [vmem:[#allocation2_spill] sm:$0xff] }
 0x249   :  { %v1835_v8 = vmul.f32 %v1771_v6, %v1579_v19  ;;  %2639 = verf.f32 %v1648_v30  ;;  %v1411_v3 = vmul.f32 %v2624_v61, %v3383_v21  ;;  %v3820_v49 = vmul.f32 0.5, %v1520_v62 }
 0x24a   :  { %v2626_v47 = vpop.eup %2625  ;;  %2155 = vst.msk [vmem:[%s4295_s6 + $0x10] sm:$0xf] %vm2150_vm1, %v2357_v0  ;;  %v1649_v57 = vmul.f32 0.70710677, %v1521_v38  ;;  %v1481_v34 = vmul.f32 %v3664_v15, %v1410_v14  ;;  %2641 = vrsqrt.f32 %v1255_v56  ;;  %v3825_v5 = vmul.f32 0.5, %v1521_v38  ;;  %v4395_v56 = vld [vmem:[#allocation3_spill] sm:$0xff] }
 0x24b   :  { %v2628_v43 = vpop.eup %2627  ;;  %v2358_v16 = vpack.c.bf16 %v1835_v8, %v1835_v8  ;;  %v1482_v19 = vmul.f32 %v3664_v15, %v1411_v3  ;;  %v1376_v58 = vmul.f32 %v2626_v47, %v4392_v37  ;;  %2643 = vrsqrt.f32 %v1286_v59 }
 0x24c   :  { %v2630_v21 = vpop.eup %2629  ;;  %v1802_v9 = vadd.f32 1.0, %v2628_v43  ;;  %2645 = verf.f32 %v1649_v57  ;;  %v1552_v50 = vadd.f32 %v3670_v31, %v1481_v34  ;;  %v1223_v55 = vmul.f32 0.125, %v1143_v63  ;;  %v4396_v34 = vld [vmem:[#allocation4_spill] sm:$0xff] }
 0x24d   :  { %v2632_v53 = vpop.eup %2631  ;;  %2156 = vst.msk [vmem:[%s4295_s6 + $0x14] sm:$0xf] %vm2150_vm1, %v2358_v16  ;;  %v1553_v4 = vadd.f32 %v3670_v31, %v1482_v19  ;;  %v1447_v13 = vmul.f32 %v3664_v15, %v1376_v58  ;;  %v1377_v51 = vmul.f32 %v2630_v21, %v4393_v17  ;;  %v1188_v26 = vmul.f32 0.125, %v1073_v11  ;;  %v3856_v16 = vpop.xlane.xlu1 %1138 }
 0x24e   :  { %v2634_v62 = vpop.eup %2633  ;;  %v1866_v42 = vmul.f32 %v1802_v9, %v1610_v2  ;;  %v1680_v22 = vmul.f32 0.70710677, %v1552_v50  ;;  %v1408_v18 = vmul.f32 %v2632_v53, %v4394_v1  ;;  %v3840_v46 = vmul.f32 0.5, %v1552_v50  ;;  %v3858_v19 = vpop.xlane.xlu0 %1084 }
 0x24f   :  { %v1681_v6 = vmul.f32 0.70710677, %v1553_v4  ;;  %v1518_v30 = vadd.f32 %v3670_v31, %v1447_v13  ;;  %v1448_v61 = vmul.f32 %v3664_v15, %v1377_v51  ;;  %v2636_v0 = vpop.eup %2635  ;;  %v1409_v63 = vmul.f32 %v2634_v62, %v4395_v56 }
 0x250   :  { %v2389_v38 = vpack.c.bf16 %v1866_v42, %v1866_v42  ;;  %2647 = verf.f32 %v1680_v22  ;;  %v1479_v14 = vmul.f32 %v3664_v15, %v1408_v18  ;;  %v3846_v2 = vmul.f32 0.5, %v1553_v4  ;;  %v4397_v22 = vld [vmem:[#allocation5_spill] sm:$0xff] }
 0x251   :  { %v2638_v8 = vpop.eup %2637  ;;  %2649 = verf.f32 %v1681_v6  ;;  %v1646_v3 = vmul.f32 0.70710677, %v1518_v30  ;;  %v1519_v11 = vadd.f32 %v3670_v31, %v1448_v61  ;;  %v1480_v57 = vmul.f32 %v3664_v15, %v1409_v63 }
 0x252   :  { %2187 = vst.msk [vmem:[%s4295_s6 + $0x90] sm:$0xf] %vm2150_vm1, %v2389_v38  ;;  %v1803_v59 = vadd.f32 1.0, %v2638_v8  ;;  %v1550_v47 = vadd.f32 %v3670_v31, %v1479_v14  ;;  %v1382_v43 = vmul.f32 %v2636_v0, %v4396_v34  ;;  %v3860_v58 = vmul.f32 0.5, %v1518_v30  ;;  %v1149_v8 = vpop.xlane.xlu0 %1148 }
 0x253   :  { %v2640_v37 = vpop.eup %2639  ;;  %2651 = verf.f32 %v1646_v3  ;;  %v3862_v21 = vmul.f32 0.5, %v1519_v11  ;;  %v1647_v9 = vmul.f32 0.70710677, %v1519_v11  ;;  %v1287_v17 = vadd.f32 1e-06, %v1223_v55 }
 0x254   :  { %v2642_v50 = vpop.eup %2641  ;;  %v1867_v53 = vmul.f32 %v1803_v59, %v3811_v24  ;;  %v1776_v4 = vadd.f32 1.0, %v2640_v37  ;;  %v1678_v13 = vmul.f32 0.70710677, %v1550_v47  ;;  %v1551_v62 = vadd.f32 %v3670_v31, %v1480_v57 }
 0x255   :  { %v2644_v51 = vpop.eup %2643  ;;  %2653 = verf.f32 %v1647_v9  ;;  %v1453_v42 = vmul.f32 %v3664_v15, %v1382_v43  ;;  %v1383_v1 = vmul.f32 %v2642_v50, %v4397_v22  ;;  %v3870_v24 = vmul.f32 0.5, %v1550_v47 }
 0x256   :  { %v2646_v18 = vpop.eup %2645  ;;  %v2390_v6 = vpack.c.bf16 %v1867_v53, %v1867_v53  ;;  %v1840_v30 = vmul.f32 %v1776_v4, %v3820_v49  ;;  %2655 = verf.f32 %v1678_v13  ;;  %v1414_v61 = vmul.f32 %v2644_v51, %v3434_v40  ;;  %v1087_v49 = vpop.xlane.xlu1 %1086 }
 0x257   :  { %v1777_v0 = vadd.f32 1.0, %v2646_v18  ;;  %v1679_v38 = vmul.f32 0.70710677, %v1551_v62  ;;  %v1524_v55 = vadd.f32 %v3670_v31, %v1453_v42  ;;  %v1454_v56 = vmul.f32 %v3664_v15, %v1383_v1  ;;  %v1081_v18 = vpop.xlane.xlu0 %1080 }
 0x258   :  { %2188 = vst.msk [vmem:[%s4295_s6 + $0x94] sm:$0xf] %vm2150_vm1, %v2390_v6  ;;  %v2363_v14 = vpack.c.bf16 %v1840_v30, %v1840_v30  ;;  %v1485_v63 = vmul.f32 %v3664_v15, %v1414_v61  ;;  %2657 = vrsqrt.f32 %v1287_v17  ;;  %v3880_v3 = vmul.f32 0.5, %v1551_v62 }
 0x259   :  { %v1841_v40 = vmul.f32 %v1777_v0, %v3825_v5  ;;  %2659 = verf.f32 %v1679_v38  ;;  %v1652_v11 = vmul.f32 0.70710677, %v1524_v55  ;;  %v1525_v47 = vadd.f32 %v3670_v31, %v1454_v56 }
 0x25a   :  { %v2648_v59 = vpop.eup %2647  ;;  %2161 = vst.msk [vmem:[%s4295_s6 + $0x28] sm:$0xf] %vm2150_vm1, %v2363_v14  ;;  %v3888_v57 = vadd.f32 %v3670_v31, %v1485_v63  ;;  %v1252_v34 = vadd.f32 1e-06, %v1188_v26  ;;  %v1189_v43 = vmul.f32 0.125, %v3828_v28  ;;  %v1220_v50 = vmul.f32 0.125, %v3830_v41  ;;  %v1151_v1 = vpop.xlane.xlu1 %1150 }
 0x25b   :  { %v2650_v37 = vpop.eup %2649  ;;  %v2364_v5 = vpack.c.bf16 %v1841_v40, %v1841_v40  ;;  %v1808_v9 = vadd.f32 1.0, %v2648_v59  ;;  %2661 = verf.f32 %v1652_v11  ;;  %v3892_v4 = vmul.f32 0.5, %v1524_v55 }
 0x25c   :  { %v1809_v53 = vadd.f32 1.0, %v2650_v37  ;;  %v3894_v13 = vmul.f32 0.5, %v1525_v47  ;;  %v1653_v17 = vmul.f32 0.70710677, %v1525_v47  ;;  %v1684_v26 = vmul.f32 0.70710677, %v3888_v57 }
 0x25d   :  { %v2652_v51 = vpop.eup %2651  ;;  %2162 = vst.msk [vmem:[%s4295_s6 + $0x2c] sm:$0xf] %vm2150_vm1, %v2364_v5  ;;  %v1872_v28 = vmul.f32 %v1808_v9, %v3840_v46  ;;  %2663 = vrsqrt.f32 %v1252_v34  ;;  %v1253_v62 = vadd.f32 1e-06, %v1189_v43  ;;  %v1284_v22 = vadd.f32 1e-06, %v1220_v50 }
 0x25e   :  { %v1873_v41 = vmul.f32 %v1809_v53, %v3846_v2  ;;  %v1774_v42 = vadd.f32 1.0, %v2652_v51  ;;  %2665 = verf.f32 %v1653_v17  ;;  %v1221_v61 = vmul.f32 0.125, %v3856_v16  ;;  %v1083_v50 = vpop.xlane.xlu1 %1082 }
 0x25f   :  { %v2654_v6 = vpop.eup %2653  ;;  %v2395_v30 = vpack.c.bf16 %v1872_v28, %v1872_v28  ;;  %2667 = verf.f32 %v1684_v26  ;;  %v1194_v0 = vmul.f32 0.125, %v3858_v19  ;;  %v1226_v11 = vmul.f32 0.125, %v1149_v8 }
 0x260   :  { %v2656_v38 = vpop.eup %2655  ;;  %v2396_v46 = vpack.c.bf16 %v1873_v41, %v1873_v41  ;;  %v1838_v55 = vmul.f32 %v1774_v42, %v3860_v58  ;;  %v1775_v14 = vadd.f32 1.0, %v2654_v6  ;;  %2669 = vrsqrt.f32 %v1253_v62 }
 0x261   :  { %2193 = vst.msk [vmem:[%s4295_s6 + $0xa8] sm:$0xf] %vm2150_vm1, %v2395_v30  ;;  %v1806_v2 = vadd.f32 1.0, %v2656_v38  ;;  %2671 = vrsqrt.f32 %v1284_v22  ;;  %v1285_v56 = vadd.f32 1e-06, %v1221_v61  ;;  %v1195_v58 = vmul.f32 0.125, %v1087_v49 }
 0x262   :  { %v1258_v63 = vadd.f32 1e-06, %v1194_v0  ;;  %v2658_v40 = vpop.eup %2657  ;;  %2194 = vst.msk [vmem:[%s4295_s6 + $0xac] sm:$0xf] %vm2150_vm1, %v2396_v46  ;;  %v2361_v16 = vpack.c.bf16 %v1838_v55, %v1838_v55  ;;  %v1839_v19 = vmul.f32 %v1775_v14, %v3862_v21  ;;  %v1227_v43 = vmul.f32 0.125, %v1151_v1  ;;  %v1145_v21 = vpop.xlane.xlu0 %1144 }
 0x263   :  { %v2660_v59 = vpop.eup %2659  ;;  %v1870_v47 = vmul.f32 %v1806_v2, %v3870_v24  ;;  %v1415_v34 = vmul.f32 %v2658_v40, %v3431_v32  ;;  %2673 = vrsqrt.f32 %v1285_v56  ;;  %v1259_v9 = vadd.f32 1e-06, %v1195_v58  ;;  %v1147_v56 = vpop.xlane.xlu1 %1146  ;;  %v4398_v40 = vld [vmem:[#allocation7_spill] sm:$0xff] }
 0x264   :  { %2159 = vst.msk [vmem:[%s4295_s6 + $0x20] sm:$0xf] %vm2150_vm1, %v2361_v16  ;;  %v2362_v37 = vpack.c.bf16 %v1839_v19, %v1839_v19  ;;  %v1807_v5 = vadd.f32 1.0, %v2660_v59  ;;  %2675 = vrsqrt.f32 %v1258_v63  ;;  %v1290_v24 = vadd.f32 1e-06, %v1226_v11 }
 0x265   :  { %v2662_v49 = vpop.eup %2661  ;;  %v2393_v8 = vpack.c.bf16 %v1870_v47, %v1870_v47  ;;  %v1486_v53 = vmul.f32 %v3664_v15, %v1415_v34  ;;  %v1291_v17 = vadd.f32 1e-06, %v1227_v43  ;;  %2677 = vrsqrt.f32 %v1259_v9 }
 0x266   :  { %2160 = vst.msk [vmem:[%s4295_s6 + $0x24] sm:$0xf] %vm2150_vm1, %v2362_v37  ;;  %v1871_v32 = vmul.f32 %v1807_v5, %v3880_v3  ;;  %v1780_v51 = vadd.f32 1.0, %v2662_v49  ;;  %v1192_v28 = vmul.f32 0.125, %v1081_v18  ;;  %2679 = vrsqrt.f32 %v1290_v24 }
 0x267   :  { %v2664_v26 = vpop.eup %2663  ;;  %2191 = vst.msk [vmem:[%s4295_s6 + $0xa0] sm:$0xf] %vm2150_vm1, %v2393_v8  ;;  %v1557_v62 = vadd.f32 %v3670_v31, %v1486_v53  ;;  %v1193_v41 = vmul.f32 0.125, %v1083_v50  ;;  %v1224_v42 = vmul.f32 0.125, %v1145_v21  ;;  %2681 = vrsqrt.f32 %v1291_v17  ;;  %v1093_v21 = vpop.xlane.xlu0 %1092 }
 0x268   :  { %v2666_v22 = vpop.eup %2665  ;;  %v2394_v1 = vpack.c.bf16 %v1871_v32, %v1871_v32  ;;  %v1844_v6 = vmul.f32 %v1780_v51, %v3892_v4  ;;  %v1380_v3 = vmul.f32 %v2664_v26, %v3445_v12  ;;  %v1620_v61 = vmul.f32 0.5, %v3888_v57  ;;  %v1095_v51 = vpop.xlane.xlu1 %1094 }
 0x269   :  { %v2668_v30 = vpop.eup %2667  ;;  %v1781_v18 = vadd.f32 1.0, %v2666_v22  ;;  %v1685_v0 = vmul.f32 0.70710677, %v1557_v62  ;;  %v1256_v38 = vadd.f32 1e-06, %v1192_v28  ;;  %v1621_v5 = vmul.f32 0.5, %v1557_v62 }
 0x26a   :  { %v2670_v46 = vpop.eup %2669  ;;  %2192 = vst.msk [vmem:[%s4295_s6 + $0xa4] sm:$0xf] %vm2150_vm1, %v2394_v1  ;;  %v2367_v55 = vpack.c.bf16 %v1844_v6, %v1844_v6  ;;  %v1812_v14 = vadd.f32 1.0, %v2668_v30  ;;  %v1451_v2 = vmul.f32 %v3664_v15, %v1380_v3  ;;  %v1257_v4 = vadd.f32 1e-06, %v1193_v41 }
 0x26b   :  { %v2672_v12 = vpop.eup %2671  ;;  %v1845_v63 = vmul.f32 %v1781_v18, %v3894_v13  ;;  %2683 = verf.f32 %v1685_v0  ;;  %v1381_v57 = vmul.f32 %v2670_v46, %v4398_v40  ;;  %v1288_v16 = vadd.f32 1e-06, %v1224_v42  ;;  %v1157_v46 = vpop.xlane.xlu0 %1156 }
 0x26c   :  { %2165 = vst.msk [vmem:[%s4295_s6 + $0x38] sm:$0xf] %vm2150_vm1, %v2367_v55  ;;  %v1876_v19 = vmul.f32 %v1812_v14, %v1620_v61  ;;  %v1522_v58 = vadd.f32 %v3670_v31, %v1451_v2  ;;  %v1412_v11 = vmul.f32 %v2672_v12, %v3458_v20  ;;  %2685 = vrsqrt.f32 %v1256_v38  ;;  %v1159_v40 = vpop.xlane.xlu1 %1158 }
 0x26d   :  { %v2674_v59 = vpop.eup %2673  ;;  %v2368_v47 = vpack.c.bf16 %v1845_v63, %v1845_v63  ;;  %v1452_v34 = vmul.f32 %v3664_v15, %v1381_v57  ;;  %2687 = vrsqrt.f32 %v1257_v4  ;;  %v1225_v13 = vmul.f32 0.125, %v1147_v56 }
 0x26e   :  { %v2676_v43 = vpop.eup %2675  ;;  %v2399_v37 = vpack.c.bf16 %v1876_v19, %v1876_v19  ;;  %v1650_v9 = vmul.f32 0.70710677, %v1522_v58  ;;  %v1483_v50 = vmul.f32 %v3664_v15, %v1412_v11  ;;  %v1413_v49 = vmul.f32 %v2674_v59, %v3455_v10 }
 0x26f   :  { %2166 = vst.msk [vmem:[%s4295_s6 + $0x3c] sm:$0xf] %vm2150_vm1, %v2368_v47  ;;  %v1523_v20 = vadd.f32 %v3670_v31, %v1452_v34  ;;  %v1386_v8 = vmul.f32 %v2676_v43, %v3469_v35  ;;  %2689 = vrsqrt.f32 %v1288_v16  ;;  %v2678_v53 = vpop.eup %2677  ;;  %v3961_v24 = vmul.f32 0.5, %v1522_v58  ;;  %v3993_v34 = vld [vmem:[%s4294_s4] ss:$0 sm:$0xff] }
 0x270   :  { %2197 = vst.msk [vmem:[%s4295_s6 + $0xb8] sm:$0xf] %vm2150_vm1, %v2399_v37  ;;  %2691 = verf.f32 %v1650_v9  ;;  %v1554_v17 = vadd.f32 %v3670_v31, %v1483_v50  ;;  %v1289_v32 = vadd.f32 1e-06, %v1225_v13  ;;  %v2680_v28 = vpop.eup %2679  ;;  %v1484_v10 = vmul.f32 %v3664_v15, %v1413_v49 }
 0x271   :  { %v1651_v26 = vmul.f32 0.70710677, %v1523_v20  ;;  %v1457_v35 = vmul.f32 %v3664_v15, %v1386_v8  ;;  %v1198_v62 = vmul.f32 0.125, %v1093_v21  ;;  %v2682_v41 = vpop.eup %2681  ;;  %v3966_v42 = vmul.f32 0.5, %v1523_v20  ;;  %v1089_v21 = vpop.xlane.xlu0 %1088 }
 0x272   :  { %v1682_v22 = vmul.f32 0.70710677, %v1554_v17  ;;  %v1387_v1 = vmul.f32 %v2678_v53, %v3466_v7  ;;  %v1418_v6 = vmul.f32 %v2680_v28, %v3482_v45  ;;  %v1555_v3 = vadd.f32 %v3670_v31, %v1484_v10 }
 0x273   :  { %2693 = verf.f32 %v1651_v26  ;;  %v1528_v30 = vadd.f32 %v3670_v31, %v1457_v35  ;;  %v1419_v18 = vmul.f32 %v2682_v41, %v3479_v23  ;;  %v3973_v61 = vmul.f32 0.5, %v1554_v17  ;;  %v3982_v23 = vld [vmem:[%s4293_s3] ss:$0 sm:$0xff] }
 0x274   :  { %2695 = verf.f32 %v1682_v22  ;;  %v1458_v0 = vmul.f32 %v3664_v15, %v1387_v1  ;;  %v1489_v38 = vmul.f32 %v3664_v15, %v1418_v6  ;;  %v1683_v14 = vmul.f32 0.70710677, %v1555_v3 }
 0x275   :  { %v2684_v55 = vpop.eup %2683  ;;  %v1656_v7 = vmul.f32 0.70710677, %v1528_v30  ;;  %v1262_v2 = vadd.f32 1e-06, %v1198_v62  ;;  %v1490_v63 = vmul.f32 %v3982_v23, %v1419_v18  ;;  %v3985_v57 = vmul.f32 0.5, %v1555_v3 }
 0x276   :  { %v2686_v45 = vpop.eup %2685  ;;  %v1813_v4 = vadd.f32 1.0, %v2684_v55  ;;  %v1529_v56 = vadd.f32 %v3670_v31, %v1458_v0  ;;  %v1560_v12 = vadd.f32 %v3670_v31, %v1489_v38  ;;  %2697 = verf.f32 %v1683_v14  ;;  %v1153_v0 = vpop.xlane.xlu0 %1152 }
 0x277   :  { %v2688_v15 = vpop.eup %2687  ;;  %v3987_v16 = vmul.f32 0.5, %v1528_v30  ;;  %v1384_v19 = vmul.f32 %v2686_v45, %v3495_v44  ;;  %2699 = verf.f32 %v1656_v7  ;;  %v1199_v31 = vmul.f32 0.125, %v1095_v51 }
 0x278   :  { %v1877_v58 = vmul.f32 %v1813_v4, %v1621_v5  ;;  %v1657_v11 = vmul.f32 0.70710677, %v1529_v56  ;;  %v1688_v47 = vmul.f32 0.70710677, %v1560_v12  ;;  %v1561_v13 = vadd.f32 %v3993_v34, %v1490_v63 }
 0x279   :  { %v2690_v59 = vpop.eup %2689  ;;  %v1455_v43 = vmul.f32 %v3982_v23, %v1384_v19  ;;  %v1230_v37 = vmul.f32 0.125, %v1157_v46  ;;  %v1385_v44 = vmul.f32 %v2688_v15, %v3492_v25  ;;  %v3999_v49 = vmul.f32 0.5, %v1529_v56  ;;  %v1091_v25 = vpop.xlane.xlu1 %1090 }
 0x27a   :  { %v2692_v9 = vpop.eup %2691  ;;  %v2400_v50 = vpack.c.bf16 %v1877_v58, %v1877_v58  ;;  %2701 = verf.f32 %v1657_v11  ;;  %v1416_v5 = vmul.f32 %v2690_v59, %v3506_v27  ;;  %v1689_v8 = vmul.f32 0.70710677, %v1561_v13 }
 0x27b   :  { %v1778_v20 = vadd.f32 1.0, %v2692_v9  ;;  %2703 = verf.f32 %v1688_v47  ;;  %v1526_v53 = vadd.f32 %v3993_v34, %v1455_v43  ;;  %v1456_v17 = vmul.f32 %v3982_v23, %v1385_v44 }
 0x27c   :  { %2198 = vst.msk [vmem:[%s4295_s6 + $0xbc] sm:$0xf] %vm2150_vm1, %v2400_v50  ;;  %v1487_v51 = vmul.f32 %v3982_v23, %v1416_v5  ;;  %2705 = vrsqrt.f32 %v1289_v32  ;;  %v1624_v26 = vmul.f32 0.5, %v1560_v12  ;;  %v1263_v10 = vadd.f32 1e-06, %v1199_v31 }
 0x27d   :  { %v2694_v27 = vpop.eup %2693  ;;  %v1842_v28 = vmul.f32 %v1778_v20, %v3961_v24  ;;  %2707 = verf.f32 %v1689_v8  ;;  %v4009_v41 = vmul.f32 0.5, %v1561_v13  ;;  %v1654_v22 = vmul.f32 0.70710677, %v1526_v53  ;;  %v1155_v4 = vpop.xlane.xlu1 %1154 }
 0x27e   :  { %v2696_v35 = vpop.eup %2695  ;;  %v1779_v62 = vadd.f32 1.0, %v2694_v27  ;;  %v4012_v1 = vadd.f32 %v3993_v34, %v1456_v17  ;;  %v4015_v30 = vadd.f32 %v3993_v34, %v1487_v51  ;;  %2709 = vrsqrt.f32 %v1262_v2 }
 0x27f   :  { %v2365_v6 = vpack.c.bf16 %v1842_v28, %v1842_v28  ;;  %v1810_v3 = vadd.f32 1.0, %v2696_v35  ;;  %2711 = verf.f32 %v1654_v22  ;;  %v1294_v18 = vadd.f32 1e-06, %v1230_v37 }
 0x280   :  { %v1843_v32 = vmul.f32 %v1779_v62, %v3966_v42  ;;  %v1655_v24 = vmul.f32 0.70710677, %v4012_v1  ;;  %v2698_v38 = vpop.eup %2697  ;;  %v4024_v55 = vmul.f32 0.5, %v1526_v53  ;;  %v1686_v14 = vmul.f32 0.70710677, %v4015_v30 }
 0x281   :  { %2163 = vst.msk [vmem:[%s4295_s6 + $0x30] sm:$0xf] %vm2150_vm1, %v2365_v6  ;;  %v1874_v46 = vmul.f32 %v1810_v3, %v3973_v61  ;;  %2713 = vrsqrt.f32 %v1263_v10  ;;  %v2700_v7 = vpop.eup %2699  ;;  %v1811_v2 = vadd.f32 1.0, %v2698_v38  ;;  %v1231_v45 = vmul.f32 0.125, %v1159_v40  ;;  %v1103_v53 = vpop.xlane.xlu1 %1102 }
 0x282   :  { %v2366_v42 = vpack.c.bf16 %v1843_v32, %v1843_v32  ;;  %2715 = verf.f32 %v1655_v24  ;;  %v1784_v12 = vadd.f32 1.0, %v2700_v7  ;;  %v1196_v63 = vmul.f32 0.125, %v1089_v21 }
 0x283   :  { %v2397_v56 = vpack.c.bf16 %v1874_v46, %v1874_v46  ;;  %2717 = verf.f32 %v1686_v14  ;;  %v1875_v61 = vmul.f32 %v1811_v2, %v3985_v57  ;;  %v1295_v19 = vadd.f32 1e-06, %v1231_v45  ;;  %v1101_v57 = vpop.xlane.xlu0 %1100 }
 0x284   :  { %v2702_v15 = vpop.eup %2701  ;;  %2164 = vst.msk [vmem:[%s4295_s6 + $0x34] sm:$0xf] %vm2150_vm1, %v2366_v42  ;;  %2719 = vrsqrt.f32 %v1294_v18  ;;  %v1197_v58 = vmul.f32 0.125, %v1091_v25  ;;  %v1848_v40 = vmul.f32 %v1784_v12, %v3987_v16  ;;  %v1260_v59 = vadd.f32 1e-06, %v1196_v63 }
 0x285   :  { %v2704_v11 = vpop.eup %2703  ;;  %2195 = vst.msk [vmem:[%s4295_s6 + $0xb0] sm:$0xf] %vm2150_vm1, %v2397_v56  ;;  %v1785_v31 = vadd.f32 1.0, %v2702_v15  ;;  %v1228_v47 = vmul.f32 0.125, %v1153_v0  ;;  %v2398_v43 = vpack.c.bf16 %v1875_v61, %v1875_v61  ;;  %2721 = vrsqrt.f32 %v1295_v19  ;;  %v1167_v45 = vpop.xlane.xlu1 %1166 }
 0x286   :  { %v2706_v13 = vpop.eup %2705  ;;  %v1816_v37 = vadd.f32 1.0, %v2704_v11  ;;  %v1261_v9 = vadd.f32 1e-06, %v1197_v58  ;;  %v2371_v44 = vpack.c.bf16 %v1848_v40, %v1848_v40  ;;  %2723 = vrsqrt.f32 %v1260_v59 }
 0x287   :  { %v2708_v50 = vpop.eup %2707  ;;  %v1849_v5 = vmul.f32 %v1785_v31, %v3999_v49  ;;  %v1417_v21 = vmul.f32 %v2706_v13, %v3503_v36  ;;  %2196 = vst.msk [vmem:[%s4295_s6 + $0xb4] sm:$0xf] %vm2150_vm1, %v2398_v43  ;;  %v1292_v8 = vadd.f32 1e-06, %v1228_v47  ;;  %v1229_v51 = vmul.f32 0.125, %v1155_v4  ;;  %v1165_v19 = vpop.xlane.xlu0 %1164 }
 0x288   :  { %v1880_v16 = vmul.f32 %v1816_v37, %v1624_v26  ;;  %v1817_v20 = vadd.f32 1.0, %v2708_v50  ;;  %2725 = vrsqrt.f32 %v1261_v9  ;;  %v2710_v17 = vpop.eup %2709  ;;  %2169 = vst.msk [vmem:[%s4295_s6 + $0x48] sm:$0xf] %vm2150_vm1, %v2371_v44  ;;  %v1202_v25 = vmul.f32 0.125, %v1101_v57 }
 0x289   :  { %v2372_v49 = vpack.c.bf16 %v1849_v5, %v1849_v5  ;;  %v1488_v36 = vmul.f32 %v3982_v23, %v1417_v21  ;;  %v2712_v27 = vpop.eup %2711  ;;  %v1390_v26 = vmul.f32 %v2710_v17, %v3519_v33  ;;  %2727 = vrsqrt.f32 %v1292_v8  ;;  %v1099_v5 = vpop.xlane.xlu1 %1098 }
 0x28a   :  { %v2403_v28 = vpack.c.bf16 %v1880_v16, %v1880_v16  ;;  %v1881_v10 = vmul.f32 %v1817_v20, %v4009_v41  ;;  %v1782_v62 = vadd.f32 1.0, %v2712_v27  ;;  %v1591_v22 = vmul.f32 0.5, %v4012_v1 }
 0x28b   :  { %v2714_v35 = vpop.eup %2713  ;;  %2170 = vst.msk [vmem:[%s4295_s6 + $0x4c] sm:$0xf] %vm2150_vm1, %v2372_v49  ;;  %v1559_v6 = vadd.f32 %v3993_v34, %v1488_v36  ;;  %v1293_v3 = vadd.f32 1e-06, %v1229_v51  ;;  %v1622_v41 = vmul.f32 0.5, %v4015_v30  ;;  %v1461_v24 = vmul.f32 %v3982_v23, %v1390_v26  ;;  %v1097_v17 = vpop.xlane.xlu0 %1096 }
 0x28c   :  { %v2716_v32 = vpop.eup %2715  ;;  %2201 = vst.msk [vmem:[%s4295_s6 + $0xc8] sm:$0xf] %vm2150_vm1, %v2403_v28  ;;  %v2404_v33 = vpack.c.bf16 %v1881_v10, %v1881_v10  ;;  %v1391_v18 = vmul.f32 %v2714_v35, %v3516_v29  ;;  %v1846_v38 = vmul.f32 %v1782_v62, %v4024_v55  ;;  %v1266_v14 = vadd.f32 1e-06, %v1202_v25  ;;  %v4399_v62 = vld [vmem:[#allocation6_spill] sm:$0xff] }
 0x28d   :  { %v2718_v0 = vpop.eup %2717  ;;  %v1783_v1 = vadd.f32 1.0, %v2716_v32  ;;  %v1687_v46 = vmul.f32 0.70710677, %v1559_v6  ;;  %v1532_v2 = vadd.f32 %v3993_v34, %v1461_v24  ;;  %2729 = vrsqrt.f32 %v1293_v3 }
 0x28e   :  { %v2720_v7 = vpop.eup %2719  ;;  %2202 = vst.msk [vmem:[%s4295_s6 + $0xcc] sm:$0xf] %vm2150_vm1, %v2404_v33  ;;  %v1814_v42 = vadd.f32 1.0, %v2718_v0  ;;  %v1462_v30 = vmul.f32 %v3982_v23, %v1391_v18  ;;  %v2369_v29 = vpack.c.bf16 %v1846_v38, %v1846_v38  ;;  %v1203_v61 = vmul.f32 0.125, %v1103_v53 }
 0x28f   :  { %v1847_v4 = vmul.f32 %v1783_v1, %v1591_v22  ;;  %2731 = verf.f32 %v1687_v46  ;;  %v1422_v55 = vmul.f32 %v2720_v7, %v3530_v48  ;;  %v2722_v56 = vpop.eup %2721  ;;  %v1660_v63 = vmul.f32 0.70710677, %v1532_v2 }
 0x290   :  { %v1878_v12 = vmul.f32 %v1814_v42, %v1622_v41  ;;  %v1533_v15 = vadd.f32 %v3993_v34, %v1462_v30  ;;  %v2724_v58 = vpop.eup %2723  ;;  %2167 = vst.msk [vmem:[%s4295_s6 + $0x40] sm:$0xf] %vm2150_vm1, %v2369_v29  ;;  %v1423_v31 = vmul.f32 %v2722_v56, %v3527_v60  ;;  %2733 = vrsqrt.f32 %v1266_v14  ;;  %v1163_v41 = vpop.xlane.xlu1 %1162 }
 0x291   :  { %v2370_v11 = vpack.c.bf16 %v1847_v4, %v1847_v4  ;;  %v1493_v40 = vmul.f32 %v3982_v23, %v1422_v55  ;;  %2735 = verf.f32 %v1660_v63  ;;  %v1388_v37 = vmul.f32 %v2724_v58, %v3543_v39  ;;  %v1161_v42 = vpop.xlane.xlu0 %1160 }
 0x292   :  { %v2726_v48 = vpop.eup %2725  ;;  %v2401_v59 = vpack.c.bf16 %v1878_v12, %v1878_v12  ;;  %v1661_v47 = vmul.f32 0.70710677, %v1533_v15  ;;  %v1494_v43 = vmul.f32 %v3982_v23, %v1423_v31  ;;  %v1623_v60 = vmul.f32 0.5, %v1559_v6 }
 0x293   :  { %2168 = vst.msk [vmem:[%s4295_s6 + $0x44] sm:$0xf] %vm2150_vm1, %v2370_v11  ;;  %v1564_v13 = vadd.f32 %v3993_v34, %v1493_v40  ;;  %v1389_v9 = vmul.f32 %v2726_v48, %v3540_v52  ;;  %v2728_v57 = vpop.eup %2727  ;;  %v1267_v50 = vadd.f32 1e-06, %v1203_v61  ;;  %v1234_v44 = vmul.f32 0.125, %v1165_v19 }
 0x294   :  { %2199 = vst.msk [vmem:[%s4295_s6 + $0xc0] sm:$0xf] %vm2150_vm1, %v2401_v59  ;;  %2737 = verf.f32 %v1661_v47  ;;  %v1565_v16 = vadd.f32 %v3993_v34, %v1494_v43  ;;  %v1459_v20 = vmul.f32 %v3982_v23, %v1388_v37  ;;  %v1235_v8 = vmul.f32 0.125, %v1167_v45  ;;  %v4400_v45 = vld [vmem:[#allocation20_spill] sm:$0xff]  ;;  %v1111_v48 = vpop.xlane.xlu1 %1110 }
 0x295   :  { %v1692_v21 = vmul.f32 0.70710677, %v1564_v13  ;;  %v1460_v39 = vmul.f32 %v3982_v23, %v1389_v9  ;;  %v1420_v52 = vmul.f32 %v2728_v57, %v3554_v54  ;;  %2739 = vrsqrt.f32 %v1267_v50  ;;  %v4401_v43 = vld [vmem:[#allocation8_spill] sm:$0xff] }
 0x296   :  { %v1298_v53 = vadd.f32 1e-06, %v1234_v44  ;;  %v1596_v49 = vmul.f32 0.5, %v1532_v2  ;;  %v1693_v36 = vmul.f32 0.70710677, %v1565_v16  ;;  %v1530_v51 = vadd.f32 %v3993_v34, %v1459_v20  ;;  %v1109_v44 = vpop.xlane.xlu0 %1108 }
 0x297   :  { %2741 = verf.f32 %v1692_v21  ;;  %v2730_v25 = vpop.eup %2729  ;;  %v1597_v27 = vmul.f32 0.5, %v1533_v15  ;;  %v1531_v28 = vadd.f32 %v3993_v34, %v1460_v39  ;;  %v1491_v10 = vmul.f32 %v3982_v23, %v1420_v52 }
 0x298   :  { %2743 = vrsqrt.f32 %v1298_v53  ;;  %v1658_v35 = vmul.f32 0.70710677, %v1530_v51  ;;  %v1421_v54 = vmul.f32 %v2730_v25, %v4399_v62  ;;  %v1299_v22 = vadd.f32 1e-06, %v1235_v8  ;;  %v4402_v8 = vld [vmem:[#allocation22_spill] sm:$0xff]  ;;  %v1107_v62 = vpop.xlane.xlu1 %1106 }
 0x299   :  { %v2732_v26 = vpop.eup %2731  ;;  %2745 = verf.f32 %v1693_v36  ;;  %v1628_v3 = vmul.f32 0.5, %v1564_v13  ;;  %v1659_v32 = vmul.f32 0.70710677, %v1531_v28  ;;  %v4099_v33 = vadd.f32 %v3993_v34, %v1491_v10 }
 0x29a   :  { %v1815_v6 = vadd.f32 1.0, %v2732_v26  ;;  %v2734_v24 = vpop.eup %2733  ;;  %2747 = verf.f32 %v1658_v35  ;;  %v1492_v18 = vmul.f32 %v3982_v23, %v1421_v54  ;;  %v1200_v0 = vmul.f32 0.125, %v1097_v17 }
 0x29b   :  { %v1201_v38 = vmul.f32 0.125, %v1099_v5  ;;  %v2736_v1 = vpop.eup %2735  ;;  %v1629_v14 = vmul.f32 0.5, %v1565_v16  ;;  %2749 = verf.f32 %v1659_v32  ;;  %v1690_v7 = vmul.f32 0.70710677, %v4099_v33 }
 0x29c   :  { %v1879_v46 = vmul.f32 %v1815_v6, %v1623_v60  ;;  %v1788_v2 = vadd.f32 1.0, %v2736_v1  ;;  %v4104_v30 = vadd.f32 %v3993_v34, %v1492_v18  ;;  %v1394_v29 = vmul.f32 %v2734_v24, %v4400_v45 }
 0x29d   :  { %2751 = vrsqrt.f32 %v1299_v22  ;;  %v1264_v56 = vadd.f32 1e-06, %v1200_v0  ;;  %v1265_v12 = vadd.f32 1e-06, %v1201_v38  ;;  %v1594_v61 = vmul.f32 0.5, %v1530_v51  ;;  %v4403_v0 = vld [vmem:[#allocation21_spill] sm:$0xff] }
 0x29e   :  { %v2738_v4 = vpop.eup %2737  ;;  %v2402_v55 = vpack.c.bf16 %v1879_v46, %v1879_v46  ;;  %2753 = verf.f32 %v1690_v7  ;;  %v1852_v63 = vmul.f32 %v1788_v2, %v1596_v49  ;;  %v1691_v19 = vmul.f32 0.70710677, %v4104_v30 }
 0x29f   :  { %v1789_v15 = vadd.f32 1.0, %v2738_v4  ;;  %v2740_v58 = vpop.eup %2739  ;;  %v1465_v11 = vmul.f32 %v3982_v23, %v1394_v29  ;;  %2755 = vrsqrt.f32 %v1264_v56  ;;  %v1232_v40 = vmul.f32 0.125, %v1161_v42  ;;  %v1105_v29 = vpop.xlane.xlu0 %1104 }
 0x2a0   :  { %2200 = vst.msk [vmem:[%s4295_s6 + $0xc4] sm:$0xf] %vm2150_vm1, %v2402_v55  ;;  %v1233_v31 = vmul.f32 0.125, %v1163_v41  ;;  %v2375_v47 = vpack.c.bf16 %v1852_v63, %v1852_v63  ;;  %2757 = verf.f32 %v1691_v19  ;;  %v1395_v37 = vmul.f32 %v2740_v58, %v4401_v43 }
 0x2a1   :  { %v2742_v59 = vpop.eup %2741  ;;  %v1853_v13 = vmul.f32 %v1789_v15, %v1597_v27  ;;  %v4115_v60 = vadd.f32 %v3993_v34, %v1465_v11  ;;  %2759 = vrsqrt.f32 %v1265_v12  ;;  %v1296_v50 = vadd.f32 1e-06, %v1232_v40  ;;  %v4404_v12 = vld [vmem:[#allocation24_spill] sm:$0xff]  ;;  %v1171_v11 = vpop.xlane.xlu1 %1170 }
 0x2a2   :  { %v2744_v9 = vpop.eup %2743  ;;  %v1820_v57 = vadd.f32 1.0, %v2742_v59  ;;  %2173 = vst.msk [vmem:[%s4295_s6 + $0x58] sm:$0xf] %vm2150_vm1, %v2375_v47  ;;  %v1595_v16 = vmul.f32 0.5, %v1531_v28  ;;  %v1466_v20 = vmul.f32 %v3982_v23, %v1395_v37  ;;  %v1297_v49 = vadd.f32 1e-06, %v1233_v31 }
 0x2a3   :  { %v2746_v5 = vpop.eup %2745  ;;  %v2376_v21 = vpack.c.bf16 %v1853_v13, %v1853_v13  ;;  %v1426_v39 = vmul.f32 %v2744_v9, %v4402_v8  ;;  %v1664_v17 = vmul.f32 0.70710677, %v4115_v60  ;;  %2761 = vrsqrt.f32 %v1296_v50 }
 0x2a4   :  { %v1884_v52 = vmul.f32 %v1820_v57, %v1628_v3  ;;  %v1821_v53 = vadd.f32 1.0, %v2746_v5  ;;  %v2748_v36 = vpop.eup %2747  ;;  %v4129_v51 = vadd.f32 %v3993_v34, %v1466_v20  ;;  %v1206_v27 = vmul.f32 0.125, %v1109_v44 }
 0x2a5   :  { %2174 = vst.msk [vmem:[%s4295_s6 + $0x5c] sm:$0xf] %vm2150_vm1, %v2376_v21  ;;  %v1497_v25 = vmul.f32 %v3982_v23, %v1426_v39  ;;  %v2750_v28 = vpop.eup %2749  ;;  %v1786_v35 = vadd.f32 1.0, %v2748_v36  ;;  %2763 = verf.f32 %v1664_v17  ;;  %v1626_v6 = vmul.f32 0.5, %v4099_v33  ;;  %v1169_v39 = vpop.xlane.xlu0 %1168 }
 0x2a6   :  { %v2407_v10 = vpack.c.bf16 %v1884_v52, %v1884_v52  ;;  %v1885_v26 = vmul.f32 %v1821_v53, %v1629_v14  ;;  %v1787_v22 = vadd.f32 1.0, %v2750_v28  ;;  %v1665_v3 = vmul.f32 0.70710677, %v4129_v51 }
 0x2a7   :  { %v2752_v54 = vpop.eup %2751  ;;  %v4135_v32 = vadd.f32 %v3993_v34, %v1497_v25  ;;  %v1850_v18 = vmul.f32 %v1786_v35, %v1594_v61  ;;  %2765 = vrsqrt.f32 %v1297_v49  ;;  %v1627_v33 = vmul.f32 0.5, %v4104_v30 }
 0x2a8   :  { %v2754_v41 = vpop.eup %2753  ;;  %2205 = vst.msk [vmem:[%s4295_s6 + $0xd8] sm:$0xf] %vm2150_vm1, %v2407_v10  ;;  %v2408_v24 = vpack.c.bf16 %v1885_v26, %v1885_v26  ;;  %v1427_v38 = vmul.f32 %v2752_v54, %v4403_v0  ;;  %v1851_v1 = vmul.f32 %v1787_v22, %v1595_v16  ;;  %2767 = verf.f32 %v1665_v3  ;;  %v4406_v16 = vld [vmem:[#allocation26_spill] sm:$0xff]  ;;  %v1175_v10 = vpop.xlane.xlu1 %1174 }
 0x2a9   :  { %v1818_v46 = vadd.f32 1.0, %v2754_v41  ;;  %v2756_v14 = vpop.eup %2755  ;;  %v2373_v7 = vpack.c.bf16 %v1850_v18, %v1850_v18  ;;  %v1696_v42 = vmul.f32 0.70710677, %v4135_v32  ;;  %v1270_v45 = vadd.f32 1e-06, %v1206_v27 }
 0x2aa   :  { %2206 = vst.msk [vmem:[%s4295_s6 + $0xdc] sm:$0xf] %vm2150_vm1, %v2408_v24  ;;  %v1498_v2 = vmul.f32 %v3982_v23, %v1427_v38  ;;  %v2758_v4 = vpop.eup %2757  ;;  %v2374_v55 = vpack.c.bf16 %v1851_v1, %v1851_v1  ;;  %v1392_v63 = vmul.f32 %v2756_v14, %v4404_v12  ;;  %v1207_v30 = vmul.f32 0.125, %v1111_v48  ;;  %v4405_v48 = vld [vmem:[#allocation23_spill] sm:$0xff] }
 0x2ab   :  { %v1882_v56 = vmul.f32 %v1818_v46, %v1626_v6  ;;  %v2760_v15 = vpop.eup %2759  ;;  %2171 = vst.msk [vmem:[%s4295_s6 + $0x50] sm:$0xf] %vm2150_vm1, %v2373_v7  ;;  %v1819_v61 = vadd.f32 1.0, %v2758_v4  ;;  %2769 = verf.f32 %v1696_v42  ;;  %v1205_v58 = vmul.f32 0.125, %v1107_v62  ;;  %v4407_v6 = vld [vmem:[#allocation25_spill] sm:$0xff] }
 0x2ac   :  { %v4155_v19 = vadd.f32 %v3993_v34, %v1498_v2  ;;  %2172 = vst.msk [vmem:[%s4295_s6 + $0x54] sm:$0xf] %vm2150_vm1, %v2374_v55  ;;  %v1463_v31 = vmul.f32 %v3982_v23, %v1392_v63  ;;  %v1393_v59 = vmul.f32 %v2760_v15, %v4405_v48  ;;  %2771 = vrsqrt.f32 %v1270_v45 }
 0x2ad   :  { %v2405_v40 = vpack.c.bf16 %v1882_v56, %v1882_v56  ;;  %v1883_v47 = vmul.f32 %v1819_v61, %v1627_v33  ;;  %v1271_v43 = vadd.f32 1e-06, %v1207_v30  ;;  %v2762_v37 = vpop.eup %2761  ;;  %v1269_v50 = vadd.f32 1e-06, %v1205_v58  ;;  %v1173_v33 = vpop.xlane.xlu0 %1172 }
 0x2ae   :  { %v1697_v13 = vmul.f32 0.70710677, %v4155_v19  ;;  %v4169_v9 = vadd.f32 %v3993_v34, %v1463_v31  ;;  %v1464_v57 = vmul.f32 %v3982_v23, %v1393_v59  ;;  %v1204_v44 = vmul.f32 0.125, %v1105_v29  ;;  %v4409_v59 = vld [vmem:[#allocation27_spill] sm:$0xff] }
 0x2af   :  { %2203 = vst.msk [vmem:[%s4295_s6 + $0xd0] sm:$0xf] %vm2150_vm1, %v2405_v40  ;;  %v2764_v5 = vpop.eup %2763  ;;  %v2406_v21 = vpack.c.bf16 %v1883_v47, %v1883_v47  ;;  %v1424_v20 = vmul.f32 %v2762_v37, %v4406_v16  ;;  %v1237_v8 = vmul.f32 0.125, %v1171_v11  ;;  %v1600_v52 = vmul.f32 0.5, %v4115_v60 }
 0x2b0   :  { %2773 = verf.f32 %v1697_v13  ;;  %v1792_v53 = vadd.f32 1.0, %v2764_v5  ;;  %v1662_v17 = vmul.f32 0.70710677, %v4169_v9  ;;  %v4176_v49 = vadd.f32 %v3993_v34, %v1464_v57 }
 0x2b1   :  { %v2766_v36 = vpop.eup %2765  ;;  %2204 = vst.msk [vmem:[%s4295_s6 + $0xd4] sm:$0xf] %vm2150_vm1, %v2406_v21  ;;  %v1601_v25 = vmul.f32 0.5, %v4129_v51  ;;  %v1495_v27 = vmul.f32 %v3982_v23, %v1424_v20  ;;  %2775 = vrsqrt.f32 %v1271_v43  ;;  %v1268_v28 = vadd.f32 1e-06, %v1204_v44  ;;  %v4410_v21 = vld [vmem:[#allocation14_spill] sm:$0xff] }
 0x2b2   :  { %v2768_v60 = vpop.eup %2767  ;;  %v1856_v26 = vmul.f32 %v1792_v53, %v1600_v52  ;;  %2777 = verf.f32 %v1662_v17  ;;  %v1663_v35 = vmul.f32 0.70710677, %v4176_v49  ;;  %v1301_v62 = vadd.f32 1e-06, %v1237_v8 }
 0x2b3   :  { %v1793_v54 = vadd.f32 1.0, %v2768_v60  ;;  %v4186_v22 = vadd.f32 %v3993_v34, %v1495_v27  ;;  %v1425_v3 = vmul.f32 %v2766_v36, %v4407_v6  ;;  %2779 = vrsqrt.f32 %v1269_v50  ;;  %v4411_v27 = vld [vmem:[#allocation11_spill] sm:$0xff] }
 0x2b4   :  { %v2379_v41 = vpack.c.bf16 %v1856_v26, %v1856_v26  ;;  %2781 = verf.f32 %v1663_v35  ;;  %v1236_v51 = vmul.f32 0.125, %v1169_v39  ;;  %v1239_v24 = vmul.f32 0.125, %v1175_v10 }
 0x2b5   :  { %v2770_v18 = vpop.eup %2769  ;;  %v1857_v0 = vmul.f32 %v1793_v54, %v1601_v25  ;;  %v1632_v38 = vmul.f32 0.5, %v4135_v32  ;;  %v1694_v1 = vmul.f32 0.70710677, %v4186_v22  ;;  %v1496_v46 = vmul.f32 %v3982_v23, %v1425_v3  ;;  %v4408_v32 = vld [vmem:[#allocation9_spill] sm:$0xff]  ;;  %v4412_v3 = vld [vmem:[#allocation15_spill] sm:$0xff] }
 0x2b6   :  { %v2772_v14 = vpop.eup %2771  ;;  %2177 = vst.msk [vmem:[%s4295_s6 + $0x68] sm:$0xf] %vm2150_vm1, %v2379_v41  ;;  %v1824_v7 = vadd.f32 1.0, %v2770_v18  ;;  %2783 = vrsqrt.f32 %v1268_v28  ;;  %v1300_v42 = vadd.f32 1e-06, %v1236_v51  ;;  %v1238_v56 = vmul.f32 0.125, %v1173_v33 }
 0x2b7   :  { %v1303_v2 = vadd.f32 1e-06, %v1239_v24  ;;  %v2380_v45 = vpack.c.bf16 %v1857_v0, %v1857_v0  ;;  %2785 = verf.f32 %v1694_v1  ;;  %v4197_v29 = vadd.f32 %v3993_v34, %v1496_v46  ;;  %v4413_v1 = vld [vmem:[#allocation12_spill] sm:$0xff]  ;;  %v4414_v33 = vld [vmem:[#allocation13_spill] sm:$0xff] }
 0x2b8   :  { %v1398_v4 = vmul.f32 %v2772_v14, %v4408_v32  ;;  %v1888_v55 = vmul.f32 %v1824_v7, %v1632_v38  ;;  %2787 = vrsqrt.f32 %v1301_v62  ;;  %v1633_v63 = vmul.f32 0.5, %v4155_v19 }
 0x2b9   :  { %2178 = vst.msk [vmem:[%s4295_s6 + $0x6c] sm:$0xf] %vm2150_vm1, %v2380_v45  ;;  %v1695_v30 = vmul.f32 0.70710677, %v4197_v29  ;;  %2789 = vrsqrt.f32 %v1300_v42  ;;  %v1302_v11 = vadd.f32 1e-06, %v1238_v56 }
 0x2ba   :  { %v2774_v12 = vpop.eup %2773  ;;  %v1469_v15 = vmul.f32 %v3982_v23, %v1398_v4  ;;  %v2411_v61 = vpack.c.bf16 %v1888_v55, %v1888_v55  ;;  %2791 = vrsqrt.f32 %v1303_v2  ;;  %v1598_v43 = vmul.f32 0.5, %v4169_v9 }
 0x2bb   :  { %v1825_v58 = vadd.f32 1.0, %v2774_v12  ;;  %v2776_v40 = vpop.eup %2775  ;;  %2793 = verf.f32 %v1695_v30  ;;  %v1599_v8 = vmul.f32 0.5, %v4176_v49  ;;  %v1630_v49 = vmul.f32 0.5, %v4186_v22 }
 0x2bc   :  { %v1540_v31 = vadd.f32 %v3993_v34, %v1469_v15  ;;  %v2778_v48 = vpop.eup %2777  ;;  %2209 = vst.msk [vmem:[%s4295_s6 + $0xe8] sm:$0xf] %vm2150_vm1, %v2411_v61  ;;  %v1399_v47 = vmul.f32 %v2776_v40, %v4409_v59  ;;  %2795 = vrsqrt.f32 %v1302_v11  ;;  %v1631_v2 = vmul.f32 0.5, %v4197_v29 }
 0x2bd   :  { %v1889_v19 = vmul.f32 %v1825_v58, %v1633_v63  ;;  %v2780_v13 = vpop.eup %2779  ;;  %v1790_v37 = vadd.f32 1.0, %v2778_v48  ;;  %v4415_v63 = vld [vmem:[#allocation10_spill] sm:$0xff] }
 0x2be   :  { %v1668_v57 = vmul.f32 0.70710677, %v1540_v31  ;;  %v2782_v50 = vpop.eup %2781  ;;  %v1470_v5 = vmul.f32 %v3982_v23, %v1399_v47  ;;  %v1397_v16 = vmul.f32 %v2780_v13, %v4410_v21  ;;  %v1604_v61 = vmul.f32 0.5, %v1540_v31 }
 0x2bf   :  { %v2412_v44 = vpack.c.bf16 %v1889_v19, %v1889_v19  ;;  %v1854_v20 = vmul.f32 %v1790_v37, %v1598_v43  ;;  %v1791_v39 = vadd.f32 1.0, %v2782_v50 }
 0x2c0   :  { %2797 = verf.f32 %v1668_v57  ;;  %v2784_v52 = vpop.eup %2783  ;;  %v1541_v9 = vadd.f32 %v3993_v34, %v1470_v5  ;;  %v1468_v53 = vmul.f32 %v3982_v23, %v1397_v16 }
 0x2c1   :  { %2210 = vst.msk [vmem:[%s4295_s6 + $0xec] sm:$0xf] %vm2150_vm1, %v2412_v44  ;;  %v2786_v17 = vpop.eup %2785  ;;  %v2377_v36 = vpack.c.bf16 %v1854_v20, %v1854_v20  ;;  %v1855_v25 = vmul.f32 %v1791_v39, %v1599_v8  ;;  %v1396_v28 = vmul.f32 %v2784_v52, %v4411_v27 }
 0x2c2   :  { %v2788_v10 = vpop.eup %2787  ;;  %v1822_v60 = vadd.f32 1.0, %v2786_v17  ;;  %v1669_v26 = vmul.f32 0.70710677, %v1541_v9  ;;  %v1539_v35 = vadd.f32 %v3993_v34, %v1468_v53  ;;  %v1605_v50 = vmul.f32 0.5, %v1541_v9 }
 0x2c3   :  { %v2790_v62 = vpop.eup %2789  ;;  %2175 = vst.msk [vmem:[%s4295_s6 + $0x60] sm:$0xf] %vm2150_vm1, %v2377_v36  ;;  %v2378_v54 = vpack.c.bf16 %v1855_v25, %v1855_v25  ;;  %v1467_v6 = vmul.f32 %v3982_v23, %v1396_v28  ;;  %v1429_v41 = vmul.f32 %v2788_v10, %v4412_v3 }
 0x2c4   :  { %v2792_v51 = vpop.eup %2791  ;;  %v1886_v24 = vmul.f32 %v1822_v60, %v1630_v49  ;;  %2799 = verf.f32 %v1669_v26  ;;  %v1667_v18 = vmul.f32 0.70710677, %v1539_v35  ;;  %v1428_v46 = vmul.f32 %v2790_v62, %v4413_v1 }
 0x2c5   :  { %v2794_v22 = vpop.eup %2793  ;;  %2176 = vst.msk [vmem:[%s4295_s6 + $0x64] sm:$0xf] %vm2150_vm1, %v2378_v54  ;;  %v1538_v0 = vadd.f32 %v3993_v34, %v1467_v6  ;;  %v1500_v38 = vmul.f32 %v3982_v23, %v1429_v41  ;;  %v1431_v14 = vmul.f32 %v2792_v51, %v4414_v33  ;;  %v1603_v21 = vmul.f32 0.5, %v1539_v35 }
 0x2c6   :  { %v2796_v7 = vpop.eup %2795  ;;  %v2409_v42 = vpack.c.bf16 %v1886_v24, %v1886_v24  ;;  %v1823_v45 = vadd.f32 1.0, %v2794_v22  ;;  %2801 = verf.f32 %v1667_v18  ;;  %v1499_v55 = vmul.f32 %v3982_v23, %v1428_v46 }
 0x2c7   :  { %v1666_v32 = vmul.f32 0.70710677, %v1538_v0  ;;  %v1571_v4 = vadd.f32 %v3993_v34, %v1500_v38  ;;  %v1502_v12 = vmul.f32 %v3982_v23, %v1431_v14  ;;  %v1430_v30 = vmul.f32 %v2796_v7, %v4415_v63 }
 0x2c8   :  { %2207 = vst.msk [vmem:[%s4295_s6 + $0xe0] sm:$0xf] %vm2150_vm1, %v2409_v42  ;;  %v1887_v56 = vmul.f32 %v1823_v45, %v1631_v2  ;;  %v1570_v58 = vadd.f32 %v3993_v34, %v1499_v55  ;;  %v1602_v39 = vmul.f32 0.5, %v1538_v0 }
 0x2c9   :  { %2803 = verf.f32 %v1666_v32  ;;  %v1699_v29 = vmul.f32 0.70710677, %v1571_v4  ;;  %v1573_v48 = vadd.f32 %v3993_v34, %v1502_v12  ;;  %v1501_v19 = vmul.f32 %v3982_v23, %v1430_v30 }
 0x2ca   :  { %v2798_v15 = vpop.eup %2797  ;;  %v2410_v11 = vpack.c.bf16 %v1887_v56, %v1887_v56  ;;  %v1698_v59 = vmul.f32 0.70710677, %v1570_v58  ;;  %v1635_v36 = vmul.f32 0.5, %v1571_v4  ;;  %v1634_v60 = vmul.f32 0.5, %v1570_v58 }
 0x2cb   :  { %v1796_v40 = vadd.f32 1.0, %v2798_v15  ;;  %2805 = verf.f32 %v1699_v29  ;;  %v1701_v13 = vmul.f32 0.70710677, %v1573_v48  ;;  %v1572_v31 = vadd.f32 %v3993_v34, %v1501_v19 }
 0x2cc   :  { %2208 = vst.msk [vmem:[%s4295_s6 + $0xe4] sm:$0xf] %vm2150_vm1, %v2410_v11  ;;  %2807 = verf.f32 %v1698_v59  ;;  %v1637_v35 = vmul.f32 0.5, %v1573_v48 }
 0x2cd   :  { %v1860_v47 = vmul.f32 %v1796_v40, %v1604_v61  ;;  %2809 = verf.f32 %v1701_v13  ;;  %v1700_v57 = vmul.f32 0.70710677, %v1572_v31  ;;  %v1636_v51 = vmul.f32 0.5, %v1572_v31 }
 0x2ce   :  { %v2800_v43 = vpop.eup %2799 }
 0x2cf   :  { %v2383_v37 = vpack.c.bf16 %v1860_v47, %v1860_v47  ;;  %v1797_v44 = vadd.f32 1.0, %v2800_v43  ;;  %2811 = verf.f32 %v1700_v57 }
 0x2d0   :  { %v2802_v5 = vpop.eup %2801 }
 0x2d1   :  { %2181 = vst.msk [vmem:[%s4295_s6 + $0x78] sm:$0xf] %vm2150_vm1, %v2383_v37  ;;  %v1861_v23 = vmul.f32 %v1797_v44, %v1605_v50  ;;  %v1795_v16 = vadd.f32 1.0, %v2802_v5 }
 0x2d3   :  { %v2804_v20 = vpop.eup %2803  ;;  %v2384_v8 = vpack.c.bf16 %v1861_v23, %v1861_v23  ;;  %v1859_v34 = vmul.f32 %v1795_v16, %v1603_v21 }
 0x2d4   :  { %v1794_v52 = vadd.f32 1.0, %v2804_v20 }
 0x2d5   :  { %v2806_v53 = vpop.eup %2805  ;;  %2182 = vst.msk [vmem:[%s4295_s6 + $0x7c] sm:$0xf] %vm2150_vm1, %v2384_v8  ;;  %v2382_v9 = vpack.c.bf16 %v1859_v34, %v1859_v34 }
 0x2d6   :  { %v1858_v17 = vmul.f32 %v1794_v52, %v1602_v39  ;;  %v1827_v25 = vadd.f32 1.0, %v2806_v53  ;;  %v2808_v27 = vpop.eup %2807 }
 0x2d7   :  { %2180 = vst.msk [vmem:[%s4295_s6 + $0x74] sm:$0xf] %vm2150_vm1, %v2382_v9  ;;  %v2810_v28 = vpop.eup %2809  ;;  %v1826_v26 = vadd.f32 1.0, %v2808_v27 }
 0x2d8   :  { %v2381_v10 = vpack.c.bf16 %v1858_v17, %v1858_v17  ;;  %v1891_v49 = vmul.f32 %v1827_v25, %v1635_v36  ;;  %v1829_v62 = vadd.f32 1.0, %v2810_v28 }
 0x2d9   :  { %v2812_v54 = vpop.eup %2811  ;;  %v1890_v3 = vmul.f32 %v1826_v26, %v1634_v60 }
 0x2da   :  { %2179 = vst.msk [vmem:[%s4295_s6 + $0x70] sm:$0xf] %vm2150_vm1, %v2381_v10  ;;  %v2414_v6 = vpack.c.bf16 %v1891_v49, %v1891_v49  ;;  %v1893_v41 = vmul.f32 %v1829_v62, %v1637_v35  ;;  %v1828_v24 = vadd.f32 1.0, %v2812_v54 }
 0x2db   :  { %v2413_v18 = vpack.c.bf16 %v1890_v3, %v1890_v3 }
 0x2dc   :  { %2212 = vst.msk [vmem:[%s4295_s6 + $0xf4] sm:$0xf] %vm2150_vm1, %v2414_v6  ;;  %v2416_v22 = vpack.c.bf16 %v1893_v41, %v1893_v41  ;;  %v1892_v0 = vmul.f32 %v1828_v24, %v1636_v51 }
 0x2dd   :  { %2211 = vst.msk [vmem:[%s4295_s6 + $0xf0] sm:$0xf] %vm2150_vm1, %v2413_v18 }
 0x2de   :  { %2214 = vst.msk [vmem:[%s4295_s6 + $0xfc] sm:$0xf] %vm2150_vm1, %v2416_v22  ;;  %v2415_v38 = vpack.c.bf16 %v1892_v0, %v1892_v0 }
 0x2e0   :  { %2213 = vst.msk [vmem:[%s4295_s6 + $0xf8] sm:$0xf] %vm2150_vm1, %v2415_v38 }

// kernel: convblock_forward.5
= control target key start
LH: loop header
LB: loop body
LE: loop exit
PB: predicated region body
PF: predicated region fallthrough
CT: control target
= control target key end

     0   :  { %vm127_vm0 = vcmask 654336   ;;  %vm638_vm1 = vcmask 125952   ;;  %s1202_s1 = inlined_call_operand.vmem [shape: bf16[80,128], index: 1, kind: input, shape index: {}]   ;;  %s1203_s0 = inlined_call_operand.vmem [shape: bf16[128,80], index: 0, kind: input, shape index: {}]   ;;  %s1204_s2 = inlined_call_operand.vmem [shape: f32[1,128], index: 2, kind: input, shape index: {}]   ;;  %s1205_s5 = inlined_call_operand.vmem [shape: f32[1,128], index: 5, kind: input, shape index: {}]   ;;  %s1206_s3 = inlined_call_operand.vmem [shape: f32[1,128], index: 3, kind: input, shape index: {}]   ;;  %s1207_s4 = inlined_call_operand.vmem [shape: f32[1,128], index: 4, kind: input, shape index: {}]   ;;  %s1208_s6 = inlined_call_operand.vmem [shape: bf16[128,16], index: 6, kind: output, shape index: {}]  }
   0x1   :  { %v765_v0 = vld [vmem:[%s1202_s1] sm:$0xff]   ;;  %v766_v1 = vld [vmem:[%s1202_s1 + $0x8] sm:$0xff]   ;;  %v767_v2 = vld [vmem:[%s1202_s1 + $0x10] sm:$0xff]  }
   0x2   :  { %729 = vmatprep.subr.bf16.mxu0 %v765_v0  ;;  %755 = vmatprep.subr.bf16.mxu1 %v765_v0  ;;  %v770_v3 = vld [vmem:[%s1203_s0] sm:$0xff]   ;;  %v768_v5 = vld [vmem:[%s1202_s1 + $0x18] sm:$0xff]   ;;  %v772_v7 = vld [vmem:[%s1203_s0 + $0x8] sm:$0xff]  }
   0x3   :  { %730 = vmatpush3.bf16.msra.mxu0 %v765_v0  ;;  %760 = vmatpush3.bf16.msra.mxu1 %v765_v0  ;;  %v771_v4 = vld [vmem:[%s1203_s0 + $0x20] sm:$0xff]   ;;  %v773_v8 = vld [vmem:[%s1203_s0 + $0x28] sm:$0xff]   ;;  %v774_v9 = vld [vmem:[%s1203_s0 + $0x10] sm:$0xff]  }
   0x4   :  { %731 = vmatprep.subr.bf16.mxu0 %v766_v1  ;;  %756 = vmatprep.subr.bf16.mxu1 %v766_v1  ;;  %v769_v6 = vld [vmem:[%s1202_s1 + $0x20] sm:$0xff]   ;;  %v776_v10 = vld [vmem:[%s1203_s0 + $0x30] sm:$0xff]   ;;  %v775_v11 = vld [vmem:[%s1203_s0 + $0x18] sm:$0xff]  }
   0x5   :  { %739 = vmatprep.mubr.msk.bf16.mxu0 %vm127_vm0, %v770_v3  ;;  %747 = vmatprep.mubr.msk.bf16.mxu1 %vm127_vm0, %v771_v4  ;;  %v777_v12 = vld [vmem:[%s1203_s0 + $0x38] sm:$0xff]   ;;  %v659_v13 = vld [vmem:[%s1204_s2] ss:$0 sm:$0xff] }
   0x6   :  { %v958_v54 = vld [vmem:[%s1205_s5] ss:$0 sm:$0xff] }
   0x7   :  { %732 = vmatpush3.bf16.msra.mxu0 %v766_v1  ;;  %761 = vmatpush3.bf16.msra.mxu1 %v766_v1 }
   0x8   :  { %733 = vmatprep.subr.bf16.mxu0 %v767_v2  ;;  %757 = vmatprep.subr.bf16.mxu1 %v767_v2 }
   0xb   :  { %734 = vmatpush3.bf16.msra.mxu0 %v767_v2  ;;  %762 = vmatpush3.bf16.msra.mxu1 %v767_v2 }
   0xc   :  { %735 = vmatprep.subr.bf16.mxu0 %v768_v5  ;;  %758 = vmatprep.subr.bf16.mxu1 %v768_v5 }
   0xf   :  { %736 = vmatpush3.bf16.msra.mxu0 %v768_v5  ;;  %763 = vmatpush3.bf16.msra.mxu1 %v768_v5 }
  0x10   :  { %737 = vmatprep.subr.bf16.mxu0 %v769_v6  ;;  %759 = vmatprep.subr.bf16.mxu1 %v769_v6 }
  0x13   :  { %738 = vmatpush3.bf16.msra.mxu0 %v769_v6  ;;  %764 = vmatpush3.bf16.msra.mxu1 %v769_v6 }
  0x16   :  { %740 = vmatmul.mubr.msk.bf16.vlgmr.msra.gmra.mrb[0].mxu0 %vm127_vm0, %v772_v7  ;;  %748 = vmatmul.mubr.msk.bf16.vlgmr.msra.gmra.mrb[0].mxu1 %vm127_vm0, %v773_v8 }
  0x17   :  { %743 = vmatprep.mubr.msk.bf16.mxu0 %vm127_vm0, %v774_v9  ;;  %751 = vmatprep.mubr.msk.bf16.mxu1 %vm127_vm0, %v776_v10 }
  0x1e   :  { %744 = vmatmul.mubr.msk.bf16.gmra.mrb[4].mxu0 %vm127_vm0, %v775_v11  ;;  %752 = vmatmul.mubr.msk.bf16.gmra.mrb[4].mxu1 %vm127_vm0, %v777_v12 }
  0xe9   :  { %v741_v14 = vpop.f32.mrb[0].mxu0  ;;  %v749_v15 = vpop.f32.mrb[0].mxu1 }
  0xea   :  { %v195_v16 = vadd.f32 %v741_v14, %v659_v13  ;;  %v227_v17 = vadd.f32 %v749_v15, %v659_v13  ;;  %v186_v18 = vpop.f32.mrb[1].mxu0  ;;  %v218_v19 = vpop.f32.mrb[1].mxu1 }
  0xeb   :  { %v742_v20 = vpop.f32.mrb[2].mxu0  ;;  %v750_v21 = vpop.f32.mrb[2].mxu1  ;;  %v187_v24 = vadd.f32 %v659_v13, %v186_v18  ;;  %v219_v28 = vadd.f32 %v659_v13, %v218_v19 }
  0xec   :  { %269 = vadd.xlane.f32.xlu0 %v227_v17  ;;  %v221_v22 = vpop.f32.mrb[3].mxu1  ;;  %253 = vadd.xlane.f32.xlu1 %v195_v16  ;;  %v189_v23 = vpop.f32.mrb[3].mxu0  ;;  %v198_v25 = vadd.f32 %v742_v20, %v659_v13  ;;  %v230_v29 = vadd.f32 %v750_v21, %v659_v13 }
  0xed   :  { %v222_v36 = vadd.f32 %v659_v13, %v221_v22  ;;  %v190_v37 = vadd.f32 %v659_v13, %v189_v23 }
  0xf0   :  { %255 = vadd.xlane.f32.xlu1 %v198_v25  ;;  %249 = vadd.xlane.f32.xlu0 %v187_v24 }
  0xf1   :  { %v745_v26 = vpop.f32.mrb[4].mxu0  ;;  %v753_v27 = vpop.f32.mrb[4].mxu1 }
  0xf2   :  { %v202_v30 = vpop.f32.mrb[5].mxu0  ;;  %v234_v31 = vpop.f32.mrb[5].mxu1  ;;  %v927_v38 = vadd.f32 %v745_v26, %v659_v13  ;;  %v945_v44 = vadd.f32 %v753_v27, %v659_v13 }
  0xf3   :  { %v746_v32 = vpop.f32.mrb[6].mxu0  ;;  %v754_v33 = vpop.f32.mrb[6].mxu1  ;;  %v933_v40 = vadd.f32 %v659_v13, %v202_v30  ;;  %v937_v42 = vadd.f32 %v659_v13, %v234_v31 }
  0xf4   :  { %271 = vadd.xlane.f32.xlu1 %v230_v29  ;;  %265 = vadd.xlane.f32.xlu0 %v219_v28  ;;  %v205_v34 = vpop.f32.mrb[7].mxu0  ;;  %v237_v35 = vpop.f32.mrb[7].mxu1  ;;  %v929_v39 = vadd.f32 %v746_v32, %v659_v13  ;;  %v947_v45 = vadd.f32 %v754_v33, %v659_v13 }
  0xf5   :  { %v935_v41 = vadd.f32 %v659_v13, %v205_v34  ;;  %v941_v43 = vadd.f32 %v659_v13, %v237_v35 }
  0xf8   :  { %267 = vadd.xlane.f32.xlu1 %v222_v36  ;;  %251 = vadd.xlane.f32.xlu0 %v190_v37 }
  0xfc   :  { %263 = vadd.xlane.f32.xlu1 %v929_v39  ;;  %261 = vadd.xlane.f32.xlu0 %v927_v38 }
 0x100   :  { %259 = vadd.xlane.f32.xlu1 %v935_v41  ;;  %257 = vadd.xlane.f32.xlu0 %v933_v40 }
 0x104   :  { %275 = vadd.xlane.f32.xlu1 %v941_v43  ;;  %273 = vadd.xlane.f32.xlu0 %v937_v42 }
 0x108   :  { %279 = vadd.xlane.f32.xlu1 %v947_v45  ;;  %277 = vadd.xlane.f32.xlu0 %v945_v44 }
 0x179   :  { %v270_v46 = vpop.xlane.xlu0 %269  ;;  %v254_v47 = vpop.xlane.xlu1 %253 }
 0x17a   :  { %v291_v48 = vmul.f32 0.0625, %v270_v46  ;;  %v283_v49 = vmul.f32 0.0625, %v254_v47 }
 0x17c   :  { %v951_v50 = vsub.f32 %v227_v17, %v291_v48  ;;  %v953_v51 = vsub.f32 %v195_v16, %v283_v49 }
 0x17d   :  { %v256_v52 = vpop.xlane.xlu1 %255  ;;  %v250_v53 = vpop.xlane.xlu0 %249 }
 0x17e   :  { %v284_v55 = vmul.f32 0.0625, %v256_v52  ;;  %v281_v56 = vmul.f32 0.0625, %v250_v53  ;;  %v315_v57 = vmul.f32 %v953_v51, %v953_v51  ;;  %v323_v61 = vmul.f32 %v951_v50, %v951_v50 }
 0x180   :  { %v962_v58 = vsub.f32 %v198_v25, %v284_v55  ;;  %v964_v59 = vsub.f32 %v187_v24, %v281_v56  ;;  %v338_v60 = vmul.f32 %v958_v54, %v315_v57  ;;  %v346_v7 = vmul.f32 %v958_v54, %v323_v61 }
 0x181   :  { %v272_v62 = vpop.xlane.xlu1 %271  ;;  %v266_v63 = vpop.xlane.xlu0 %265 }
 0x182   :  { %v292_v0 = vmul.f32 0.0625, %v272_v62  ;;  %v289_v1 = vmul.f32 0.0625, %v266_v63  ;;  %356 = vadd.xlane.f32.xlu0 %v338_v60  ;;  %v316_v2 = vmul.f32 %v962_v58, %v962_v58  ;;  %v313_v3 = vmul.f32 %v964_v59, %v964_v59 }
 0x184   :  { %v973_v4 = vsub.f32 %v230_v29, %v292_v0  ;;  %v975_v5 = vsub.f32 %v219_v28, %v289_v1  ;;  %v339_v6 = vmul.f32 %v958_v54, %v316_v2  ;;  %v336_v13 = vmul.f32 %v958_v54, %v313_v3 }
 0x185   :  { %v268_v8 = vpop.xlane.xlu1 %267  ;;  %v252_v9 = vpop.xlane.xlu0 %251 }
 0x186   :  { %v290_v10 = vmul.f32 0.0625, %v268_v8  ;;  %v282_v11 = vmul.f32 0.0625, %v252_v9  ;;  %358 = vadd.xlane.f32.xlu1 %v339_v6  ;;  %372 = vadd.xlane.f32.xlu0 %v346_v7  ;;  %v324_v12 = vmul.f32 %v973_v4, %v973_v4  ;;  %v321_v17 = vmul.f32 %v975_v5, %v975_v5 }
 0x188   :  { %v982_v14 = vsub.f32 %v222_v36, %v290_v10  ;;  %v984_v15 = vsub.f32 %v190_v37, %v282_v11  ;;  %v347_v16 = vmul.f32 %v958_v54, %v324_v12  ;;  %v344_v26 = vmul.f32 %v958_v54, %v321_v17 }
 0x189   :  { %v264_v18 = vpop.xlane.xlu1 %263  ;;  %v262_v19 = vpop.xlane.xlu0 %261 }
 0x18a   :  { %v288_v20 = vmul.f32 0.0625, %v264_v18  ;;  %v287_v21 = vmul.f32 0.0625, %v262_v19  ;;  %374 = vadd.xlane.f32.xlu1 %v347_v16  ;;  %352 = vadd.xlane.f32.xlu0 %v336_v13  ;;  %v314_v22 = vmul.f32 %v984_v15, %v984_v15  ;;  %v322_v23 = vmul.f32 %v982_v14, %v982_v14 }
 0x18c   :  { %v994_v24 = vsub.f32 %v929_v39, %v288_v20  ;;  %v997_v25 = vsub.f32 %v927_v38, %v287_v21  ;;  %v337_v27 = vmul.f32 %v958_v54, %v314_v22  ;;  %v345_v33 = vmul.f32 %v958_v54, %v322_v23 }
 0x18d   :  { %v260_v28 = vpop.xlane.xlu1 %259  ;;  %v258_v29 = vpop.xlane.xlu0 %257 }
 0x18e   :  { %v286_v30 = vmul.f32 0.0625, %v260_v28  ;;  %v285_v31 = vmul.f32 0.0625, %v258_v29  ;;  %368 = vadd.xlane.f32.xlu0 %v344_v26  ;;  %354 = vadd.xlane.f32.xlu1 %v337_v27  ;;  %v319_v32 = vmul.f32 %v997_v25, %v997_v25  ;;  %v320_v37 = vmul.f32 %v994_v24, %v994_v24  ;;  %v1047_v29 = vld [vmem:[%s1206_s3] ss:$0 sm:$0xff] }
 0x190   :  { %v1005_v34 = vsub.f32 %v935_v41, %v286_v30  ;;  %v1008_v35 = vsub.f32 %v933_v40, %v285_v31  ;;  %v342_v36 = vmul.f32 %v958_v54, %v319_v32  ;;  %v343_v52 = vmul.f32 %v958_v54, %v320_v37  ;;  %v1053_v37 = vld [vmem:[%s1207_s4] ss:$0 sm:$0xff] }
 0x191   :  { %v276_v38 = vpop.xlane.xlu1 %275  ;;  %v274_v39 = vpop.xlane.xlu0 %273 }
 0x192   :  { %v294_v46 = vmul.f32 0.0625, %v276_v38  ;;  %v293_v47 = vmul.f32 0.0625, %v274_v39  ;;  %370 = vadd.xlane.f32.xlu1 %v345_v33  ;;  %364 = vadd.xlane.f32.xlu0 %v342_v36  ;;  %v317_v48 = vmul.f32 %v1008_v35, %v1008_v35  ;;  %v318_v41 = vmul.f32 %v1005_v34, %v1005_v34 }
 0x194   :  { %v1018_v40 = vsub.f32 %v941_v43, %v294_v46  ;;  %v1021_v49 = vsub.f32 %v937_v42, %v293_v47  ;;  %v340_v53 = vmul.f32 %v958_v54, %v317_v48  ;;  %v341_v62 = vmul.f32 %v958_v54, %v318_v41 }
 0x195   :  { %v280_v55 = vpop.xlane.xlu1 %279  ;;  %v278_v56 = vpop.xlane.xlu0 %277 }
 0x196   :  { %v296_v57 = vmul.f32 0.0625, %v280_v55  ;;  %v295_v60 = vmul.f32 0.0625, %v278_v56  ;;  %366 = vadd.xlane.f32.xlu1 %v343_v52  ;;  %360 = vadd.xlane.f32.xlu0 %v340_v53  ;;  %v325_v61 = vmul.f32 %v1021_v49, %v1021_v49  ;;  %v326_v0 = vmul.f32 %v1018_v40, %v1018_v40 }
 0x198   :  { %v1029_v43 = vsub.f32 %v947_v45, %v296_v57  ;;  %v1032_v42 = vsub.f32 %v945_v44, %v295_v60  ;;  %v348_v63 = vmul.f32 %v958_v54, %v325_v61  ;;  %v349_v2 = vmul.f32 %v958_v54, %v326_v0 }
 0x19a   :  { %362 = vadd.xlane.f32.xlu1 %v341_v62  ;;  %376 = vadd.xlane.f32.xlu0 %v348_v63  ;;  %v327_v1 = vmul.f32 %v1032_v42, %v1032_v42  ;;  %v328_v45 = vmul.f32 %v1029_v43, %v1029_v43 }
 0x19c   :  { %v350_v3 = vmul.f32 %v958_v54, %v327_v1  ;;  %v351_v44 = vmul.f32 %v958_v54, %v328_v45 }
 0x19e   :  { %378 = vadd.xlane.f32.xlu1 %v349_v2  ;;  %380 = vadd.xlane.f32.xlu0 %v350_v3 }
 0x1a2   :  { %382 = vadd.xlane.f32.xlu1 %v351_v44 }
 0x20f   :  { %v357_v6 = vpop.xlane.xlu0 %356 }
 0x210   :  { %v386_v7 = vmul.f32 0.0625, %v357_v6 }
 0x212   :  { %v402_v8 = vadd.f32 1e-06, %v386_v7 }
 0x213   :  { %v359_v9 = vpop.xlane.xlu1 %358  ;;  %v373_v10 = vpop.xlane.xlu0 %372 }
 0x214   :  { %778 = vrsqrt.f32 %v402_v8  ;;  %v387_v11 = vmul.f32 0.0625, %v359_v9  ;;  %v394_v12 = vmul.f32 0.0625, %v373_v10 }
 0x216   :  { %v403_v13 = vadd.f32 1e-06, %v387_v11  ;;  %v410_v16 = vadd.f32 1e-06, %v394_v12 }
 0x217   :  { %v375_v17 = vpop.xlane.xlu1 %374  ;;  %v353_v18 = vpop.xlane.xlu0 %352 }
 0x218   :  { %780 = vrsqrt.f32 %v403_v13  ;;  %v395_v19 = vmul.f32 0.0625, %v375_v17  ;;  %v384_v20 = vmul.f32 0.0625, %v353_v18 }
 0x219   :  { %782 = vrsqrt.f32 %v410_v16 }
 0x21a   :  { %v411_v21 = vadd.f32 1e-06, %v395_v19  ;;  %v400_v22 = vadd.f32 1e-06, %v384_v20 }
 0x21b   :  { %v355_v54 = vpop.xlane.xlu1 %354  ;;  %v369_v23 = vpop.xlane.xlu0 %368 }
 0x21c   :  { %784 = vrsqrt.f32 %v411_v21  ;;  %v385_v26 = vmul.f32 0.0625, %v355_v54  ;;  %v392_v27 = vmul.f32 0.0625, %v369_v23 }
 0x21d   :  { %786 = vrsqrt.f32 %v400_v22 }
 0x21e   :  { %v779_v28 = vpop.eup %778  ;;  %v401_v30 = vadd.f32 1e-06, %v385_v26  ;;  %v408_v31 = vadd.f32 1e-06, %v392_v27 }
 0x21f   :  { %v434_v32 = vmul.f32 %v779_v28, %v953_v51  ;;  %v371_v33 = vpop.xlane.xlu1 %370  ;;  %v365_v36 = vpop.xlane.xlu0 %364 }
 0x220   :  { %788 = vrsqrt.f32 %v401_v30  ;;  %v393_v38 = vmul.f32 0.0625, %v371_v33  ;;  %v390_v39 = vmul.f32 0.0625, %v365_v36 }
 0x221   :  { %v457_v46 = vmul.f32 %v1047_v29, %v434_v32  ;;  %790 = vrsqrt.f32 %v408_v31 }
 0x222   :  { %v781_v47 = vpop.eup %780  ;;  %v409_v48 = vadd.f32 1e-06, %v393_v38  ;;  %v406_v41 = vadd.f32 1e-06, %v390_v39 }
 0x223   :  { %v783_v52 = vpop.eup %782  ;;  %v480_v53 = vadd.f32 %v1053_v37, %v457_v46  ;;  %v435_v51 = vmul.f32 %v781_v47, %v962_v58  ;;  %v367_v55 = vpop.xlane.xlu1 %366 }
 0x224   :  { %v361_v56 = vpop.xlane.xlu0 %360  ;;  %v442_v57 = vmul.f32 %v783_v52, %v951_v50  ;;  %792 = vrsqrt.f32 %v409_v48  ;;  %v391_v60 = vmul.f32 0.0625, %v367_v55 }
 0x225   :  { %v388_v61 = vmul.f32 0.0625, %v361_v56  ;;  %v512_v62 = vmul.f32 0.70710677, %v480_v53  ;;  %v458_v63 = vmul.f32 %v1047_v29, %v435_v51  ;;  %794 = vrsqrt.f32 %v406_v41 }
 0x226   :  { %v785_v0 = vpop.eup %784  ;;  %v465_v1 = vmul.f32 %v1047_v29, %v442_v57  ;;  %v407_v2 = vadd.f32 1e-06, %v391_v60  ;;  %v496_v36 = vmul.f32 0.5, %v480_v53 }
 0x227   :  { %v404_v3 = vadd.f32 1e-06, %v388_v61  ;;  %v787_v45 = vpop.eup %786  ;;  %796 = verf.f32 %v512_v62  ;;  %v481_v58 = vadd.f32 %v1053_v37, %v458_v63  ;;  %v443_v44 = vmul.f32 %v785_v0, %v973_v4  ;;  %v363_v6 = vpop.xlane.xlu1 %362 }
 0x228   :  { %v488_v50 = vadd.f32 %v1053_v37, %v465_v1  ;;  %v432_v7 = vmul.f32 %v787_v45, %v964_v59  ;;  %798 = vrsqrt.f32 %v407_v2  ;;  %v389_v8 = vmul.f32 0.0625, %v363_v6  ;;  %v377_v9 = vpop.xlane.xlu0 %376 }
 0x229   :  { %v513_v10 = vmul.f32 0.70710677, %v481_v58  ;;  %v466_v11 = vmul.f32 %v1047_v29, %v443_v44  ;;  %800 = vrsqrt.f32 %v404_v3  ;;  %v396_v59 = vmul.f32 0.0625, %v377_v9 }
 0x22a   :  { %v789_v12 = vpop.eup %788  ;;  %v520_v13 = vmul.f32 0.70710677, %v488_v50  ;;  %v455_v16 = vmul.f32 %v1047_v29, %v432_v7  ;;  %v405_v17 = vadd.f32 1e-06, %v389_v8  ;;  %v497_v57 = vmul.f32 0.5, %v481_v58 }
 0x22b   :  { %v791_v18 = vpop.eup %790  ;;  %802 = verf.f32 %v513_v10  ;;  %v1068_v4 = vadd.f32 %v1053_v37, %v466_v11  ;;  %v433_v19 = vmul.f32 %v789_v12, %v984_v15  ;;  %v379_v20 = vpop.xlane.xlu1 %378  ;;  %v412_v15 = vadd.f32 1e-06, %v396_v59 }
 0x22c   :  { %804 = verf.f32 %v520_v13  ;;  %v1072_v21 = vadd.f32 %v1053_v37, %v455_v16  ;;  %v440_v22 = vmul.f32 %v791_v18, %v975_v5  ;;  %v397_v26 = vmul.f32 0.0625, %v379_v20  ;;  %v381_v33 = vpop.xlane.xlu0 %380 }
 0x22d   :  { %v521_v54 = vmul.f32 0.70710677, %v1068_v4  ;;  %v456_v23 = vmul.f32 %v1047_v29, %v433_v19  ;;  %806 = vrsqrt.f32 %v405_v17  ;;  %v398_v53 = vmul.f32 0.0625, %v381_v33 }
 0x22e   :  { %v793_v27 = vpop.eup %792  ;;  %v510_v28 = vmul.f32 0.70710677, %v1072_v21  ;;  %v463_v30 = vmul.f32 %v1047_v29, %v440_v22  ;;  %v413_v41 = vadd.f32 1e-06, %v397_v26  ;;  %v504_v1 = vmul.f32 0.5, %v488_v50 }
 0x22f   :  { %v795_v31 = vpop.eup %794  ;;  %808 = verf.f32 %v521_v54  ;;  %v1080_v32 = vadd.f32 %v1053_v37, %v456_v23  ;;  %v441_v5 = vmul.f32 %v793_v27, %v982_v14  ;;  %v383_v7 = vpop.xlane.xlu1 %382  ;;  %v505_v11 = vmul.f32 0.5, %v1068_v4 }
 0x230   :  { %810 = verf.f32 %v510_v28  ;;  %v1084_v38 = vadd.f32 %v1053_v37, %v463_v30  ;;  %v438_v39 = vmul.f32 %v795_v31, %v997_v25  ;;  %v399_v19 = vmul.f32 0.0625, %v383_v7 }
 0x231   :  { %v797_v46 = vpop.eup %796  ;;  %v511_v47 = vmul.f32 0.70710677, %v1080_v32  ;;  %v464_v48 = vmul.f32 %v1047_v29, %v441_v5  ;;  %812 = vrsqrt.f32 %v412_v15  ;;  %v494_v4 = vmul.f32 0.5, %v1072_v21 }
 0x232   :  { %v799_v52 = vpop.eup %798  ;;  %v544_v51 = vadd.f32 1.0, %v797_v46  ;;  %v518_v55 = vmul.f32 0.70710677, %v1084_v38  ;;  %v461_v14 = vmul.f32 %v1047_v29, %v438_v39  ;;  %v495_v5 = vmul.f32 0.5, %v1080_v32 }
 0x233   :  { %v801_v56 = vpop.eup %800  ;;  %814 = verf.f32 %v511_v47  ;;  %v1092_v60 = vadd.f32 %v1053_v37, %v464_v48  ;;  %v439_v25 = vmul.f32 %v799_v52, %v994_v24  ;;  %v414_v24 = vadd.f32 1e-06, %v398_v53 }
 0x234   :  { %v560_v61 = vmul.f32 %v544_v51, %v496_v36  ;;  %816 = verf.f32 %v518_v55  ;;  %v1096_v62 = vadd.f32 %v1053_v37, %v461_v14  ;;  %v436_v63 = vmul.f32 %v801_v56, %v1008_v35 }
 0x235   :  { %v803_v0 = vpop.eup %802  ;;  %v519_v2 = vmul.f32 0.70710677, %v1092_v60  ;;  %v462_v3 = vmul.f32 %v1047_v29, %v439_v25  ;;  %818 = vrsqrt.f32 %v413_v41  ;;  %v415_v33 = vadd.f32 1e-06, %v399_v19 }
 0x236   :  { %v805_v45 = vpop.eup %804  ;;  %v702_v58 = vpack.c.bf16 %v560_v61, %v560_v61  ;;  %v545_v44 = vadd.f32 1.0, %v803_v0  ;;  %v516_v6 = vmul.f32 0.70710677, %v1096_v62  ;;  %v459_v35 = vmul.f32 %v1047_v29, %v436_v63 }
 0x237   :  { %v807_v8 = vpop.eup %806  ;;  %v552_v9 = vadd.f32 1.0, %v805_v45  ;;  %820 = verf.f32 %v519_v2  ;;  %v1103_v10 = vadd.f32 %v1053_v37, %v462_v3  ;;  %v502_v47 = vmul.f32 0.5, %v1084_v38 }
 0x238   :  { %641 = vst.msk [vmem:[%s1208_s6 + $0x8] sm:$0xf] %vm638_vm1, %v702_v58  ;;  %v561_v50 = vmul.f32 %v545_v44, %v497_v57  ;;  %822 = verf.f32 %v516_v6  ;;  %v437_v12 = vmul.f32 %v807_v8, %v1005_v34  ;;  %v1114_v18 = vadd.f32 %v1053_v37, %v459_v35 }
 0x239   :  { %v809_v13 = vpop.eup %808  ;;  %v568_v16 = vmul.f32 %v552_v9, %v504_v1  ;;  %v517_v17 = vmul.f32 0.70710677, %v1103_v10  ;;  %824 = vrsqrt.f32 %v414_v24  ;;  %v503_v25 = vmul.f32 0.5, %v1092_v60 }
 0x23a   :  { %v811_v59 = vpop.eup %810  ;;  %v703_v20 = vpack.c.bf16 %v561_v50, %v561_v50  ;;  %v553_v22 = vadd.f32 1.0, %v809_v13  ;;  %v460_v54 = vmul.f32 %v1047_v29, %v437_v12  ;;  %v514_v28 = vmul.f32 0.70710677, %v1114_v18 }
 0x23b   :  { %v813_v23 = vpop.eup %812  ;;  %v710_v26 = vpack.c.bf16 %v568_v16, %v568_v16  ;;  %v542_v27 = vadd.f32 1.0, %v811_v59  ;;  %826 = verf.f32 %v517_v17  ;;  %v501_v24 = vmul.f32 0.5, %v1103_v10 }
 0x23c   :  { %642 = vst.msk [vmem:[%s1208_s6 + $0xc] sm:$0xf] %vm638_vm1, %v703_v20  ;;  %v569_v34 = vmul.f32 %v553_v22, %v505_v11  ;;  %v1124_v30 = vadd.f32 %v1053_v37, %v460_v54  ;;  %v444_v15 = vmul.f32 %v813_v23, %v1021_v49  ;;  %828 = verf.f32 %v514_v28 }
 0x23d   :  { %v815_v31 = vpop.eup %814  ;;  %649 = vst.msk [vmem:[%s1208_s6 + $0x28] sm:$0xf] %vm638_vm1, %v710_v26  ;;  %v558_v21 = vmul.f32 %v542_v27, %v494_v4  ;;  %830 = vrsqrt.f32 %v415_v33 }
 0x23e   :  { %v817_v36 = vpop.eup %816  ;;  %v711_v39 = vpack.c.bf16 %v569_v34, %v569_v34  ;;  %v543_v46 = vadd.f32 1.0, %v815_v31  ;;  %v515_v49 = vmul.f32 0.70710677, %v1124_v30  ;;  %v467_v51 = vmul.f32 %v1047_v29, %v444_v15 }
 0x23f   :  { %v819_v48 = vpop.eup %818  ;;  %v700_v41 = vpack.c.bf16 %v558_v21, %v558_v21  ;;  %v550_v52 = vadd.f32 1.0, %v817_v36  ;;  %v499_v22 = vmul.f32 0.5, %v1124_v30 }
 0x240   :  { %650 = vst.msk [vmem:[%s1208_s6 + $0x2c] sm:$0xf] %vm638_vm1, %v711_v39  ;;  %v559_v32 = vmul.f32 %v543_v46, %v495_v5  ;;  %v445_v55 = vmul.f32 %v819_v48, %v1018_v40  ;;  %832 = verf.f32 %v515_v49  ;;  %v490_v53 = vadd.f32 %v1053_v37, %v467_v51 }
 0x241   :  { %v821_v14 = vpop.eup %820  ;;  %639 = vst.msk [vmem:[%s1208_s6] sm:$0xf] %vm638_vm1, %v700_v41  ;;  %v566_v38 = vmul.f32 %v550_v52, %v502_v47  ;;  %v500_v40 = vmul.f32 0.5, %v1096_v62 }
 0x242   :  { %v823_v56 = vpop.eup %822  ;;  %v701_v57 = vpack.c.bf16 %v559_v32, %v559_v32  ;;  %v551_v61 = vadd.f32 1.0, %v821_v14  ;;  %v468_v63 = vmul.f32 %v1047_v29, %v445_v55  ;;  %v522_v2 = vmul.f32 0.70710677, %v490_v53 }
 0x243   :  { %v708_v0 = vpack.c.bf16 %v566_v38, %v566_v38  ;;  %v548_v1 = vadd.f32 1.0, %v823_v56  ;;  %v825_v3 = vpop.eup %824  ;;  %v506_v34 = vmul.f32 0.5, %v490_v53 }
 0x244   :  { %640 = vst.msk [vmem:[%s1208_s6 + $0x4] sm:$0xf] %vm638_vm1, %v701_v57  ;;  %v567_v45 = vmul.f32 %v551_v61, %v503_v25  ;;  %v491_v58 = vadd.f32 %v1053_v37, %v468_v63  ;;  %834 = verf.f32 %v522_v2  ;;  %v446_v62 = vmul.f32 %v825_v3, %v1032_v42 }
 0x245   :  { %v827_v44 = vpop.eup %826  ;;  %647 = vst.msk [vmem:[%s1208_s6 + $0x20] sm:$0xf] %vm638_vm1, %v708_v0  ;;  %v564_v60 = vmul.f32 %v548_v1, %v500_v40  ;;  %v498_v42 = vmul.f32 0.5, %v1114_v18 }
 0x246   :  { %v709_v6 = vpack.c.bf16 %v567_v45, %v567_v45  ;;  %v549_v7 = vadd.f32 1.0, %v827_v44  ;;  %v523_v8 = vmul.f32 0.70710677, %v491_v58  ;;  %v469_v35 = vmul.f32 %v1047_v29, %v446_v62  ;;  %v829_v50 = vpop.eup %828 }
 0x247   :  { %v706_v9 = vpack.c.bf16 %v564_v60, %v564_v60  ;;  %v546_v10 = vadd.f32 1.0, %v829_v50  ;;  %v831_v13 = vpop.eup %830  ;;  %v507_v30 = vmul.f32 0.5, %v491_v58 }
 0x248   :  { %648 = vst.msk [vmem:[%s1208_s6 + $0x24] sm:$0xf] %vm638_vm1, %v709_v6  ;;  %v565_v11 = vmul.f32 %v549_v7, %v501_v24  ;;  %836 = verf.f32 %v523_v8  ;;  %v492_v12 = vadd.f32 %v1053_v37, %v469_v35  ;;  %v447_v20 = vmul.f32 %v831_v13, %v1029_v43 }
 0x249   :  { %645 = vst.msk [vmem:[%s1208_s6 + $0x18] sm:$0xf] %vm638_vm1, %v706_v9  ;;  %v562_v19 = vmul.f32 %v546_v10, %v498_v42 }
 0x24a   :  { %v707_v16 = vpack.c.bf16 %v565_v11, %v565_v11  ;;  %v833_v17 = vpop.eup %832  ;;  %v524_v59 = vmul.f32 0.70710677, %v492_v12  ;;  %v470_v18 = vmul.f32 %v1047_v29, %v447_v20  ;;  %v508_v39 = vmul.f32 0.5, %v492_v12 }
 0x24b   :  { %v547_v54 = vadd.f32 1.0, %v833_v17  ;;  %v704_v23 = vpack.c.bf16 %v562_v19, %v562_v19 }
 0x24c   :  { %646 = vst.msk [vmem:[%s1208_s6 + $0x1c] sm:$0xf] %vm638_vm1, %v707_v16  ;;  %838 = verf.f32 %v524_v59  ;;  %v493_v43 = vadd.f32 %v1053_v37, %v470_v18 }
 0x24d   :  { %v563_v26 = vmul.f32 %v547_v54, %v499_v22  ;;  %643 = vst.msk [vmem:[%s1208_s6 + $0x10] sm:$0xf] %vm638_vm1, %v704_v23 }
 0x24e   :  { %v835_v4 = vpop.eup %834  ;;  %v525_v15 = vmul.f32 0.70710677, %v493_v43  ;;  %v509_v52 = vmul.f32 0.5, %v493_v43 }
 0x24f   :  { %v705_v27 = vpack.c.bf16 %v563_v26, %v563_v26  ;;  %v554_v28 = vadd.f32 1.0, %v835_v4 }
 0x250   :  { %840 = verf.f32 %v525_v15 }
 0x251   :  { %644 = vst.msk [vmem:[%s1208_s6 + $0x14] sm:$0xf] %vm638_vm1, %v705_v27  ;;  %v570_v29 = vmul.f32 %v554_v28, %v506_v34 }
 0x252   :  { %v837_v31 = vpop.eup %836 }
 0x253   :  { %v555_v21 = vadd.f32 1.0, %v837_v31  ;;  %v712_v5 = vpack.c.bf16 %v570_v29, %v570_v29 }
 0x255   :  { %v571_v33 = vmul.f32 %v555_v21, %v507_v30  ;;  %651 = vst.msk [vmem:[%s1208_s6 + $0x30] sm:$0xf] %vm638_vm1, %v712_v5 }
 0x256   :  { %v839_v37 = vpop.eup %838 }
 0x257   :  { %v713_v36 = vpack.c.bf16 %v571_v33, %v571_v33  ;;  %v556_v46 = vadd.f32 1.0, %v839_v37 }
 0x259   :  { %652 = vst.msk [vmem:[%s1208_s6 + $0x34] sm:$0xf] %vm638_vm1, %v713_v36  ;;  %v572_v47 = vmul.f32 %v556_v46, %v508_v39 }
 0x25a   :  { %v841_v41 = vpop.eup %840 }
 0x25b   :  { %v714_v48 = vpack.c.bf16 %v572_v47, %v572_v47  ;;  %v557_v49 = vadd.f32 1.0, %v841_v41 }
 0x25d   :  { %653 = vst.msk [vmem:[%s1208_s6 + $0x38] sm:$0xf] %vm638_vm1, %v714_v48  ;;  %v573_v51 = vmul.f32 %v557_v49, %v509_v52 }
 0x25f   :  { %v715_v32 = vpack.c.bf16 %v573_v51, %v573_v51 }
 0x261   :  { %654 = vst.msk [vmem:[%s1208_s6 + $0x3c] sm:$0xf] %vm638_vm1, %v715_v32 }

// kernel: convblock_forward.6
= control target key start
LH: loop header
LB: loop body
LE: loop exit
PB: predicated region body
PF: predicated region fallthrough
CT: control target
= control target key end

     0   :  { %v380_v0 = vmov 0   ;;  %vm125_vm0 = vcmask 130048   ;;  %vm294_vm1 = vcmask 257024   ;;  %s483_s1 = inlined_call_operand.vmem [shape: bf16[144,128], index: 1, kind: input, shape index: {}]   ;;  %s484_s0 = inlined_call_operand.vmem [shape: bf16[32,144], index: 0, kind: input, shape index: {}]   ;;  %s485_s2 = inlined_call_operand.vmem [shape: f32[1,128], index: 2, kind: input, shape index: {}]   ;;  %s486_s5 = inlined_call_operand.vmem [shape: f32[1,128], index: 5, kind: input, shape index: {}]   ;;  %s487_s3 = inlined_call_operand.vmem [shape: f32[1,128], index: 3, kind: input, shape index: {}]   ;;  %s488_s4 = inlined_call_operand.vmem [shape: f32[1,128], index: 4, kind: input, shape index: {}]   ;;  %s489_s6 = inlined_call_operand.vmem [shape: bf16[32,32], index: 6, kind: output, shape index: {}]  }
   0x1   :  { %132 = vmatprep.subr.bf16.mxu0 %v380_v0  ;;  %330 = vmatprep.subr.bf16.mxu1 %v380_v0  ;;  %v349_v1 = vld [vmem:[%s483_s1] sm:$0xff]   ;;  %v350_v2 = vld [vmem:[%s483_s1 + $0x8] sm:$0xff]   ;;  %v351_v3 = vld [vmem:[%s483_s1 + $0x10] sm:$0xff]  }
   0x2   :  { %133 = vmatpush1.bf16.msra.mxu0 %v349_v1  ;;  %339 = vmatpush1.bf16.msra.mxu1 %v349_v1  ;;  %v352_v4 = vld [vmem:[%s483_s1 + $0x18] sm:$0xff]   ;;  %v360_v5 = vld [vmem:[%s484_s0 + $0x4] ss:$8 sps:$4 sm:$0xff]   ;;  %v355_v9 = vld [vmem:[%s483_s1 + $0x30] sm:$0xff]  }
   0x3   :  { %134 = vmatprep.subr.bf16.mxu0 %v380_v0  ;;  %331 = vmatprep.subr.bf16.mxu1 %v380_v0  ;;  %v363_v6 = vld [vmem:[%s484_s0 + $0x14] ss:$8 sps:$4 sm:$0xff]   ;;  %v353_v7 = vld [vmem:[%s483_s1 + $0x20] sm:$0xff]   ;;  %v354_v8 = vld [vmem:[%s483_s1 + $0x28] sm:$0xff]  }
   0x4   :  { %317 = vmatprep.mubr.msk.bf16.mxu0 %vm125_vm0, %v360_v5  ;;  %318 = vmatprep.mubr.msk.bf16.mxu1 %vm125_vm0, %v363_v6  ;;  %v356_v10 = vld [vmem:[%s483_s1 + $0x38] sm:$0xff]   ;;  %v357_v11 = vld [vmem:[%s483_s1 + $0x40] sm:$0xff]  }
   0x5   :  { %v358_v12 = vld [vmem:[%s484_s0] ss:$8 sps:$4 sm:$0xff]   ;;  %v361_v13 = vld [vmem:[%s484_s0 + $0x10] ss:$8 sps:$4 sm:$0xff]  }
   0x6   :  { %135 = vmatpush1.bf16.msra.mxu0 %v350_v2  ;;  %340 = vmatpush1.bf16.msra.mxu1 %v350_v2  ;;  %v303_v14 = vld [vmem:[%s485_s2] ss:$0 sm:$0xff] }
   0x7   :  { %136 = vmatprep.subr.bf16.mxu0 %v380_v0  ;;  %332 = vmatprep.subr.bf16.mxu1 %v380_v0  ;;  %v319_v35 = vld [vmem:[%s486_s5] ss:$0 sm:$0xff] }
   0x8   :  { %v320_v61 = vld [vmem:[%s487_s3] ss:$0 sm:$0xff] }
   0x9   :  { %v321_v63 = vld [vmem:[%s488_s4] ss:$0 sm:$0xff] }
   0xa   :  { %137 = vmatpush1.bf16.msra.mxu0 %v351_v3  ;;  %341 = vmatpush1.bf16.msra.mxu1 %v351_v3 }
   0xb   :  { %138 = vmatprep.subr.bf16.mxu0 %v380_v0  ;;  %333 = vmatprep.subr.bf16.mxu1 %v380_v0 }
   0xe   :  { %139 = vmatpush1.bf16.msra.mxu0 %v352_v4  ;;  %342 = vmatpush1.bf16.msra.mxu1 %v352_v4 }
   0xf   :  { %140 = vmatprep.subr.bf16.mxu0 %v380_v0  ;;  %334 = vmatprep.subr.bf16.mxu1 %v380_v0 }
  0x12   :  { %141 = vmatpush1.bf16.msra.mxu0 %v353_v7  ;;  %343 = vmatpush1.bf16.msra.mxu1 %v353_v7 }
  0x13   :  { %142 = vmatprep.subr.bf16.mxu0 %v380_v0  ;;  %335 = vmatprep.subr.bf16.mxu1 %v380_v0 }
  0x16   :  { %143 = vmatpush1.bf16.msra.mxu0 %v354_v8  ;;  %344 = vmatpush1.bf16.msra.mxu1 %v354_v8 }
  0x17   :  { %144 = vmatprep.subr.bf16.mxu0 %v380_v0  ;;  %336 = vmatprep.subr.bf16.mxu1 %v380_v0 }
  0x1a   :  { %145 = vmatpush1.bf16.msra.mxu0 %v355_v9  ;;  %345 = vmatpush1.bf16.msra.mxu1 %v355_v9 }
  0x1b   :  { %146 = vmatprep.subr.bf16.mxu0 %v380_v0  ;;  %337 = vmatprep.subr.bf16.mxu1 %v380_v0 }
  0x1e   :  { %147 = vmatpush1.bf16.msra.mxu0 %v356_v10  ;;  %346 = vmatpush1.bf16.msra.mxu1 %v356_v10 }
  0x1f   :  { %148 = vmatprep.subr.bf16.mxu0 %v380_v0  ;;  %338 = vmatprep.subr.bf16.mxu1 %v380_v0 }
  0x22   :  { %149 = vmatpush1.bf16.msra.mxu0 %v357_v11  ;;  %347 = vmatpush1.bf16.msra.mxu1 %v357_v11 }
  0x25   :  { %165 = vmatmul.mubr.bf16.vlgmr.msra.gmra.mrb[0].mxu0 %v358_v12  ;;  %173 = vmatmul.mubr.bf16.vlgmr.msra.gmra.mrb[0].mxu1 %v361_v13 }
  0xf8   :  { %v166_v15 = vpop.f32.mrb[0].mxu0  ;;  %v174_v16 = vpop.f32.mrb[0].mxu1 }
  0xf9   :  { %v167_v17 = vadd.f32 %v303_v14, %v166_v15  ;;  %v175_v18 = vadd.f32 %v303_v14, %v174_v16  ;;  %v168_v19 = vpop.f32.mrb[1].mxu0  ;;  %v176_v20 = vpop.f32.mrb[1].mxu1 }
  0xfa   :  { %v169_v21 = vpop.f32.mrb[2].mxu0  ;;  %v177_v22 = vpop.f32.mrb[2].mxu1 }
  0xfb   :  { %v178_v23 = vadd.f32 %v303_v14, %v177_v22  ;;  %185 = vadd.xlane.f32.xlu1 %v175_v18  ;;  %v171_v24 = vpop.f32.mrb[3].mxu0  ;;  %181 = vadd.xlane.f32.xlu0 %v167_v17  ;;  %v179_v25 = vpop.f32.mrb[3].mxu1  ;;  %v170_v26 = vadd.f32 %v303_v14, %v169_v21 }
  0xff   :  { %187 = vadd.xlane.f32.xlu1 %v178_v23  ;;  %183 = vadd.xlane.f32.xlu0 %v170_v26 }
 0x188   :  { %v186_v27 = vpop.xlane.xlu1 %185  ;;  %v182_v28 = vpop.xlane.xlu0 %181 }
 0x189   :  { %v191_v29 = vmul.f32 0.03125, %v186_v27  ;;  %v189_v30 = vmul.f32 0.03125, %v182_v28 }
 0x18b   :  { %v195_v31 = vsub.f32 %v175_v18, %v191_v29  ;;  %v193_v32 = vsub.f32 %v167_v17, %v189_v30 }
 0x18c   :  { %v188_v33 = vpop.xlane.xlu1 %187  ;;  %v184_v34 = vpop.xlane.xlu0 %183 }
 0x18d   :  { %v192_v36 = vmul.f32 0.03125, %v188_v33  ;;  %v190_v37 = vmul.f32 0.03125, %v184_v34  ;;  %v197_v38 = vmul.f32 %v193_v32, %v193_v32  ;;  %v199_v42 = vmul.f32 %v195_v31, %v195_v31 }
 0x18f   :  { %v196_v39 = vsub.f32 %v178_v23, %v192_v36  ;;  %v194_v40 = vsub.f32 %v170_v26, %v190_v37  ;;  %v208_v41 = vmul.f32 %v319_v35, %v197_v38  ;;  %v210_v44 = vmul.f32 %v319_v35, %v199_v42 }
 0x191   :  { %212 = vadd.xlane.f32.xlu0 %v208_v41  ;;  %v198_v43 = vmul.f32 %v194_v40, %v194_v40  ;;  %v200_v46 = vmul.f32 %v196_v39, %v196_v39 }
 0x193   :  { %v209_v45 = vmul.f32 %v319_v35, %v198_v43  ;;  %v211_v47 = vmul.f32 %v319_v35, %v200_v46 }
 0x195   :  { %216 = vadd.xlane.f32.xlu0 %v210_v44  ;;  %214 = vadd.xlane.f32.xlu1 %v209_v45 }
 0x199   :  { %218 = vadd.xlane.f32.xlu1 %v211_v47 }
 0x21e   :  { %v213_v48 = vpop.xlane.xlu0 %212 }
 0x21f   :  { %v220_v49 = vmul.f32 0.03125, %v213_v48 }
 0x221   :  { %v224_v50 = vadd.f32 1e-06, %v220_v49 }
 0x222   :  { %v215_v51 = vpop.xlane.xlu1 %214  ;;  %v217_v52 = vpop.xlane.xlu0 %216 }
 0x223   :  { %364 = vrsqrt.f32 %v224_v50  ;;  %v221_v53 = vmul.f32 0.03125, %v215_v51  ;;  %v222_v54 = vmul.f32 0.03125, %v217_v52 }
 0x225   :  { %v225_v55 = vadd.f32 1e-06, %v221_v53  ;;  %v226_v56 = vadd.f32 1e-06, %v222_v54 }
 0x226   :  { %v219_v57 = vpop.xlane.xlu1 %218 }
 0x227   :  { %366 = vrsqrt.f32 %v225_v55  ;;  %v223_v58 = vmul.f32 0.03125, %v219_v57 }
 0x228   :  { %368 = vrsqrt.f32 %v226_v56 }
 0x229   :  { %v227_v59 = vadd.f32 1e-06, %v223_v58 }
 0x22b   :  { %370 = vrsqrt.f32 %v227_v59 }
 0x22d   :  { %v365_v60 = vpop.eup %364 }
 0x22e   :  { %v232_v62 = vmul.f32 %v365_v60, %v193_v32 }
 0x230   :  { %v243_v0 = vmul.f32 %v320_v61, %v232_v62 }
 0x231   :  { %v367_v1 = vpop.eup %366 }
 0x232   :  { %v369_v2 = vpop.eup %368  ;;  %v254_v3 = vadd.f32 %v321_v63, %v243_v0  ;;  %v233_v4 = vmul.f32 %v367_v1, %v194_v40 }
 0x233   :  { %v234_v5 = vmul.f32 %v369_v2, %v195_v31 }
 0x234   :  { %v262_v6 = vmul.f32 0.70710677, %v254_v3  ;;  %v244_v7 = vmul.f32 %v320_v61, %v233_v4  ;;  %v258_v19 = vmul.f32 0.5, %v254_v3 }
 0x235   :  { %v371_v8 = vpop.eup %370  ;;  %v245_v9 = vmul.f32 %v320_v61, %v234_v5 }
 0x236   :  { %372 = verf.f32 %v262_v6  ;;  %v255_v10 = vadd.f32 %v321_v63, %v244_v7  ;;  %v235_v11 = vmul.f32 %v371_v8, %v196_v39 }
 0x237   :  { %v256_v12 = vadd.f32 %v321_v63, %v245_v9 }
 0x238   :  { %v263_v13 = vmul.f32 0.70710677, %v255_v10  ;;  %v246_v14 = vmul.f32 %v320_v61, %v235_v11  ;;  %v259_v25 = vmul.f32 0.5, %v255_v10 }
 0x239   :  { %v264_v15 = vmul.f32 0.70710677, %v256_v12  ;;  %v260_v27 = vmul.f32 0.5, %v256_v12 }
 0x23a   :  { %374 = verf.f32 %v263_v13  ;;  %v257_v16 = vadd.f32 %v321_v63, %v246_v14 }
 0x23b   :  { %376 = verf.f32 %v264_v15 }
 0x23c   :  { %v265_v17 = vmul.f32 0.70710677, %v257_v16  ;;  %v261_v33 = vmul.f32 0.5, %v257_v16 }
 0x23e   :  { %378 = verf.f32 %v265_v17 }
 0x240   :  { %v373_v18 = vpop.eup %372 }
 0x241   :  { %v270_v20 = vadd.f32 1.0, %v373_v18 }
 0x243   :  { %v274_v21 = vmul.f32 %v270_v20, %v258_v19 }
 0x244   :  { %v375_v22 = vpop.eup %374 }
 0x245   :  { %v377_v23 = vpop.eup %376  ;;  %v326_v24 = vpack.c.bf16 %v274_v21, %v274_v21  ;;  %v271_v26 = vadd.f32 1.0, %v375_v22 }
 0x246   :  { %v272_v28 = vadd.f32 1.0, %v377_v23 }
 0x247   :  { %295 = vst.msk [vmem:[%s489_s6] sm:$0xf] %vm294_vm1, %v326_v24  ;;  %v275_v29 = vmul.f32 %v271_v26, %v259_v25 }
 0x248   :  { %v379_v30 = vpop.eup %378  ;;  %v276_v31 = vmul.f32 %v272_v28, %v260_v27 }
 0x249   :  { %v327_v32 = vpack.c.bf16 %v275_v29, %v275_v29  ;;  %v273_v34 = vadd.f32 1.0, %v379_v30 }
 0x24a   :  { %v328_v35 = vpack.c.bf16 %v276_v31, %v276_v31 }
 0x24b   :  { %296 = vst.msk [vmem:[%s489_s6 + $0x4] sm:$0xf] %vm294_vm1, %v327_v32  ;;  %v277_v36 = vmul.f32 %v273_v34, %v261_v33 }
 0x24c   :  { %297 = vst.msk [vmem:[%s489_s6 + $0x8] sm:$0xf] %vm294_vm1, %v328_v35 }
 0x24d   :  { %v329_v37 = vpack.c.bf16 %v277_v36, %v277_v36 }
 0x24f   :  { %298 = vst.msk [vmem:[%s489_s6 + $0xc] sm:$0xf] %vm294_vm1, %v329_v37 }

// kernel: convblock_forward.7
= control target key start
LH: loop header
LB: loop body
LE: loop exit
PB: predicated region body
PF: predicated region fallthrough
CT: control target
= control target key end

     0   :  { %v603_v2 = vmov 0.0   ;;  %vm604_vm0 = vmmov 0   ;;  %vm194_vm1 = vcmask 261120   ;;  %s776_s0 = inlined_call_operand.vmem [shape: bf16[8,288], index: 0, kind: input, shape index: {}]   ;;  %s777_s1 = inlined_call_operand.vmem [shape: bf16[288,128], index: 1, kind: input, shape index: {}]   ;;  %s778_s2 = inlined_call_operand.vmem [shape: f32[1,128], index: 2, kind: input, shape index: {}]   ;;  %s779_s3 = inlined_call_operand.vmem [shape: f32[1,128], index: 3, kind: input, shape index: {}]   ;;  %s780_s4 = inlined_call_operand.vmem [shape: f32[1,128], index: 4, kind: input, shape index: {}]   ;;  %s781_s5 = inlined_call_operand.vmem [shape: f32[1,128], index: 5, kind: input, shape index: {}]   ;;  %s782_s6 = inlined_call_operand.vmem [shape: bf16[128,128], index: 6, kind: input, shape index: {}]   ;;  %s783_s7 = inlined_call_operand.vmem [shape: f32[1,128], index: 7, kind: input, shape index: {}]   ;;  %s784_s8 = inlined_call_operand.hbm [shape: f32[8,64], index: 8, kind: output, shape index: {}]  }
   0x1   :  { %v546_v0 = vld [vmem:[%s777_s1 + $0x40] sm:$0xff]   ;;  %515 = vmatprep.subr.bf16.mxu1 %v603_v2  ;;  %v548_v3 = vld [vmem:[%s777_s1 + $0x48] sm:$0xff]   ;;  %519 = vmatprep.mubr.msk.bf16.mxu1 %vm604_vm0, %v603_v2  ;;  %v550_v5 = vld [vmem:[%s777_s1 + $0x50] sm:$0xff]  }
   0x2   :  { %v547_v1 = vld [vmem:[%s777_s1] sm:$0xff]   ;;  %481 = vmatprep.subr.bf16.mxu0 %v546_v0  ;;  %v549_v4 = vld [vmem:[%s777_s1 + $0x8] sm:$0xff]   ;;  %v551_v6 = vld [vmem:[%s777_s1 + $0x10] sm:$0xff]  }
   0x3   :  { %482 = vmatpush3.bf16.msra.mxu0 %v547_v1  ;;  %v552_v7 = vld [vmem:[%s777_s1 + $0x58] sm:$0xff]   ;;  %v554_v9 = vld [vmem:[%s777_s1 + $0x60] sm:$0xff]   ;;  %v556_v12 = vld [vmem:[%s777_s1 + $0x68] sm:$0xff]  }
   0x4   :  { %483 = vmatprep.subr.bf16.mxu0 %v548_v3  ;;  %v553_v8 = vld [vmem:[%s777_s1 + $0x18] sm:$0xff]   ;;  %v560_v10 = vld [vmem:[%s777_s1 + $0x80] sm:$0xff]   ;;  %v557_v13 = vld [vmem:[%s777_s1 + $0x28] sm:$0xff]  }
   0x5   :  { %v555_v11 = vld [vmem:[%s777_s1 + $0x20] sm:$0xff]   ;;  %516 = vmatpush3.bf16.msra.mxu1 %v560_v10  ;;  %v558_v15 = vld [vmem:[%s777_s1 + $0x70] sm:$0xff]   ;;  %v565_v17 = vld [vmem:[%s777_s1 + $0x88] sm:$0xff]  }
   0x6   :  { %517 = vmatprep.subr.bf16.mxu1 %v603_v2  ;;  %v31_v14 = vld [vmem:[%s776_s0] sm:$0xff]  ;;  %v566_v18 = vld [vmem:[%s776_s0 + $0x8] ss:$0 sps:$4 sm:$0xff]   ;;  %v559_v19 = vld [vmem:[%s777_s1 + $0x30] sm:$0xff]  }
   0x7   :  { %484 = vmatpush3.bf16.msra.mxu0 %v549_v4  ;;  %v448_v16 = vcombine.high %v31_v14, %v31_v14  ;;  %v561_v20 = vld [vmem:[%s777_s1 + $0x78] sm:$0xff]  }
   0x8   :  { %485 = vmatprep.subr.bf16.mxu0 %v550_v5 }
   0x9   :  { %230 = vmatprep.mubr.bf16.mxu0 %v448_v16  ;;  %518 = vmatpush3.bf16.msra.mxu1 %v565_v17 }
   0xa   :  { %523 = vmatprep.subr.bf16.mxu1 %v603_v2 }
   0xb   :  { %486 = vmatpush3.bf16.msra.mxu0 %v551_v6 }
   0xc   :  { %487 = vmatprep.subr.bf16.mxu0 %v552_v7  ;;  %520 = vmatmul.mubr.msk.bf16.vlgmr.msra.gmra.mrb[0].mxu1 %vm194_vm1, %v566_v18 }
   0xf   :  { %488 = vmatpush3.bf16.msra.mxu0 %v553_v8 }
  0x10   :  { %489 = vmatprep.subr.bf16.mxu0 %v554_v9 }
  0x13   :  { %490 = vmatpush3.bf16.msra.mxu0 %v555_v11 }
  0x14   :  { %491 = vmatprep.subr.bf16.mxu0 %v556_v12 }
  0x17   :  { %492 = vmatpush3.bf16.msra.mxu0 %v557_v13 }
  0x18   :  { %493 = vmatprep.subr.bf16.mxu0 %v558_v15 }
  0x19   :  { %13 = vsyncpa [#allocation3], 0  ;;  %539 = vmatprep.mubr.msk.bf16.mxu1 %vm604_vm0, %v603_v2  ;;  %v562_v21 = vld [vmem:[%s777_s1 + $0x38] sm:$0xff]   ;;  %v447_v22 = vcombine.low %v31_v14, %v31_v14  ;;  %v446_v29 = vld [vmem:[%s778_s2] ss:$0 sm:$0xff]  ;;  %vm430_vm2 = vcmask 523264  }
  0x1a   :  { %v469_v38 = vld [vmem:[%s781_s5] ss:$0 sm:$0xff]  ;;  %v568_v42 = vld [vmem:[%s782_s6 + $0x8] sm:$0xff]   ;;  %v569_v43 = vld [vmem:[%s782_s6 + $0x10] sm:$0xff]  }
  0x1b   :  { %494 = vmatpush3.bf16.msra.mxu0 %v559_v19  ;;  %v567_v41 = vld [vmem:[%s782_s6] sm:$0xff]   ;;  %v570_v44 = vld [vmem:[%s782_s6 + $0x18] sm:$0xff]   ;;  %v572_v46 = vld [vmem:[%s782_s6 + $0x28] sm:$0xff]  }
  0x1c   :  { %495 = vmatprep.subr.bf16.mxu0 %v561_v20  ;;  %524 = vmatpush3.bf16.msra.mxu1 %v567_v41  ;;  %v571_v45 = vld [vmem:[%s782_s6 + $0x20] sm:$0xff]   ;;  %v573_v47 = vld [vmem:[%s782_s6 + $0x30] sm:$0xff]   ;;  %v574_v48 = vld [vmem:[%s782_s6 + $0x38] sm:$0xff]  }
  0x1d   :  { %525 = vmatprep.subr.bf16.mxu1 %v603_v2  ;;  %v470_v53 = vld [vmem:[%s779_s3] ss:$0 sm:$0xff]  ;;  %s605_s3 = smov [#allocation2]  }
  0x1e   :  { %v471_v55 = vld [vmem:[%s780_s4] ss:$0 sm:$0xff]  ;;  %s438_s21 = sshll.u32 %s605_s3, 4  ;;  %s439_s21 = int_to_ptr.vmem [resolvable:$true] %s438_s21 }
  0x1f   :  { %496 = vmatpush3.bf16.msra.mxu0 %v562_v21  ;;  %v472_v0 = vld [vmem:[%s783_s7] ss:$0 sm:$0xff]  ;;  %s579_s4 = scalar_lea.vmem %s439_s21, 128  ;;  %p584_p1 = scmp.lt.s32.totalorder %s439_s21, %s439_s21 }
  0x20   :  { %526 = vmatpush3.bf16.msra.mxu1 %v568_v42  ;;  %p580_p0 = scmp.ne.s32.totalorder %s439_s21, %s579_s4  ;;  %p585_p2 = scmp.lt.s32.totalorder %s579_s4, %s579_s4 }
  0x21   :  { %527 = vmatprep.subr.bf16.mxu1 %v603_v2 }
  0x22   :  { %231 = vmatmul.mubr.bf16.vlgmr.msra.gmra.mrb[0].mxu0 %v447_v22  ;;  %p586_p3 = por %p585_p2, %p584_p1 }
  0x24   :  { %528 = vmatpush3.bf16.msra.mxu1 %v569_v43  ;;  %p587_p4 = pnand %p586_p3, %p580_p0 }
  0x25   :  { %529 = vmatprep.subr.bf16.mxu1 %v603_v2 }
  0x28   :  { %530 = vmatpush3.bf16.msra.mxu1 %v570_v44 }
  0x29   :  { %531 = vmatprep.subr.bf16.mxu1 %v603_v2 }
  0x2c   :  { %532 = vmatpush3.bf16.msra.mxu1 %v571_v45 }
  0x2d   :  { %533 = vmatprep.subr.bf16.mxu1 %v603_v2 }
  0x30   :  { %534 = vmatpush3.bf16.msra.mxu1 %v572_v46 }
  0x31   :  { %535 = vmatprep.subr.bf16.mxu1 %v603_v2 }
  0x34   :  { %536 = vmatpush3.bf16.msra.mxu1 %v573_v47 }
  0x35   :  { %537 = vmatprep.subr.bf16.mxu1 %v603_v2 }
  0x38   :  { %538 = vmatpush3.bf16.msra.mxu1 %v574_v48 }
  0xdf   :  { %v272_v23 = vpop.f32.mrb[0].mxu1 }
  0xe0   :  { %v521_v24 = vpop.f32.mrb[1].mxu1 }
  0xe1   :  { %v275_v25 = vpop.f32.mrb[2].mxu1 }
  0xe2   :  { %v522_v26 = vpop.f32.mrb[3].mxu1 }
  0xf5   :  { %v497_v27 = vpop.f32.mrb[0].mxu0 }
  0xf6   :  { %v498_v28 = vpop.f32.mrb[1].mxu0 }
  0xf7   :  { %v499_v30 = vadd.f32 %v498_v28, %v497_v27  ;;  %v500_v31 = vpop.f32.mrb[2].mxu0 }
  0xf8   :  { %v501_v32 = vpop.f32.mrb[3].mxu0 }
  0xf9   :  { %v233_v33 = vadd.f32 %v499_v30, %v446_v29 }
  0xfb   :  { %v273_v34 = vadd.f32 %v272_v23, %v233_v33 }
  0xfd   :  { %278 = vadd.xlane.f32.xlu0 %v273_v34 }
 0x18a   :  { %v279_v35 = vpop.xlane.xlu0 %278 }
 0x18b   :  { %v280_v36 = vmul.f32 0.015625, %v279_v35 }
 0x18d   :  { %v281_v37 = vsub.f32 %v273_v34, %v280_v36 }
 0x18f   :  { %v282_v39 = vmul.f32 %v281_v37, %v281_v37 }
 0x191   :  { %v290_v40 = vmul.f32 %v469_v38, %v282_v39 }
 0x193   :  { %291 = vadd.xlane.f32.xlu0 %v290_v40 }
 0x220   :  { %v292_v49 = vpop.xlane.xlu0 %291 }
 0x221   :  { %v293_v50 = vmul.f32 0.015625, %v292_v49 }
 0x223   :  { %v294_v51 = vadd.f32 1e-06, %v293_v50 }
 0x225   :  { %575 = vrsqrt.f32 %v294_v51 }
 0x22f   :  { %v576_v52 = vpop.eup %575 }
 0x230   :  { %v296_v54 = vmul.f32 %v576_v52, %v281_v37 }
 0x232   :  { %v304_v56 = vmul.f32 %v470_v53, %v296_v54 }
 0x234   :  { %v312_v57 = vadd.f32 %v471_v55, %v304_v56 }
 0x236   :  { %v314_v58 = vmul.f32 0.70710677, %v312_v57  ;;  %v313_v60 = vmul.f32 0.5, %v312_v57 }
 0x238   :  { %577 = verf.f32 %v314_v58 }
 0x242   :  { %v578_v59 = vpop.eup %577 }
 0x243   :  { %v316_v61 = vadd.f32 1.0, %v578_v59 }
 0x245   :  { %v317_v62 = vmul.f32 %v316_v61, %v313_v60 }
 0x247   :  { %v318_v63 = vpack.c.bf16 %v317_v62, %v317_v62 }
 0x249   :  { %540 = vmatmul.mubr.bf16.vlgmr.msra.gmra.mrb[4].mxu1 %v318_v63 }
 0x31c   :  { %v424_v1 = vpop.f32.mrb[4].mxu1 }
 0x31d   :  { %v425_v2 = vadd.f32 %v472_v0, %v424_v1  ;;  %v541_v3 = vpop.f32.mrb[5].mxu1 }
 0x31e   :  { %v427_v4 = vpop.f32.mrb[6].mxu1 }
 0x31f   :  { %v542_v5 = vpop.f32.mrb[7].mxu1  ;;  %431 = vst.msk [vmem:[#allocation2] sm:$0xff] %vm430_vm2, %v425_v2 }
 0x320   :  { %590 = shalt.err (!%p587_p4)
}
 0x321   :  { %s591_s7 = scalar_lea.hbm %s784_s8, 128 }
 0x322   :  { %p592_p5 = scmp.ne.s32.totalorder %s784_s8, %s591_s7  ;;  %p595_p6 = scmp.lt.u32.totalorder %s591_s7, %s784_s8 }
 0x324   :  { %p597_p7 = pnand %p595_p6, %p592_p5 }
 0x326   :  { %600 = shalt.err (!%p597_p7)
}
 0x327   :  { %441 = dma.vmem_to_hbm [thread:$0]  %s439_s21, 128, %s784_s8, [#allocation3]  }
 0x328   :  { %601 = dma.done.wait [#allocation3], 128  }
 0x329   :  { %602 = vsyncadd [#allocation3], 4294967168 }
 0x32a   :  { %445 = vsyncpa [#allocation3], 1 }

</bundles_post_ra>
